<compile_context>
chip_gen: v7x
topology: tpu7x:2x2x1
jax: 0.10.0
libtpu: 0.0.40
codegen_flags: <defaults>
</compile_context>

<pallas_src>
import numpy as np
import jax
import jax.numpy as jnp
from jax.experimental import pallas as pl
from jax.experimental.pallas import tpu as pltpu

EMBED = 80        # module's self.embed
HIDDEN = 128      # module uses d=1024; lane-aligned small size for the demo
NUM_LAYERS = 4    # module's encoder_layers


# ------------------ gates precompute kernels (parallel matmuls) -------------
def _proj_gates_kernel(x_ref, pw_ref, pb_ref, wih_ref, b_ref, o_ref):
    # fused post_extract_proj + layer-0 input gates:
    #   gates_x = (x @ W_proj + b_proj) @ W_ih + (b_ih + b_hh)
    feats = (
        jnp.dot(x_ref[...], pw_ref[...], preferred_element_type=jnp.float32)
        + pb_ref[...]
    )
    o_ref[...] = (
        jnp.dot(feats, wih_ref[...], preferred_element_type=jnp.float32)
        + b_ref[...]
    )


def _input_gates_kernel(x_ref, wih_ref, b_ref, o_ref):
    o_ref[...] = (
        jnp.dot(x_ref[...], wih_ref[...], preferred_element_type=jnp.float32)
        + b_ref[...]
    )


def _pick_row_tile(M, target=256):
    if M <= target:
        return M
    tm = target
    while tm > 8 and M % tm != 0:
        tm -= 8
    return tm if (M % tm == 0) else M


def proj_gates(x0, proj_w, proj_b, wih, b):
    """x0: (2, T*B, E) -> gates_x: (2, T*B, 4D). Fused proj + layer-0 W_ih."""
    G, M, E = x0.shape
    D = proj_w.shape[1]
    H4 = wih.shape[-1]
    tm = _pick_row_tile(M)
    grid = (G, M // tm)
    return pl.pallas_call(
        _proj_gates_kernel,
        out_shape=jax.ShapeDtypeStruct((G, M, H4), jnp.float32),
        grid_spec=pltpu.PrefetchScalarGridSpec(
            num_scalar_prefetch=0,
            grid=grid,
            in_specs=[
                pl.BlockSpec((pl.Squeezed(), tm, E), lambda g, m: (g, m, 0)),
                pl.BlockSpec((E, D), lambda g, m: (0, 0)),
                pl.BlockSpec((1, D), lambda g, m: (0, 0)),
                pl.BlockSpec((pl.Squeezed(), D, H4), lambda g, m: (g, 0, 0)),
                pl.BlockSpec((pl.Squeezed(), 1, H4), lambda g, m: (g, 0, 0)),
            ],
            out_specs=pl.BlockSpec((pl.Squeezed(), tm, H4),
                                   lambda g, m: (g, m, 0)),
        ),
        compiler_params=pltpu.CompilerParams(
            dimension_semantics=("parallel", "parallel")),
    )(x0, proj_w, proj_b.reshape(1, D), wih, b)


def input_gates(x, wih, b):
    """x: (2, T*B, D_in) -> gates_x: (2, T*B, 4D) for layers >= 1."""
    G, M, D_in = x.shape
    H4 = wih.shape[-1]
    tm = _pick_row_tile(M)
    grid = (G, M // tm)
    return pl.pallas_call(
        _input_gates_kernel,
        out_shape=jax.ShapeDtypeStruct((G, M, H4), jnp.float32),
        grid_spec=pltpu.PrefetchScalarGridSpec(
            num_scalar_prefetch=0,
            grid=grid,
            in_specs=[
                pl.BlockSpec((pl.Squeezed(), tm, D_in), lambda g, m: (g, m, 0)),
                pl.BlockSpec((pl.Squeezed(), D_in, H4), lambda g, m: (g, 0, 0)),
                pl.BlockSpec((pl.Squeezed(), 1, H4), lambda g, m: (g, 0, 0)),
            ],
            out_specs=pl.BlockSpec((pl.Squeezed(), tm, H4),
                                   lambda g, m: (g, m, 0)),
        ),
        compiler_params=pltpu.CompilerParams(
            dimension_semantics=("parallel", "parallel")),
    )(x, wih, b)


# --------------------- packed fwd+bwd LSTM recurrence kernel ----------------
def _lstm_chunk_kernel(gx_ref, whh_ref, len_ref, o_ref, h_scr, c_scr):
    chunk = pl.program_id(0)

    @pl.when(chunk == 0)
    def _():
        h_scr[...] = jnp.zeros_like(h_scr)
        c_scr[...] = jnp.zeros_like(c_scr)

    _, B, D = h_scr.shape
    Tc = gx_ref.shape[1] // B

    whh = whh_ref[...]                 # (2, D, 4D), resident across the chunk
    lens = len_ref[...]                # (B, 1) int32
    h = h_scr[...]                     # (2, B, D)  [fwd, bwd]
    c = c_scr[...]

    # Static unroll over the time chunk: only h @ W_hh + elementwise per step.
    for lt in range(Tc):
        gx_t = gx_ref[:, lt * B:(lt + 1) * B, :]               # (2, B, 4D)
        gates = gx_t + jnp.einsum("gbd,gdh->gbh", h, whh,
                                  preferred_element_type=jnp.float32)
        # PyTorch LSTM gate order: i, f, g, o
        i = jax.nn.sigmoid(gates[..., 0 * D:1 * D])
        f = jax.nn.sigmoid(gates[..., 1 * D:2 * D])
        g = jnp.tanh(gates[..., 2 * D:3 * D])
        o = jax.nn.sigmoid(gates[..., 3 * D:4 * D])
        c_new = f * c + i * g
        h_new = o * jnp.tanh(c_new)

        valid = ((chunk * Tc + lt) < lens)[None]               # (1, B, 1)
        c = jnp.where(valid, c_new, c)
        h = jnp.where(valid, h_new, h)
        # pad_packed_sequence zero-fills beyond each sequence length
        o_ref[:, lt * B:(lt + 1) * B, :] = jnp.where(valid, h_new, 0.0)

    h_scr[...] = h
    c_scr[...] = c


def lstm_recurrence(gates_x, whh, len2, T, B):
    """Packed forward+backward LSTM recurrence with length masking.

    gates_x: (2, T*B, 4D) precomputed x @ W_ih + b (rows t-major / b-minor).
    whh:     (2, D, 4D)   per-direction hidden-to-hidden weights.
    len2:    (B, 1) int32 sequence lengths.
    Returns h_out (2, T*B, D) with positions t >= len[b] set to zero.
    """
    G, M, H4 = gates_x.shape
    D = whh.shape[1]
    assert M == T * B and H4 == 4 * D
    Tc = min(T, 8)
    while T % Tc != 0:
        Tc -= 1
    assert (Tc * B) % 8 == 0 or Tc * B == M, "time chunk not sublane aligned"
    grid = (T // Tc,)
    return pl.pallas_call(
        _lstm_chunk_kernel,
        out_shape=jax.ShapeDtypeStruct((G, M, D), jnp.float32),
        grid_spec=pltpu.PrefetchScalarGridSpec(
            num_scalar_prefetch=0,
            grid=grid,
            in_specs=[
                pl.BlockSpec((G, Tc * B, H4), lambda c: (0, c, 0)),
                pl.BlockSpec((G, D, H4), lambda c: (0, 0, 0)),
                pl.BlockSpec((B, 1), lambda c: (0, 0)),
            ],
            out_specs=pl.BlockSpec((G, Tc * B, D), lambda c: (0, c, 0)),
            scratch_shapes=[
                pltpu.VMEM((G, B, D), jnp.float32),   # h state (fwd, bwd)
                pltpu.VMEM((G, B, D), jnp.float32),   # c state (fwd, bwd)
            ],
        ),
        compiler_params=pltpu.CompilerParams(
            dimension_semantics=("arbitrary",)),
    )(gates_x, whh, len2)


# ------------------------------ glue (plain JAX) ----------------------------
def flip_batch(x_btd, lengths):
    """Reverse x[b, :lengths[b]] along time; padded tail stays (torch flipBatch)."""
    B, T = x_btd.shape[0], x_btd.shape[1]
    t_idx = jnp.arange(T)[None, :]
    L = lengths[:, None]
    src = jnp.where(t_idx < L, L - 1 - t_idx, t_idx)            # (B, T)
    return jnp.take_along_axis(x_btd, src[:, :, None], axis=1)


def _process_padding_mask(padding_mask, B, T):
    extra = padding_mask.shape[1] % T
    if extra > 0:
        padding_mask = padding_mask[:, :-extra]
    padding_mask = padding_mask.reshape(B, T, -1)
    padding_mask = jnp.all(padding_mask, axis=-1)
    lengths = jnp.sum(jnp.logical_not(padding_mask), axis=-1).astype(jnp.int32)
    return lengths


def decoar_forward(params, features, padding_mask):
    B, T, E = features.shape
    D = params["proj_w"].shape[1]
    lengths = _process_padding_mask(padding_mask, B, T)
    len2 = lengths.reshape(B, 1)

    def stack_dir(l, key):
        return jnp.stack([params["fwd"][l][key], params["bwd"][l][key]], axis=0)

    # Layer-0 inputs: forward = features, backward = per-sequence time flip.
    # Packed direction-major, rows t-major / b-minor => (2, T*B, E).
    x_fwd = jnp.transpose(features, (1, 0, 2))                       # (T, B, E)
    x_bwd = jnp.transpose(flip_batch(features, lengths), (1, 0, 2))  # (T, B, E)
    x0 = jnp.stack([x_fwd, x_bwd], axis=0).reshape(2, T * B, E)

    layer_outs = []
    x = None
    for l in range(NUM_LAYERS):
        wih = stack_dir(l, "wih")                                # (2, D, 4D)
        b = stack_dir(l, "b").reshape(2, 1, 4 * D)               # (2, 1, 4D)
        if l == 0:
            gx = proj_gates(x0, params["proj_w"], params["proj_b"], wih, b)
        else:
            gx = input_gates(x, wih, b)
        x = lstm_recurrence(gx, stack_dir(l, "whh"), len2, T, B)  # (2, T*B, D)
        layer_outs.append(x)

    outs = []
    for x in layer_outs:
        xr = x.reshape(2, T, B, D)
        xf = jnp.transpose(xr[0], (1, 0, 2))                       # (B, T, D)
        xb = flip_batch(jnp.transpose(xr[1], (1, 0, 2)), lengths)  # flip back
        outs.append(jnp.concatenate([xf, xb], axis=-1))            # (B, T, 2D)
    return outs


# ----------------------------- pure-JAX reference ---------------------------
def _lstm_ref(x_btd, wih, whh, b, lengths):
    B, T, _ = x_btd.shape
    D = whh.shape[0]

    def step(carry, inp):
        h, c = carry
        x_t, t = inp
        gates = x_t @ wih + h @ whh + b[None, :]
        i = jax.nn.sigmoid(gates[:, :D])
        f = jax.nn.sigmoid(gates[:, D:2 * D])
        g = jnp.tanh(gates[:, 2 * D:3 * D])
        o = jax.nn.sigmoid(gates[:, 3 * D:])
        c_new = f * c + i * g
        h_new = o * jnp.tanh(c_new)
        valid = (t < lengths)[:, None]
        c2 = jnp.where(valid, c_new, c)
        h2 = jnp.where(valid, h_new, h)
        out = jnp.where(valid, h_new, 0.0)
        return (h2, c2), out

    init = (jnp.zeros((B, D), jnp.float32), jnp.zeros((B, D), jnp.float32))
    xs = (jnp.transpose(x_btd, (1, 0, 2)), jnp.arange(T))
    _, outs = jax.lax.scan(step, init, xs)
    return jnp.transpose(outs, (1, 0, 2))


def decoar_ref(params, features, padding_mask):
    B, T, E = features.shape
    D = params["proj_w"].shape[1]
    lengths = _process_padding_mask(padding_mask, B, T)
    feats = (features.reshape(B * T, E) @ params["proj_w"]
             + params["proj_b"]).reshape(B, T, D)
    fwd, x = [], feats
    for p in params["fwd"]:
        x = _lstm_ref(x, p["wih"], p["whh"], p["b"], lengths)
        fwd.append(x)
    bwd, x = [], flip_batch(feats, lengths)
    for p in params["bwd"]:
        x = _lstm_ref(x, p["wih"], p["whh"], p["b"], lengths)
        bwd.append(x)
    return [jnp.concatenate([f, flip_batch(bb, lengths)], axis=-1)
            for f, bb in zip(fwd, bwd)]


# ---------------------------------- params ----------------------------------
def init_params(key):
    D, E = HIDDEN, EMBED
    keys = jax.random.split(key, 2 + 2 * NUM_LAYERS * 3)
    it = iter(keys)
    scale = 1.0 / np.sqrt(D)
    params = {
        "proj_w": jax.random.normal(next(it), (E, D), jnp.float32) / np.sqrt(E),
        "proj_b": jax.random.normal(next(it), (D,), jnp.float32) * 0.01,
        "fwd": [],
        "bwd": [],
    }
    for name in ("fwd", "bwd"):
        for _ in range(NUM_LAYERS):
            params[name].append({
                # stored pre-transposed: (D_in, 4D), (D, 4D); bias = b_ih + b_hh
                "wih": jax.random.normal(next(it), (D, 4 * D), jnp.float32) * scale,
                "whh": jax.random.normal(next(it), (D, 4 * D), jnp.float32) * scale,
                "b": jax.random.normal(next(it), (4 * D,), jnp.float32) * 0.01,
            })
    return params


if __name__ == "__main__":
    key = jax.random.PRNGKey(0)
    pk, xk = jax.random.split(key)
    params = init_params(pk)

    B, T = 2, 16
    features = jax.random.normal(xk, (B, T, EMBED), jnp.float32)
    # padding_mask: True = padded.  Sequence lengths [16, 11].
    seq_lens = np.array([16, 11], dtype=np.int32)
    padding_mask = jnp.asarray(np.arange(T)[None, :] >= seq_lens[:, None])

    outs = jax.jit(decoar_forward)(params, features, padding_mask)
    outs = jax.block_until_ready(outs)

    refs = decoar_ref(params, features, padding_mask)
    assert len(outs) == NUM_LAYERS
    for o, r in zip(outs, refs):
        assert o.shape == (B, T, 2 * HIDDEN)
        np.testing.assert_allclose(np.asarray(o), np.asarray(r),
                                   rtol=2e-3, atol=2e-3)
    print("KERNEL_OK")
</pallas_src>

<mosaic_0001>
module attributes {stable_mosaic.version = 11 : i64} {
  func.func @_proj_gates_kernel(%arg0: i32, %arg1: i32, %arg2: memref<1x32x80xf32, #tpu.memory_space<vmem>>, %arg3: memref<80x128xf32, #tpu.memory_space<vmem>>, %arg4: memref<1x128xf32, #tpu.memory_space<vmem>>, %arg5: memref<1x128x512xf32, #tpu.memory_space<vmem>>, %arg6: memref<1x1x512xf32, #tpu.memory_space<vmem>>, %arg7: memref<1x32x512xf32, #tpu.memory_space<vmem>>) attributes {dimension_semantics = [#tpu.dimension_semantics<parallel>, #tpu.dimension_semantics<parallel>], iteration_bounds = array<i64: 2, 1>, scalar_prefetch = 0 : i64, scratch_operands = 0 : i64, tpu.core_type = #tpu.core_type<tc>, window_params = [{transform_indices = @transform_0, window_bounds = array<i64: 1, 32, 80>}, {pipeline_mode = #tpu.pipeline_mode<synchronous>, transform_indices = @transform_1, window_bounds = array<i64: 80, 128>}, {pipeline_mode = #tpu.pipeline_mode<synchronous>, transform_indices = @transform_2, window_bounds = array<i64: 1, 128>}, {transform_indices = @transform_3, window_bounds = array<i64: 1, 128, 512>}, {transform_indices = @transform_4, window_bounds = array<i64: 1, 1, 512>}, {transform_indices = @transform_5, window_bounds = array<i64: 1, 32, 512>}]} {
    %c0 = arith.constant 0 : index
    %c0_0 = arith.constant 0 : index
    %c0_1 = arith.constant 0 : index
    %0 = vector.load %arg2[%c0, %c0_0, %c0_1] : memref<1x32x80xf32, #tpu.memory_space<vmem>>, vector<1x32x80xf32>
    %1 = vector.shape_cast %0 : vector<1x32x80xf32> to vector<32x80xf32>
    %c0_2 = arith.constant 0 : index
    %c0_3 = arith.constant 0 : index
    %2 = vector.load %arg3[%c0_2, %c0_3] : memref<80x128xf32, #tpu.memory_space<vmem>>, vector<80x128xf32>
    %cst = arith.constant dense<0.000000e+00> : vector<32x128xf32>
    %3 = tpu.matmul %1, %2, %cst {dimension_numbers = #tpu.dot_dimension_numbers<[1], [0], [0], [1], [0, 0, 1, 1], [], []>} : vector<32x80xf32>, vector<80x128xf32>, vector<32x128xf32> -> vector<32x128xf32>
    %c0_4 = arith.constant 0 : index
    %c0_5 = arith.constant 0 : index
    %4 = vector.load %arg4[%c0_4, %c0_5] : memref<1x128xf32, #tpu.memory_space<vmem>>, vector<1x128xf32>
    %5 = vector.broadcast %4 : vector<1x128xf32> to vector<32x128xf32>
    %6 = arith.addf %3, %5 : vector<32x128xf32>
    %c0_6 = arith.constant 0 : index
    %c0_7 = arith.constant 0 : index
    %c0_8 = arith.constant 0 : index
    %7 = vector.load %arg5[%c0_6, %c0_7, %c0_8] : memref<1x128x512xf32, #tpu.memory_space<vmem>>, vector<1x128x512xf32>
    %8 = vector.shape_cast %7 : vector<1x128x512xf32> to vector<128x512xf32>
    %cst_9 = arith.constant dense<0.000000e+00> : vector<32x512xf32>
    %9 = tpu.matmul %6, %8, %cst_9 {dimension_numbers = #tpu.dot_dimension_numbers<[1], [0], [0], [1], [0, 0, 1, 1], [], []>} : vector<32x128xf32>, vector<128x512xf32>, vector<32x512xf32> -> vector<32x512xf32>
    %c0_10 = arith.constant 0 : index
    %c0_11 = arith.constant 0 : index
    %c0_12 = arith.constant 0 : index
    %10 = vector.load %arg6[%c0_10, %c0_11, %c0_12] : memref<1x1x512xf32, #tpu.memory_space<vmem>>, vector<1x1x512xf32>
    %11 = vector.shape_cast %10 : vector<1x1x512xf32> to vector<1x512xf32>
    %12 = vector.broadcast %11 : vector<1x512xf32> to vector<32x512xf32>
    %13 = arith.addf %9, %12 : vector<32x512xf32>
    %c0_13 = arith.constant 0 : index
    %c0_14 = arith.constant 0 : index
    %c0_15 = arith.constant 0 : index
    %14 = vector.load %arg7[%c0_13, %c0_14, %c0_15] : memref<1x32x512xf32, #tpu.memory_space<vmem>>, vector<1x32x512xf32>
    %15 = vector.shape_cast %14 : vector<1x32x512xf32> to vector<32x512xf32>
    %16 = vector.shape_cast %13 : vector<32x512xf32> to vector<1x32x512xf32>
    tpu.vector_store %arg7[%c0_13, %c0_14, %c0_15], %16 {strides = array<i32>} : memref<1x32x512xf32, #tpu.memory_space<vmem>>, vector<1x32x512xf32>,
    return
  }
  func.func @transform_0(%arg0: i32, %arg1: i32) -> (i32, i32, i32) {
    %c0_i32 = arith.constant 0 : i32
    %c0_i32_0 = arith.constant 0 : i32
    return %arg0, %arg1, %c0_i32 : i32, i32, i32
  }
  func.func @transform_1(%arg0: i32, %arg1: i32) -> (i32, i32) {
    %c0_i32 = arith.constant 0 : i32
    %c0_i32_0 = arith.constant 0 : i32
    %c0_i32_1 = arith.constant 0 : i32
    return %c0_i32, %c0_i32_0 : i32, i32
  }
  func.func @transform_2(%arg0: i32, %arg1: i32) -> (i32, i32) {
    %c0_i32 = arith.constant 0 : i32
    %c0_i32_0 = arith.constant 0 : i32
    %c0_i32_1 = arith.constant 0 : i32
    return %c0_i32, %c0_i32_0 : i32, i32
  }
  func.func @transform_3(%arg0: i32, %arg1: i32) -> (i32, i32, i32) {
    %c0_i32 = arith.constant 0 : i32
    %c0_i32_0 = arith.constant 0 : i32
    %c0_i32_1 = arith.constant 0 : i32
    return %arg0, %c0_i32, %c0_i32_0 : i32, i32, i32
  }
  func.func @transform_4(%arg0: i32, %arg1: i32) -> (i32, i32, i32) {
    %c0_i32 = arith.constant 0 : i32
    %c0_i32_0 = arith.constant 0 : i32
    %c0_i32_1 = arith.constant 0 : i32
    return %arg0, %c0_i32, %c0_i32_0 : i32, i32, i32
  }
  func.func @transform_5(%arg0: i32, %arg1: i32) -> (i32, i32, i32) {
    %c0_i32 = arith.constant 0 : i32
    %c0_i32_0 = arith.constant 0 : i32
    return %arg0, %arg1, %c0_i32 : i32, i32, i32
  }
}

module attributes {stable_mosaic.version = 11 : i64} {
  func.func @_input_gates_kernel(%arg0: i32, %arg1: i32, %arg2: memref<1x32x128xf32, #tpu.memory_space<vmem>>, %arg3: memref<1x128x512xf32, #tpu.memory_space<vmem>>, %arg4: memref<1x1x512xf32, #tpu.memory_space<vmem>>, %arg5: memref<1x32x512xf32, #tpu.memory_space<vmem>>) attributes {dimension_semantics = [#tpu.dimension_semantics<parallel>, #tpu.dimension_semantics<parallel>], iteration_bounds = array<i64: 2, 1>, scalar_prefetch = 0 : i64, scratch_operands = 0 : i64, tpu.core_type = #tpu.core_type<tc>, window_params = [{transform_indices = @transform_0, window_bounds = array<i64: 1, 32, 128>}, {transform_indices = @transform_1, window_bounds = array<i64: 1, 128, 512>}, {transform_indices = @transform_2, window_bounds = array<i64: 1, 1, 512>}, {transform_indices = @transform_3, window_bounds = array<i64: 1, 32, 512>}]} {
    %c0 = arith.constant 0 : index
    %c0_0 = arith.constant 0 : index
    %c0_1 = arith.constant 0 : index
    %0 = vector.load %arg2[%c0, %c0_0, %c0_1] : memref<1x32x128xf32, #tpu.memory_space<vmem>>, vector<1x32x128xf32>
    %1 = vector.shape_cast %0 : vector<1x32x128xf32> to vector<32x128xf32>
    %c0_2 = arith.constant 0 : index
    %c0_3 = arith.constant 0 : index
    %c0_4 = arith.constant 0 : index
    %2 = vector.load %arg3[%c0_2, %c0_3, %c0_4] : memref<1x128x512xf32, #tpu.memory_space<vmem>>, vector<1x128x512xf32>
    %3 = vector.shape_cast %2 : vector<1x128x512xf32> to vector<128x512xf32>
    %cst = arith.constant dense<0.000000e+00> : vector<32x512xf32>
    %4 = tpu.matmul %1, %3, %cst {dimension_numbers = #tpu.dot_dimension_numbers<[1], [0], [0], [1], [0, 0, 1, 1], [], []>} : vector<32x128xf32>, vector<128x512xf32>, vector<32x512xf32> -> vector<32x512xf32>
    %c0_5 = arith.constant 0 : index
    %c0_6 = arith.constant 0 : index
    %c0_7 = arith.constant 0 : index
    %5 = vector.load %arg4[%c0_5, %c0_6, %c0_7] : memref<1x1x512xf32, #tpu.memory_space<vmem>>, vector<1x1x512xf32>
    %6 = vector.shape_cast %5 : vector<1x1x512xf32> to vector<1x512xf32>
    %7 = vector.broadcast %6 : vector<1x512xf32> to vector<32x512xf32>
    %8 = arith.addf %4, %7 : vector<32x512xf32>
    %c0_8 = arith.constant 0 : index
    %c0_9 = arith.constant 0 : index
    %c0_10 = arith.constant 0 : index
    %9 = vector.load %arg5[%c0_8, %c0_9, %c0_10] : memref<1x32x512xf32, #tpu.memory_space<vmem>>, vector<1x32x512xf32>
    %10 = vector.shape_cast %9 : vector<1x32x512xf32> to vector<32x512xf32>
    %11 = vector.shape_cast %8 : vector<32x512xf32> to vector<1x32x512xf32>
    tpu.vector_store %arg5[%c0_8, %c0_9, %c0_10], %11 {strides = array<i32>} : memref<1x32x512xf32, #tpu.memory_space<vmem>>, vector<1x32x512xf32>,
    return
  }
  func.func @transform_0(%arg0: i32, %arg1: i32) -> (i32, i32, i32) {
    %c0_i32 = arith.constant 0 : i32
    %c0_i32_0 = arith.constant 0 : i32
    return %arg0, %arg1, %c0_i32 : i32, i32, i32
  }
  func.func @transform_1(%arg0: i32, %arg1: i32) -> (i32, i32, i32) {
    %c0_i32 = arith.constant 0 : i32
    %c0_i32_0 = arith.constant 0 : i32
    %c0_i32_1 = arith.constant 0 : i32
    return %arg0, %c0_i32, %c0_i32_0 : i32, i32, i32
  }
  func.func @transform_2(%arg0: i32, %arg1: i32) -> (i32, i32, i32) {
    %c0_i32 = arith.constant 0 : i32
    %c0_i32_0 = arith.constant 0 : i32
    %c0_i32_1 = arith.constant 0 : i32
    return %arg0, %c0_i32, %c0_i32_0 : i32, i32, i32
  }
  func.func @transform_3(%arg0: i32, %arg1: i32) -> (i32, i32, i32) {
    %c0_i32 = arith.constant 0 : i32
    %c0_i32_0 = arith.constant 0 : i32
    return %arg0, %arg1, %c0_i32 : i32, i32, i32
  }
}

module attributes {stable_mosaic.version = 11 : i64} {
  func.func @_lstm_chunk_kernel(%arg0: i32, %arg1: memref<2x16x512xf32, #tpu.memory_space<vmem>>, %arg2: memref<2x128x512xf32, #tpu.memory_space<vmem>>, %arg3: memref<2x1xi32, #tpu.memory_space<vmem>>, %arg4: memref<2x16x128xf32, #tpu.memory_space<vmem>>, %arg5: memref<2x2x128xf32, #tpu.memory_space<vmem>>, %arg6: memref<2x2x128xf32, #tpu.memory_space<vmem>>) attributes {dimension_semantics = [#tpu.dimension_semantics<arbitrary>], iteration_bounds = array<i64: 2>, scalar_prefetch = 0 : i64, scratch_operands = 2 : i64, tpu.core_type = #tpu.core_type<tc>, window_params = [{transform_indices = @transform_0, window_bounds = array<i64: 2, 16, 512>}, {pipeline_mode = #tpu.pipeline_mode<synchronous>, transform_indices = @transform_1, window_bounds = array<i64: 2, 128, 512>}, {pipeline_mode = #tpu.pipeline_mode<synchronous>, transform_indices = @transform_2, window_bounds = array<i64: 2, 1>}, {transform_indices = @transform_3, window_bounds = array<i64: 2, 16, 128>}]} {
    %c0_i32 = arith.constant 0 : i32
    %0 = arith.cmpi eq, %arg0, %c0_i32 : i32
    %1 = arith.extui %0 : i1 to i32
    %c0_i32_0 = arith.constant 0 : i32
    %2 = arith.cmpi ne, %1, %c0_i32_0 : i32
    scf.if %2 {
      %cst_105 = arith.constant 0.000000e+00 : f32
      %361 = vector.broadcast %cst_105 : f32 to vector<2x2x128xf32>
      %c0_106 = arith.constant 0 : index
      %c0_107 = arith.constant 0 : index
      %c0_108 = arith.constant 0 : index
      %362 = vector.load %arg5[%c0_106, %c0_107, %c0_108] : memref<2x2x128xf32, #tpu.memory_space<vmem>>, vector<2x2x128xf32>
      tpu.vector_store %arg5[%c0_106, %c0_107, %c0_108], %361 {strides = array<i32>} : memref<2x2x128xf32, #tpu.memory_space<vmem>>, vector<2x2x128xf32>,
      %cst_109 = arith.constant 0.000000e+00 : f32
      %363 = vector.broadcast %cst_109 : f32 to vector<2x2x128xf32>
      %c0_110 = arith.constant 0 : index
      %c0_111 = arith.constant 0 : index
      %c0_112 = arith.constant 0 : index
      %364 = vector.load %arg6[%c0_110, %c0_111, %c0_112] : memref<2x2x128xf32, #tpu.memory_space<vmem>>, vector<2x2x128xf32>
      tpu.vector_store %arg6[%c0_110, %c0_111, %c0_112], %363 {strides = array<i32>} : memref<2x2x128xf32, #tpu.memory_space<vmem>>, vector<2x2x128xf32>,
    } else {
    }
    %c0 = arith.constant 0 : index
    %c0_1 = arith.constant 0 : index
    %c0_2 = arith.constant 0 : index
    %3 = vector.load %arg2[%c0, %c0_1, %c0_2] : memref<2x128x512xf32, #tpu.memory_space<vmem>>, vector<2x128x512xf32>
    %c0_3 = arith.constant 0 : index
    %c0_4 = arith.constant 0 : index
    %4 = vector.load %arg3[%c0_3, %c0_4] : memref<2x1xi32, #tpu.memory_space<vmem>>, vector<2x1xi32>
    %c0_5 = arith.constant 0 : index
    %c0_6 = arith.constant 0 : index
    %c0_7 = arith.constant 0 : index
    %5 = vector.load %arg5[%c0_5, %c0_6, %c0_7] : memref<2x2x128xf32, #tpu.memory_space<vmem>>, vector<2x2x128xf32>
    %c0_8 = arith.constant 0 : index
    %c0_9 = arith.constant 0 : index
    %c0_10 = arith.constant 0 : index
    %6 = vector.load %arg6[%c0_8, %c0_9, %c0_10] : memref<2x2x128xf32, #tpu.memory_space<vmem>>, vector<2x2x128xf32>
    %c0_11 = arith.constant 0 : index
    %c0_12 = arith.constant 0 : index
    %c0_13 = arith.constant 0 : index
    %7 = vector.load %arg1[%c0_11, %c0_12, %c0_13] : memref<2x16x512xf32, #tpu.memory_space<vmem>>, vector<2x2x512xf32>
    "tpu.trace_start"() <{level = 10 : i32, message = "gbd,gdh->gbh"}> : () -> ()
    %cst = arith.constant dense<0.000000e+00> : vector<2x2x512xf32>
    %8 = tpu.matmul %5, %3, %cst {dimension_numbers = #tpu.dot_dimension_numbers<[2], [1], [1], [2], [0, 0, 0, 1, 1, 2], [0], [0]>} : vector<2x2x128xf32>, vector<2x128x512xf32>, vector<2x2x512xf32> -> vector<2x2x512xf32>
    "tpu.trace_stop"() : () -> ()
    %9 = arith.addf %7, %8 : vector<2x2x512xf32>
    %10 = vector.extract_strided_slice %9 {offsets = [0, 0, 0], sizes = [2, 2, 128], strides = [1, 1, 1]} : vector<2x2x512xf32> to vector<2x2x128xf32>
    %11 = arith.negf %10 : vector<2x2x128xf32>
    %12 = math.exp %11 : vector<2x2x128xf32>
    %cst_14 = arith.constant 1.000000e+00 : f32
    %13 = vector.broadcast %cst_14 : f32 to vector<2x2x128xf32>
    %14 = arith.addf %13, %12 : vector<2x2x128xf32>
    %15 = arith.divf %13, %14 : vector<2x2x128xf32>
    %16 = vector.extract_strided_slice %9 {offsets = [0, 0, 128], sizes = [2, 2, 128], strides = [1, 1, 1]} : vector<2x2x512xf32> to vector<2x2x128xf32>
    %17 = arith.negf %16 : vector<2x2x128xf32>
    %18 = math.exp %17 : vector<2x2x128xf32>
    %cst_15 = arith.constant 1.000000e+00 : f32
    %19 = vector.broadcast %cst_15 : f32 to vector<2x2x128xf32>
    %20 = arith.addf %19, %18 : vector<2x2x128xf32>
    %21 = arith.divf %19, %20 : vector<2x2x128xf32>
    %22 = vector.extract_strided_slice %9 {offsets = [0, 0, 256], sizes = [2, 2, 128], strides = [1, 1, 1]} : vector<2x2x512xf32> to vector<2x2x128xf32>
    %23 = math.tanh %22 : vector<2x2x128xf32>
    %24 = vector.extract_strided_slice %9 {offsets = [0, 0, 384], sizes = [2, 2, 128], strides = [1, 1, 1]} : vector<2x2x512xf32> to vector<2x2x128xf32>
    %25 = arith.negf %24 : vector<2x2x128xf32>
    %26 = math.exp %25 : vector<2x2x128xf32>
    %cst_16 = arith.constant 1.000000e+00 : f32
    %27 = vector.broadcast %cst_16 : f32 to vector<2x2x128xf32>
    %28 = arith.addf %27, %26 : vector<2x2x128xf32>
    %29 = arith.divf %27, %28 : vector<2x2x128xf32>
    %30 = arith.mulf %21, %6 : vector<2x2x128xf32>
    %31 = arith.mulf %15, %23 : vector<2x2x128xf32>
    %32 = arith.addf %30, %31 : vector<2x2x128xf32>
    %33 = math.tanh %32 : vector<2x2x128xf32>
    %34 = arith.mulf %29, %33 : vector<2x2x128xf32>
    %c8_i32 = arith.constant 8 : i32
    %35 = arith.muli %arg0, %c8_i32 : i32
    %c0_i32_17 = arith.constant 0 : i32
    %36 = arith.addi %35, %c0_i32_17 : i32
    %37 = vector.broadcast %36 : i32 to vector<2x1xi32>
    %38 = arith.cmpi slt, %37, %4 : vector<2x1xi32>
    %39 = vector.shape_cast %38 : vector<2x1xi1> to vector<1x2x1xi1>
    %40 = vector.shape_cast %39 : vector<1x2x1xi1> to vector<1x2x1xi1>
    %41 = vector.broadcast %40 : vector<1x2x1xi1> to vector<2x2x128xi1>
    %42 = arith.select %41, %32, %6 : vector<2x2x128xi1>, vector<2x2x128xf32>
    %43 = vector.shape_cast %39 : vector<1x2x1xi1> to vector<1x2x1xi1>
    %44 = vector.broadcast %43 : vector<1x2x1xi1> to vector<2x2x128xi1>
    %45 = arith.select %44, %34, %5 : vector<2x2x128xi1>, vector<2x2x128xf32>
    %cst_18 = arith.constant 0.000000e+00 : f32
    %46 = vector.shape_cast %39 : vector<1x2x1xi1> to vector<1x2x1xi1>
    %47 = vector.broadcast %46 : vector<1x2x1xi1> to vector<2x2x128xi1>
    %48 = vector.broadcast %cst_18 : f32 to vector<2x2x128xf32>
    %49 = arith.select %47, %34, %48 : vector<2x2x128xi1>, vector<2x2x128xf32>
    %c0_19 = arith.constant 0 : index
    %c0_20 = arith.constant 0 : index
    %c0_21 = arith.constant 0 : index
    %50 = vector.load %arg4[%c0_19, %c0_20, %c0_21] : memref<2x16x128xf32, #tpu.memory_space<vmem>>, vector<2x2x128xf32>
    tpu.vector_store %arg4[%c0_19, %c0_20, %c0_21], %49 {strides = array<i32>} : memref<2x16x128xf32, #tpu.memory_space<vmem>>, vector<2x2x128xf32>,
    %c0_22 = arith.constant 0 : index
    %c2 = arith.constant 2 : index
    %c0_23 = arith.constant 0 : index
    %51 = vector.load %arg1[%c0_22, %c2, %c0_23] : memref<2x16x512xf32, #tpu.memory_space<vmem>>, vector<2x2x512xf32>
    "tpu.trace_start"() <{level = 10 : i32, message = "gbd,gdh->gbh"}> : () -> ()
    %cst_24 = arith.constant dense<0.000000e+00> : vector<2x2x512xf32>
    %52 = tpu.matmul %45, %3, %cst_24 {dimension_numbers = #tpu.dot_dimension_numbers<[2], [1], [1], [2], [0, 0, 0, 1, 1, 2], [0], [0]>} : vector<2x2x128xf32>, vector<2x128x512xf32>, vector<2x2x512xf32> -> vector<2x2x512xf32>
    "tpu.trace_stop"() : () -> ()
    %53 = arith.addf %51, %52 : vector<2x2x512xf32>
    %54 = vector.extract_strided_slice %53 {offsets = [0, 0, 0], sizes = [2, 2, 128], strides = [1, 1, 1]} : vector<2x2x512xf32> to vector<2x2x128xf32>
    %55 = arith.negf %54 : vector<2x2x128xf32>
    %56 = math.exp %55 : vector<2x2x128xf32>
    %cst_25 = arith.constant 1.000000e+00 : f32
    %57 = vector.broadcast %cst_25 : f32 to vector<2x2x128xf32>
    %58 = arith.addf %57, %56 : vector<2x2x128xf32>
    %59 = arith.divf %57, %58 : vector<2x2x128xf32>
    %60 = vector.extract_strided_slice %53 {offsets = [0, 0, 128], sizes = [2, 2, 128], strides = [1, 1, 1]} : vector<2x2x512xf32> to vector<2x2x128xf32>
    %61 = arith.negf %60 : vector<2x2x128xf32>
    %62 = math.exp %61 : vector<2x2x128xf32>
    %cst_26 = arith.constant 1.000000e+00 : f32
    %63 = vector.broadcast %cst_26 : f32 to vector<2x2x128xf32>
    %64 = arith.addf %63, %62 : vector<2x2x128xf32>
    %65 = arith.divf %63, %64 : vector<2x2x128xf32>
    %66 = vector.extract_strided_slice %53 {offsets = [0, 0, 256], sizes = [2, 2, 128], strides = [1, 1, 1]} : vector<2x2x512xf32> to vector<2x2x128xf32>
    %67 = math.tanh %66 : vector<2x2x128xf32>
    %68 = vector.extract_strided_slice %53 {offsets = [0, 0, 384], sizes = [2, 2, 128], strides = [1, 1, 1]} : vector<2x2x512xf32> to vector<2x2x128xf32>
    %69 = arith.negf %68 : vector<2x2x128xf32>
    %70 = math.exp %69 : vector<2x2x128xf32>
    %cst_27 = arith.constant 1.000000e+00 : f32
    %71 = vector.broadcast %cst_27 : f32 to vector<2x2x128xf32>
    %72 = arith.addf %71, %70 : vector<2x2x128xf32>
    %73 = arith.divf %71, %72 : vector<2x2x128xf32>
    %74 = arith.mulf %65, %42 : vector<2x2x128xf32>
    %75 = arith.mulf %59, %67 : vector<2x2x128xf32>
    %76 = arith.addf %74, %75 : vector<2x2x128xf32>
    %77 = math.tanh %76 : vector<2x2x128xf32>
    %78 = arith.mulf %73, %77 : vector<2x2x128xf32>
    %c8_i32_28 = arith.constant 8 : i32
    %79 = arith.muli %arg0, %c8_i32_28 : i32
    %c1_i32 = arith.constant 1 : i32
    %80 = arith.addi %79, %c1_i32 : i32
    %81 = vector.broadcast %80 : i32 to vector<2x1xi32>
    %82 = arith.cmpi slt, %81, %4 : vector<2x1xi32>
    %83 = vector.shape_cast %82 : vector<2x1xi1> to vector<1x2x1xi1>
    %84 = vector.shape_cast %83 : vector<1x2x1xi1> to vector<1x2x1xi1>
    %85 = vector.broadcast %84 : vector<1x2x1xi1> to vector<2x2x128xi1>
    %86 = arith.select %85, %76, %42 : vector<2x2x128xi1>, vector<2x2x128xf32>
    %87 = vector.shape_cast %83 : vector<1x2x1xi1> to vector<1x2x1xi1>
    %88 = vector.broadcast %87 : vector<1x2x1xi1> to vector<2x2x128xi1>
    %89 = arith.select %88, %78, %45 : vector<2x2x128xi1>, vector<2x2x128xf32>
    %cst_29 = arith.constant 0.000000e+00 : f32
    %90 = vector.shape_cast %83 : vector<1x2x1xi1> to vector<1x2x1xi1>
    %91 = vector.broadcast %90 : vector<1x2x1xi1> to vector<2x2x128xi1>
    %92 = vector.broadcast %cst_29 : f32 to vector<2x2x128xf32>
    %93 = arith.select %91, %78, %92 : vector<2x2x128xi1>, vector<2x2x128xf32>
    %c0_30 = arith.constant 0 : index
    %c2_31 = arith.constant 2 : index
    %c0_32 = arith.constant 0 : index
    %94 = vector.load %arg4[%c0_30, %c2_31, %c0_32] : memref<2x16x128xf32, #tpu.memory_space<vmem>>, vector<2x2x128xf32>
    tpu.vector_store %arg4[%c0_30, %c2_31, %c0_32], %93 {strides = array<i32>} : memref<2x16x128xf32, #tpu.memory_space<vmem>>, vector<2x2x128xf32>,
    %c0_33 = arith.constant 0 : index
    %c4 = arith.constant 4 : index
    %c0_34 = arith.constant 0 : index
    %95 = vector.load %arg1[%c0_33, %c4, %c0_34] : memref<2x16x512xf32, #tpu.memory_space<vmem>>, vector<2x2x512xf32>
    "tpu.trace_start"() <{level = 10 : i32, message = "gbd,gdh->gbh"}> : () -> ()
    %cst_35 = arith.constant dense<0.000000e+00> : vector<2x2x512xf32>
    %96 = tpu.matmul %89, %3, %cst_35 {dimension_numbers = #tpu.dot_dimension_numbers<[2], [1], [1], [2], [0, 0, 0, 1, 1, 2], [0], [0]>} : vector<2x2x128xf32>, vector<2x128x512xf32>, vector<2x2x512xf32> -> vector<2x2x512xf32>
    "tpu.trace_stop"() : () -> ()
    %97 = arith.addf %95, %96 : vector<2x2x512xf32>
    %98 = vector.extract_strided_slice %97 {offsets = [0, 0, 0], sizes = [2, 2, 128], strides = [1, 1, 1]} : vector<2x2x512xf32> to vector<2x2x128xf32>
    %99 = arith.negf %98 : vector<2x2x128xf32>
    %100 = math.exp %99 : vector<2x2x128xf32>
    %cst_36 = arith.constant 1.000000e+00 : f32
    %101 = vector.broadcast %cst_36 : f32 to vector<2x2x128xf32>
    %102 = arith.addf %101, %100 : vector<2x2x128xf32>
    %103 = arith.divf %101, %102 : vector<2x2x128xf32>
    %104 = vector.extract_strided_slice %97 {offsets = [0, 0, 128], sizes = [2, 2, 128], strides = [1, 1, 1]} : vector<2x2x512xf32> to vector<2x2x128xf32>
    %105 = arith.negf %104 : vector<2x2x128xf32>
    %106 = math.exp %105 : vector<2x2x128xf32>
    %cst_37 = arith.constant 1.000000e+00 : f32
    %107 = vector.broadcast %cst_37 : f32 to vector<2x2x128xf32>
    %108 = arith.addf %107, %106 : vector<2x2x128xf32>
    %109 = arith.divf %107, %108 : vector<2x2x128xf32>
    %110 = vector.extract_strided_slice %97 {offsets = [0, 0, 256], sizes = [2, 2, 128], strides = [1, 1, 1]} : vector<2x2x512xf32> to vector<2x2x128xf32>
    %111 = math.tanh %110 : vector<2x2x128xf32>
    %112 = vector.extract_strided_slice %97 {offsets = [0, 0, 384], sizes = [2, 2, 128], strides = [1, 1, 1]} : vector<2x2x512xf32> to vector<2x2x128xf32>
    %113 = arith.negf %112 : vector<2x2x128xf32>
    %114 = math.exp %113 : vector<2x2x128xf32>
    %cst_38 = arith.constant 1.000000e+00 : f32
    %115 = vector.broadcast %cst_38 : f32 to vector<2x2x128xf32>
    %116 = arith.addf %115, %114 : vector<2x2x128xf32>
    %117 = arith.divf %115, %116 : vector<2x2x128xf32>
    %118 = arith.mulf %109, %86 : vector<2x2x128xf32>
    %119 = arith.mulf %103, %111 : vector<2x2x128xf32>
    %120 = arith.addf %118, %119 : vector<2x2x128xf32>
    %121 = math.tanh %120 : vector<2x2x128xf32>
    %122 = arith.mulf %117, %121 : vector<2x2x128xf32>
    %c8_i32_39 = arith.constant 8 : i32
    %123 = arith.muli %arg0, %c8_i32_39 : i32
    %c2_i32 = arith.constant 2 : i32
    %124 = arith.addi %123, %c2_i32 : i32
    %125 = vector.broadcast %124 : i32 to vector<2x1xi32>
    %126 = arith.cmpi slt, %125, %4 : vector<2x1xi32>
    %127 = vector.shape_cast %126 : vector<2x1xi1> to vector<1x2x1xi1>
    %128 = vector.shape_cast %127 : vector<1x2x1xi1> to vector<1x2x1xi1>
    %129 = vector.broadcast %128 : vector<1x2x1xi1> to vector<2x2x128xi1>
    %130 = arith.select %129, %120, %86 : vector<2x2x128xi1>, vector<2x2x128xf32>
    %131 = vector.shape_cast %127 : vector<1x2x1xi1> to vector<1x2x1xi1>
    %132 = vector.broadcast %131 : vector<1x2x1xi1> to vector<2x2x128xi1>
    %133 = arith.select %132, %122, %89 : vector<2x2x128xi1>, vector<2x2x128xf32>
    %cst_40 = arith.constant 0.000000e+00 : f32
    %134 = vector.shape_cast %127 : vector<1x2x1xi1> to vector<1x2x1xi1>
    %135 = vector.broadcast %134 : vector<1x2x1xi1> to vector<2x2x128xi1>
    %136 = vector.broadcast %cst_40 : f32 to vector<2x2x128xf32>
    %137 = arith.select %135, %122, %136 : vector<2x2x128xi1>, vector<2x2x128xf32>
    %c0_41 = arith.constant 0 : index
    %c4_42 = arith.constant 4 : index
    %c0_43 = arith.constant 0 : index
    %138 = vector.load %arg4[%c0_41, %c4_42, %c0_43] : memref<2x16x128xf32, #tpu.memory_space<vmem>>, vector<2x2x128xf32>
    tpu.vector_store %arg4[%c0_41, %c4_42, %c0_43], %137 {strides = array<i32>} : memref<2x16x128xf32, #tpu.memory_space<vmem>>, vector<2x2x128xf32>,
    %c0_44 = arith.constant 0 : index
    %c6 = arith.constant 6 : index
    %c0_45 = arith.constant 0 : index
    %139 = vector.load %arg1[%c0_44, %c6, %c0_45] : memref<2x16x512xf32, #tpu.memory_space<vmem>>, vector<2x2x512xf32>
    "tpu.trace_start"() <{level = 10 : i32, message = "gbd,gdh->gbh"}> : () -> ()
    %cst_46 = arith.constant dense<0.000000e+00> : vector<2x2x512xf32>
    %140 = tpu.matmul %133, %3, %cst_46 {dimension_numbers = #tpu.dot_dimension_numbers<[2], [1], [1], [2], [0, 0, 0, 1, 1, 2], [0], [0]>} : vector<2x2x128xf32>, vector<2x128x512xf32>, vector<2x2x512xf32> -> vector<2x2x512xf32>
    "tpu.trace_stop"() : () -> ()
    %141 = arith.addf %139, %140 : vector<2x2x512xf32>
    %142 = vector.extract_strided_slice %141 {offsets = [0, 0, 0], sizes = [2, 2, 128], strides = [1, 1, 1]} : vector<2x2x512xf32> to vector<2x2x128xf32>
    %143 = arith.negf %142 : vector<2x2x128xf32>
    %144 = math.exp %143 : vector<2x2x128xf32>
    %cst_47 = arith.constant 1.000000e+00 : f32
    %145 = vector.broadcast %cst_47 : f32 to vector<2x2x128xf32>
    %146 = arith.addf %145, %144 : vector<2x2x128xf32>
    %147 = arith.divf %145, %146 : vector<2x2x128xf32>
    %148 = vector.extract_strided_slice %141 {offsets = [0, 0, 128], sizes = [2, 2, 128], strides = [1, 1, 1]} : vector<2x2x512xf32> to vector<2x2x128xf32>
    %149 = arith.negf %148 : vector<2x2x128xf32>
    %150 = math.exp %149 : vector<2x2x128xf32>
    %cst_48 = arith.constant 1.000000e+00 : f32
    %151 = vector.broadcast %cst_48 : f32 to vector<2x2x128xf32>
    %152 = arith.addf %151, %150 : vector<2x2x128xf32>
    %153 = arith.divf %151, %152 : vector<2x2x128xf32>
    %154 = vector.extract_strided_slice %141 {offsets = [0, 0, 256], sizes = [2, 2, 128], strides = [1, 1, 1]} : vector<2x2x512xf32> to vector<2x2x128xf32>
    %155 = math.tanh %154 : vector<2x2x128xf32>
    %156 = vector.extract_strided_slice %141 {offsets = [0, 0, 384], sizes = [2, 2, 128], strides = [1, 1, 1]} : vector<2x2x512xf32> to vector<2x2x128xf32>
    %157 = arith.negf %156 : vector<2x2x128xf32>
    %158 = math.exp %157 : vector<2x2x128xf32>
    %cst_49 = arith.constant 1.000000e+00 : f32
    %159 = vector.broadcast %cst_49 : f32 to vector<2x2x128xf32>
    %160 = arith.addf %159, %158 : vector<2x2x128xf32>
    %161 = arith.divf %159, %160 : vector<2x2x128xf32>
    %162 = arith.mulf %153, %130 : vector<2x2x128xf32>
    %163 = arith.mulf %147, %155 : vector<2x2x128xf32>
    %164 = arith.addf %162, %163 : vector<2x2x128xf32>
    %165 = math.tanh %164 : vector<2x2x128xf32>
    %166 = arith.mulf %161, %165 : vector<2x2x128xf32>
    %c8_i32_50 = arith.constant 8 : i32
    %167 = arith.muli %arg0, %c8_i32_50 : i32
    %c3_i32 = arith.constant 3 : i32
    %168 = arith.addi %167, %c3_i32 : i32
    %169 = vector.broadcast %168 : i32 to vector<2x1xi32>
    %170 = arith.cmpi slt, %169, %4 : vector<2x1xi32>
    %171 = vector.shape_cast %170 : vector<2x1xi1> to vector<1x2x1xi1>
    %172 = vector.shape_cast %171 : vector<1x2x1xi1> to vector<1x2x1xi1>
    %173 = vector.broadcast %172 : vector<1x2x1xi1> to vector<2x2x128xi1>
    %174 = arith.select %173, %164, %130 : vector<2x2x128xi1>, vector<2x2x128xf32>
    %175 = vector.shape_cast %171 : vector<1x2x1xi1> to vector<1x2x1xi1>
    %176 = vector.broadcast %175 : vector<1x2x1xi1> to vector<2x2x128xi1>
    %177 = arith.select %176, %166, %133 : vector<2x2x128xi1>, vector<2x2x128xf32>
    %cst_51 = arith.constant 0.000000e+00 : f32
    %178 = vector.shape_cast %171 : vector<1x2x1xi1> to vector<1x2x1xi1>
    %179 = vector.broadcast %178 : vector<1x2x1xi1> to vector<2x2x128xi1>
    %180 = vector.broadcast %cst_51 : f32 to vector<2x2x128xf32>
    %181 = arith.select %179, %166, %180 : vector<2x2x128xi1>, vector<2x2x128xf32>
    %c0_52 = arith.constant 0 : index
    %c6_53 = arith.constant 6 : index
    %c0_54 = arith.constant 0 : index
    %182 = vector.load %arg4[%c0_52, %c6_53, %c0_54] : memref<2x16x128xf32, #tpu.memory_space<vmem>>, vector<2x2x128xf32>
    tpu.vector_store %arg4[%c0_52, %c6_53, %c0_54], %181 {strides = array<i32>} : memref<2x16x128xf32, #tpu.memory_space<vmem>>, vector<2x2x128xf32>,
    %c0_55 = arith.constant 0 : index
    %c8 = arith.constant 8 : index
    %c0_56 = arith.constant 0 : index
    %183 = vector.load %arg1[%c0_55, %c8, %c0_56] : memref<2x16x512xf32, #tpu.memory_space<vmem>>, vector<2x2x512xf32>
    "tpu.trace_start"() <{level = 10 : i32, message = "gbd,gdh->gbh"}> : () -> ()
    %cst_57 = arith.constant dense<0.000000e+00> : vector<2x2x512xf32>
    %184 = tpu.matmul %177, %3, %cst_57 {dimension_numbers = #tpu.dot_dimension_numbers<[2], [1], [1], [2], [0, 0, 0, 1, 1, 2], [0], [0]>} : vector<2x2x128xf32>, vector<2x128x512xf32>, vector<2x2x512xf32> -> vector<2x2x512xf32>
    "tpu.trace_stop"() : () -> ()
    %185 = arith.addf %183, %184 : vector<2x2x512xf32>
    %186 = vector.extract_strided_slice %185 {offsets = [0, 0, 0], sizes = [2, 2, 128], strides = [1, 1, 1]} : vector<2x2x512xf32> to vector<2x2x128xf32>
    %187 = arith.negf %186 : vector<2x2x128xf32>
    %188 = math.exp %187 : vector<2x2x128xf32>
    %cst_58 = arith.constant 1.000000e+00 : f32
    %189 = vector.broadcast %cst_58 : f32 to vector<2x2x128xf32>
    %190 = arith.addf %189, %188 : vector<2x2x128xf32>
    %191 = arith.divf %189, %190 : vector<2x2x128xf32>
    %192 = vector.extract_strided_slice %185 {offsets = [0, 0, 128], sizes = [2, 2, 128], strides = [1, 1, 1]} : vector<2x2x512xf32> to vector<2x2x128xf32>
    %193 = arith.negf %192 : vector<2x2x128xf32>
    %194 = math.exp %193 : vector<2x2x128xf32>
    %cst_59 = arith.constant 1.000000e+00 : f32
    %195 = vector.broadcast %cst_59 : f32 to vector<2x2x128xf32>
    %196 = arith.addf %195, %194 : vector<2x2x128xf32>
    %197 = arith.divf %195, %196 : vector<2x2x128xf32>
    %198 = vector.extract_strided_slice %185 {offsets = [0, 0, 256], sizes = [2, 2, 128], strides = [1, 1, 1]} : vector<2x2x512xf32> to vector<2x2x128xf32>
    %199 = math.tanh %198 : vector<2x2x128xf32>
    %200 = vector.extract_strided_slice %185 {offsets = [0, 0, 384], sizes = [2, 2, 128], strides = [1, 1, 1]} : vector<2x2x512xf32> to vector<2x2x128xf32>
    %201 = arith.negf %200 : vector<2x2x128xf32>
    %202 = math.exp %201 : vector<2x2x128xf32>
    %cst_60 = arith.constant 1.000000e+00 : f32
    %203 = vector.broadcast %cst_60 : f32 to vector<2x2x128xf32>
    %204 = arith.addf %203, %202 : vector<2x2x128xf32>
    %205 = arith.divf %203, %204 : vector<2x2x128xf32>
    %206 = arith.mulf %197, %174 : vector<2x2x128xf32>
    %207 = arith.mulf %191, %199 : vector<2x2x128xf32>
    %208 = arith.addf %206, %207 : vector<2x2x128xf32>
    %209 = math.tanh %208 : vector<2x2x128xf32>
    %210 = arith.mulf %205, %209 : vector<2x2x128xf32>
    %c8_i32_61 = arith.constant 8 : i32
    %211 = arith.muli %arg0, %c8_i32_61 : i32
    %c4_i32 = arith.constant 4 : i32
    %212 = arith.addi %211, %c4_i32 : i32
    %213 = vector.broadcast %212 : i32 to vector<2x1xi32>
    %214 = arith.cmpi slt, %213, %4 : vector<2x1xi32>
    %215 = vector.shape_cast %214 : vector<2x1xi1> to vector<1x2x1xi1>
    %216 = vector.shape_cast %215 : vector<1x2x1xi1> to vector<1x2x1xi1>
    %217 = vector.broadcast %216 : vector<1x2x1xi1> to vector<2x2x128xi1>
    %218 = arith.select %217, %208, %174 : vector<2x2x128xi1>, vector<2x2x128xf32>
    %219 = vector.shape_cast %215 : vector<1x2x1xi1> to vector<1x2x1xi1>
    %220 = vector.broadcast %219 : vector<1x2x1xi1> to vector<2x2x128xi1>
    %221 = arith.select %220, %210, %177 : vector<2x2x128xi1>, vector<2x2x128xf32>
    %cst_62 = arith.constant 0.000000e+00 : f32
    %222 = vector.shape_cast %215 : vector<1x2x1xi1> to vector<1x2x1xi1>
    %223 = vector.broadcast %222 : vector<1x2x1xi1> to vector<2x2x128xi1>
    %224 = vector.broadcast %cst_62 : f32 to vector<2x2x128xf32>
    %225 = arith.select %223, %210, %224 : vector<2x2x128xi1>, vector<2x2x128xf32>
    %c0_63 = arith.constant 0 : index
    %c8_64 = arith.constant 8 : index
    %c0_65 = arith.constant 0 : index
    %226 = vector.load %arg4[%c0_63, %c8_64, %c0_65] : memref<2x16x128xf32, #tpu.memory_space<vmem>>, vector<2x2x128xf32>
    tpu.vector_store %arg4[%c0_63, %c8_64, %c0_65], %225 {strides = array<i32>} : memref<2x16x128xf32, #tpu.memory_space<vmem>>, vector<2x2x128xf32>,
    %c0_66 = arith.constant 0 : index
    %c10 = arith.constant 10 : index
    %c0_67 = arith.constant 0 : index
    %227 = vector.load %arg1[%c0_66, %c10, %c0_67] : memref<2x16x512xf32, #tpu.memory_space<vmem>>, vector<2x2x512xf32>
    "tpu.trace_start"() <{level = 10 : i32, message = "gbd,gdh->gbh"}> : () -> ()
    %cst_68 = arith.constant dense<0.000000e+00> : vector<2x2x512xf32>
    %228 = tpu.matmul %221, %3, %cst_68 {dimension_numbers = #tpu.dot_dimension_numbers<[2], [1], [1], [2], [0, 0, 0, 1, 1, 2], [0], [0]>} : vector<2x2x128xf32>, vector<2x128x512xf32>, vector<2x2x512xf32> -> vector<2x2x512xf32>
    "tpu.trace_stop"() : () -> ()
    %229 = arith.addf %227, %228 : vector<2x2x512xf32>
    %230 = vector.extract_strided_slice %229 {offsets = [0, 0, 0], sizes = [2, 2, 128], strides = [1, 1, 1]} : vector<2x2x512xf32> to vector<2x2x128xf32>
    %231 = arith.negf %230 : vector<2x2x128xf32>
    %232 = math.exp %231 : vector<2x2x128xf32>
    %cst_69 = arith.constant 1.000000e+00 : f32
    %233 = vector.broadcast %cst_69 : f32 to vector<2x2x128xf32>
    %234 = arith.addf %233, %232 : vector<2x2x128xf32>
    %235 = arith.divf %233, %234 : vector<2x2x128xf32>
    %236 = vector.extract_strided_slice %229 {offsets = [0, 0, 128], sizes = [2, 2, 128], strides = [1, 1, 1]} : vector<2x2x512xf32> to vector<2x2x128xf32>
    %237 = arith.negf %236 : vector<2x2x128xf32>
    %238 = math.exp %237 : vector<2x2x128xf32>
    %cst_70 = arith.constant 1.000000e+00 : f32
    %239 = vector.broadcast %cst_70 : f32 to vector<2x2x128xf32>
    %240 = arith.addf %239, %238 : vector<2x2x128xf32>
    %241 = arith.divf %239, %240 : vector<2x2x128xf32>
    %242 = vector.extract_strided_slice %229 {offsets = [0, 0, 256], sizes = [2, 2, 128], strides = [1, 1, 1]} : vector<2x2x512xf32> to vector<2x2x128xf32>
    %243 = math.tanh %242 : vector<2x2x128xf32>
    %244 = vector.extract_strided_slice %229 {offsets = [0, 0, 384], sizes = [2, 2, 128], strides = [1, 1, 1]} : vector<2x2x512xf32> to vector<2x2x128xf32>
    %245 = arith.negf %244 : vector<2x2x128xf32>
    %246 = math.exp %245 : vector<2x2x128xf32>
    %cst_71 = arith.constant 1.000000e+00 : f32
    %247 = vector.broadcast %cst_71 : f32 to vector<2x2x128xf32>
    %248 = arith.addf %247, %246 : vector<2x2x128xf32>
    %249 = arith.divf %247, %248 : vector<2x2x128xf32>
    %250 = arith.mulf %241, %218 : vector<2x2x128xf32>
    %251 = arith.mulf %235, %243 : vector<2x2x128xf32>
    %252 = arith.addf %250, %251 : vector<2x2x128xf32>
    %253 = math.tanh %252 : vector<2x2x128xf32>
    %254 = arith.mulf %249, %253 : vector<2x2x128xf32>
    %c8_i32_72 = arith.constant 8 : i32
    %255 = arith.muli %arg0, %c8_i32_72 : i32
    %c5_i32 = arith.constant 5 : i32
    %256 = arith.addi %255, %c5_i32 : i32
    %257 = vector.broadcast %256 : i32 to vector<2x1xi32>
    %258 = arith.cmpi slt, %257, %4 : vector<2x1xi32>
    %259 = vector.shape_cast %258 : vector<2x1xi1> to vector<1x2x1xi1>
    %260 = vector.shape_cast %259 : vector<1x2x1xi1> to vector<1x2x1xi1>
    %261 = vector.broadcast %260 : vector<1x2x1xi1> to vector<2x2x128xi1>
    %262 = arith.select %261, %252, %218 : vector<2x2x128xi1>, vector<2x2x128xf32>
    %263 = vector.shape_cast %259 : vector<1x2x1xi1> to vector<1x2x1xi1>
    %264 = vector.broadcast %263 : vector<1x2x1xi1> to vector<2x2x128xi1>
    %265 = arith.select %264, %254, %221 : vector<2x2x128xi1>, vector<2x2x128xf32>
    %cst_73 = arith.constant 0.000000e+00 : f32
    %266 = vector.shape_cast %259 : vector<1x2x1xi1> to vector<1x2x1xi1>
    %267 = vector.broadcast %266 : vector<1x2x1xi1> to vector<2x2x128xi1>
    %268 = vector.broadcast %cst_73 : f32 to vector<2x2x128xf32>
    %269 = arith.select %267, %254, %268 : vector<2x2x128xi1>, vector<2x2x128xf32>
    %c0_74 = arith.constant 0 : index
    %c10_75 = arith.constant 10 : index
    %c0_76 = arith.constant 0 : index
    %270 = vector.load %arg4[%c0_74, %c10_75, %c0_76] : memref<2x16x128xf32, #tpu.memory_space<vmem>>, vector<2x2x128xf32>
    tpu.vector_store %arg4[%c0_74, %c10_75, %c0_76], %269 {strides = array<i32>} : memref<2x16x128xf32, #tpu.memory_space<vmem>>, vector<2x2x128xf32>,
    %c0_77 = arith.constant 0 : index
    %c12 = arith.constant 12 : index
    %c0_78 = arith.constant 0 : index
    %271 = vector.load %arg1[%c0_77, %c12, %c0_78] : memref<2x16x512xf32, #tpu.memory_space<vmem>>, vector<2x2x512xf32>
    "tpu.trace_start"() <{level = 10 : i32, message = "gbd,gdh->gbh"}> : () -> ()
    %cst_79 = arith.constant dense<0.000000e+00> : vector<2x2x512xf32>
    %272 = tpu.matmul %265, %3, %cst_79 {dimension_numbers = #tpu.dot_dimension_numbers<[2], [1], [1], [2], [0, 0, 0, 1, 1, 2], [0], [0]>} : vector<2x2x128xf32>, vector<2x128x512xf32>, vector<2x2x512xf32> -> vector<2x2x512xf32>
    "tpu.trace_stop"() : () -> ()
    %273 = arith.addf %271, %272 : vector<2x2x512xf32>
    %274 = vector.extract_strided_slice %273 {offsets = [0, 0, 0], sizes = [2, 2, 128], strides = [1, 1, 1]} : vector<2x2x512xf32> to vector<2x2x128xf32>
    %275 = arith.negf %274 : vector<2x2x128xf32>
    %276 = math.exp %275 : vector<2x2x128xf32>
    %cst_80 = arith.constant 1.000000e+00 : f32
    %277 = vector.broadcast %cst_80 : f32 to vector<2x2x128xf32>
    %278 = arith.addf %277, %276 : vector<2x2x128xf32>
    %279 = arith.divf %277, %278 : vector<2x2x128xf32>
    %280 = vector.extract_strided_slice %273 {offsets = [0, 0, 128], sizes = [2, 2, 128], strides = [1, 1, 1]} : vector<2x2x512xf32> to vector<2x2x128xf32>
    %281 = arith.negf %280 : vector<2x2x128xf32>
    %282 = math.exp %281 : vector<2x2x128xf32>
    %cst_81 = arith.constant 1.000000e+00 : f32
    %283 = vector.broadcast %cst_81 : f32 to vector<2x2x128xf32>
    %284 = arith.addf %283, %282 : vector<2x2x128xf32>
    %285 = arith.divf %283, %284 : vector<2x2x128xf32>
    %286 = vector.extract_strided_slice %273 {offsets = [0, 0, 256], sizes = [2, 2, 128], strides = [1, 1, 1]} : vector<2x2x512xf32> to vector<2x2x128xf32>
    %287 = math.tanh %286 : vector<2x2x128xf32>
    %288 = vector.extract_strided_slice %273 {offsets = [0, 0, 384], sizes = [2, 2, 128], strides = [1, 1, 1]} : vector<2x2x512xf32> to vector<2x2x128xf32>
    %289 = arith.negf %288 : vector<2x2x128xf32>
    %290 = math.exp %289 : vector<2x2x128xf32>
    %cst_82 = arith.constant 1.000000e+00 : f32
    %291 = vector.broadcast %cst_82 : f32 to vector<2x2x128xf32>
    %292 = arith.addf %291, %290 : vector<2x2x128xf32>
    %293 = arith.divf %291, %292 : vector<2x2x128xf32>
    %294 = arith.mulf %285, %262 : vector<2x2x128xf32>
    %295 = arith.mulf %279, %287 : vector<2x2x128xf32>
    %296 = arith.addf %294, %295 : vector<2x2x128xf32>
    %297 = math.tanh %296 : vector<2x2x128xf32>
    %298 = arith.mulf %293, %297 : vector<2x2x128xf32>
    %c8_i32_83 = arith.constant 8 : i32
    %299 = arith.muli %arg0, %c8_i32_83 : i32
    %c6_i32 = arith.constant 6 : i32
    %300 = arith.addi %299, %c6_i32 : i32
    %301 = vector.broadcast %300 : i32 to vector<2x1xi32>
    %302 = arith.cmpi slt, %301, %4 : vector<2x1xi32>
    %303 = vector.shape_cast %302 : vector<2x1xi1> to vector<1x2x1xi1>
    %304 = vector.shape_cast %303 : vector<1x2x1xi1> to vector<1x2x1xi1>
    %305 = vector.broadcast %304 : vector<1x2x1xi1> to vector<2x2x128xi1>
    %306 = arith.select %305, %296, %262 : vector<2x2x128xi1>, vector<2x2x128xf32>
    %307 = vector.shape_cast %303 : vector<1x2x1xi1> to vector<1x2x1xi1>
    %308 = vector.broadcast %307 : vector<1x2x1xi1> to vector<2x2x128xi1>
    %309 = arith.select %308, %298, %265 : vector<2x2x128xi1>, vector<2x2x128xf32>
    %cst_84 = arith.constant 0.000000e+00 : f32
    %310 = vector.shape_cast %303 : vector<1x2x1xi1> to vector<1x2x1xi1>
    %311 = vector.broadcast %310 : vector<1x2x1xi1> to vector<2x2x128xi1>
    %312 = vector.broadcast %cst_84 : f32 to vector<2x2x128xf32>
    %313 = arith.select %311, %298, %312 : vector<2x2x128xi1>, vector<2x2x128xf32>
    %c0_85 = arith.constant 0 : index
    %c12_86 = arith.constant 12 : index
    %c0_87 = arith.constant 0 : index
    %314 = vector.load %arg4[%c0_85, %c12_86, %c0_87] : memref<2x16x128xf32, #tpu.memory_space<vmem>>, vector<2x2x128xf32>
    tpu.vector_store %arg4[%c0_85, %c12_86, %c0_87], %313 {strides = array<i32>} : memref<2x16x128xf32, #tpu.memory_space<vmem>>, vector<2x2x128xf32>,
    %c0_88 = arith.constant 0 : index
    %c14 = arith.constant 14 : index
    %c0_89 = arith.constant 0 : index
    %315 = vector.load %arg1[%c0_88, %c14, %c0_89] : memref<2x16x512xf32, #tpu.memory_space<vmem>>, vector<2x2x512xf32>
    "tpu.trace_start"() <{level = 10 : i32, message = "gbd,gdh->gbh"}> : () -> ()
    %cst_90 = arith.constant dense<0.000000e+00> : vector<2x2x512xf32>
    %316 = tpu.matmul %309, %3, %cst_90 {dimension_numbers = #tpu.dot_dimension_numbers<[2], [1], [1], [2], [0, 0, 0, 1, 1, 2], [0], [0]>} : vector<2x2x128xf32>, vector<2x128x512xf32>, vector<2x2x512xf32> -> vector<2x2x512xf32>
    "tpu.trace_stop"() : () -> ()
    %317 = arith.addf %315, %316 : vector<2x2x512xf32>
    %318 = vector.extract_strided_slice %317 {offsets = [0, 0, 0], sizes = [2, 2, 128], strides = [1, 1, 1]} : vector<2x2x512xf32> to vector<2x2x128xf32>
    %319 = arith.negf %318 : vector<2x2x128xf32>
    %320 = math.exp %319 : vector<2x2x128xf32>
    %cst_91 = arith.constant 1.000000e+00 : f32
    %321 = vector.broadcast %cst_91 : f32 to vector<2x2x128xf32>
    %322 = arith.addf %321, %320 : vector<2x2x128xf32>
    %323 = arith.divf %321, %322 : vector<2x2x128xf32>
    %324 = vector.extract_strided_slice %317 {offsets = [0, 0, 128], sizes = [2, 2, 128], strides = [1, 1, 1]} : vector<2x2x512xf32> to vector<2x2x128xf32>
    %325 = arith.negf %324 : vector<2x2x128xf32>
    %326 = math.exp %325 : vector<2x2x128xf32>
    %cst_92 = arith.constant 1.000000e+00 : f32
    %327 = vector.broadcast %cst_92 : f32 to vector<2x2x128xf32>
    %328 = arith.addf %327, %326 : vector<2x2x128xf32>
    %329 = arith.divf %327, %328 : vector<2x2x128xf32>
    %330 = vector.extract_strided_slice %317 {offsets = [0, 0, 256], sizes = [2, 2, 128], strides = [1, 1, 1]} : vector<2x2x512xf32> to vector<2x2x128xf32>
    %331 = math.tanh %330 : vector<2x2x128xf32>
    %332 = vector.extract_strided_slice %317 {offsets = [0, 0, 384], sizes = [2, 2, 128], strides = [1, 1, 1]} : vector<2x2x512xf32> to vector<2x2x128xf32>
    %333 = arith.negf %332 : vector<2x2x128xf32>
    %334 = math.exp %333 : vector<2x2x128xf32>
    %cst_93 = arith.constant 1.000000e+00 : f32
    %335 = vector.broadcast %cst_93 : f32 to vector<2x2x128xf32>
    %336 = arith.addf %335, %334 : vector<2x2x128xf32>
    %337 = arith.divf %335, %336 : vector<2x2x128xf32>
    %338 = arith.mulf %329, %306 : vector<2x2x128xf32>
    %339 = arith.mulf %323, %331 : vector<2x2x128xf32>
    %340 = arith.addf %338, %339 : vector<2x2x128xf32>
    %341 = math.tanh %340 : vector<2x2x128xf32>
    %342 = arith.mulf %337, %341 : vector<2x2x128xf32>
    %c8_i32_94 = arith.constant 8 : i32
    %343 = arith.muli %arg0, %c8_i32_94 : i32
    %c7_i32 = arith.constant 7 : i32
    %344 = arith.addi %343, %c7_i32 : i32
    %345 = vector.broadcast %344 : i32 to vector<2x1xi32>
    %346 = arith.cmpi slt, %345, %4 : vector<2x1xi32>
    %347 = vector.shape_cast %346 : vector<2x1xi1> to vector<1x2x1xi1>
    %348 = vector.shape_cast %347 : vector<1x2x1xi1> to vector<1x2x1xi1>
    %349 = vector.broadcast %348 : vector<1x2x1xi1> to vector<2x2x128xi1>
    %350 = arith.select %349, %340, %306 : vector<2x2x128xi1>, vector<2x2x128xf32>
    %351 = vector.shape_cast %347 : vector<1x2x1xi1> to vector<1x2x1xi1>
    %352 = vector.broadcast %351 : vector<1x2x1xi1> to vector<2x2x128xi1>
    %353 = arith.select %352, %342, %309 : vector<2x2x128xi1>, vector<2x2x128xf32>
    %cst_95 = arith.constant 0.000000e+00 : f32
    %354 = vector.shape_cast %347 : vector<1x2x1xi1> to vector<1x2x1xi1>
    %355 = vector.broadcast %354 : vector<1x2x1xi1> to vector<2x2x128xi1>
    %356 = vector.broadcast %cst_95 : f32 to vector<2x2x128xf32>
    %357 = arith.select %355, %342, %356 : vector<2x2x128xi1>, vector<2x2x128xf32>
    %c0_96 = arith.constant 0 : index
    %c14_97 = arith.constant 14 : index
    %c0_98 = arith.constant 0 : index
    %358 = vector.load %arg4[%c0_96, %c14_97, %c0_98] : memref<2x16x128xf32, #tpu.memory_space<vmem>>, vector<2x2x128xf32>
    tpu.vector_store %arg4[%c0_96, %c14_97, %c0_98], %357 {strides = array<i32>} : memref<2x16x128xf32, #tpu.memory_space<vmem>>, vector<2x2x128xf32>,
    %c0_99 = arith.constant 0 : index
    %c0_100 = arith.constant 0 : index
    %c0_101 = arith.constant 0 : index
    %359 = vector.load %arg5[%c0_99, %c0_100, %c0_101] : memref<2x2x128xf32, #tpu.memory_space<vmem>>, vector<2x2x128xf32>
    tpu.vector_store %arg5[%c0_99, %c0_100, %c0_101], %353 {strides = array<i32>} : memref<2x2x128xf32, #tpu.memory_space<vmem>>, vector<2x2x128xf32>,
    %c0_102 = arith.constant 0 : index
    %c0_103 = arith.constant 0 : index
    %c0_104 = arith.constant 0 : index
    %360 = vector.load %arg6[%c0_102, %c0_103, %c0_104] : memref<2x2x128xf32, #tpu.memory_space<vmem>>, vector<2x2x128xf32>
    tpu.vector_store %arg6[%c0_102, %c0_103, %c0_104], %350 {strides = array<i32>} : memref<2x2x128xf32, #tpu.memory_space<vmem>>, vector<2x2x128xf32>,
    return
  }
  func.func @transform_0(%arg0: i32) -> (i32, i32, i32) {
    %c0_i32 = arith.constant 0 : i32
    %c0_i32_0 = arith.constant 0 : i32
    %c0_i32_1 = arith.constant 0 : i32
    return %c0_i32, %arg0, %c0_i32_0 : i32, i32, i32
  }
  func.func @transform_1(%arg0: i32) -> (i32, i32, i32) {
    %c0_i32 = arith.constant 0 : i32
    %c0_i32_0 = arith.constant 0 : i32
    %c0_i32_1 = arith.constant 0 : i32
    %c0_i32_2 = arith.constant 0 : i32
    return %c0_i32, %c0_i32_0, %c0_i32_1 : i32, i32, i32
  }
  func.func @transform_2(%arg0: i32) -> (i32, i32) {
    %c0_i32 = arith.constant 0 : i32
    %c0_i32_0 = arith.constant 0 : i32
    %c0_i32_1 = arith.constant 0 : i32
    return %c0_i32, %c0_i32_0 : i32, i32
  }
  func.func @transform_3(%arg0: i32) -> (i32, i32, i32) {
    %c0_i32 = arith.constant 0 : i32
    %c0_i32_0 = arith.constant 0 : i32
    %c0_i32_1 = arith.constant 0 : i32
    return %c0_i32, %arg0, %c0_i32_0 : i32, i32, i32
  }
}

</mosaic_0001>

<bundles_post_ra>
// kernel: decoar_forward.10
= control target key start
LH: loop header
LB: loop body
LE: loop exit
PB: predicated region body
PF: predicated region fallthrough
CT: control target
= control target key end

     0   :  { %s801_s12 = smov 0   ;;  %s803_s13 = smov 0   ;;  %s938_s0 = inlined_call_operand.vmem [shape: f32[2,32,128], index: 0, kind: input, shape index: {}]   ;;  %s939_s1 = inlined_call_operand.vmem [shape: f32[2,128,512], index: 1, kind: input, shape index: {}]   ;;  %s940_s2 = inlined_call_operand.vmem [shape: f32[2,1,512], index: 2, kind: input, shape index: {}]   ;;  %s941_s3 = inlined_call_operand.vmem [shape: f32[2,32,512], index: 3, kind: output, shape index: {}]  }
   0x1   :  { %s805_s14 = smov 0  }
   0x2 LB: > { %s25_s15 = sadd.s32 1, %s774_s13  ;;  %p654_p0 = scmp.ge.s32.totalorder %s778_s14, 1  ;;  %s778_s14 = sphi %s805_s14, %s13_s14   ;;  %s774_s13 = sphi %s803_s13, %s943_s13   ;;  %s770_s12 = sphi %s801_s12, %s942_s12  }
   0x3   : > { %p27_p1 = scmp.ge.s32.totalorder %s25_s15, 2  ;;  %p177_p2 = scmp.lt.s32.totalorder %s778_s14, 3 }
   0x5   : > { %s945_s15 = smov (%p27_p1, %s25_s15), 0  ;;  %p178_p3 = pnand %p654_p0, %p177_p2 }
   0x6   : > { %p220_p4 = scmp.lt.s32.totalorder (!%p178_p3), %s770_s12, 1  ;;  %v780_v0 = vmov (!%p178_p3), 0.0  }
   0x7   : > { %181 = sbr.rel (%p178_p3) target bundleno = 282 (0x11a), region = 32  ;;  %403 = vmatprep.mubr.f32.mxu0 (!%p178_p3), %v780_v0  ;;  %492 = vmatprep.mubr.f32.mxu1 (!%p178_p3), %v780_v0 }
   0xe   : > { %s947_s12 = smov (!%p220_p4, %s770_s12), 1 }
   0xf   : > { %s665_s16 = sshll.u32 %s947_s12, 9  ;;  %s664_s20 = sshll.u32 %s947_s12, 5 }
  0x10   : > { %s827_s19 = scalar_lea.vmem %s939_s1, %s665_s16  ;;  %s227_s23 = scalar_lea.vmem %s938_s0, %s664_s20 }
  0x11   : > { %v254_v1 = vld [vmem:[%s827_s19 + $0x8] sm:$0xff]  ;;  %v256_v3 = vld [vmem:[%s827_s19 + $0x18] sm:$0xff]  ;;  %v253_v6 = vld [vmem:[%s827_s19] sm:$0xff]  ;;  %s659_s24 = sshll.u32 %s947_s12, 2  ;;  %s666_s28 = sshll.u32 %s947_s12, 7 }
  0x12   : > { %v258_v2 = vld [vmem:[%s827_s19 + $0x28] sm:$0xff]  ;;  %v260_v5 = vld [vmem:[%s827_s19 + $0x38] sm:$0xff]  ;;  %v257_v7 = vld [vmem:[%s827_s19 + $0x20] sm:$0xff]  ;;  %s237_s27 = scalar_lea.vmem %s940_s2, %s659_s24  ;;  %s911_s4 = scalar_lea.vmem %s941_s3, %s666_s28 }
  0x13   : > { %v667_v4 = vpack.c.bf16 %v258_v2, %v254_v1  ;;  %v699_v8 = vpack.c.bf16 %v260_v5, %v256_v3  ;;  %v669_v9 = vpack.c.bf16 %v257_v7, %v253_v6  ;;  %v255_v10 = vld [vmem:[%s827_s19 + $0x10] sm:$0xff]  ;;  %v262_v12 = vld [vmem:[%s827_s19 + $0x48] sm:$0xff]  ;;  %v264_v15 = vld [vmem:[%s827_s19 + $0x58] sm:$0xff] }
  0x14   : > { %v259_v11 = vld [vmem:[%s827_s19 + $0x30] sm:$0xff]  ;;  %v266_v14 = vld [vmem:[%s827_s19 + $0x68] sm:$0xff]  ;;  %v268_v16 = vld [vmem:[%s827_s19 + $0x78] sm:$0xff] }
  0x15   : > { %668 = vmatprep.subr.bf16.mxu0 %v667_v4  ;;  %v701_v13 = vpack.c.bf16 %v259_v11, %v255_v10  ;;  %700 = vmatprep.subr.bf16.mxu1 %v699_v8  ;;  %v671_v17 = vpack.c.bf16 %v266_v14, %v262_v12  ;;  %v703_v18 = vpack.c.bf16 %v268_v16, %v264_v15  ;;  %v261_v19 = vld [vmem:[%s827_s19 + $0x40] sm:$0xff]  ;;  %v263_v21 = vld [vmem:[%s827_s19 + $0x50] sm:$0xff]  ;;  %v270_v24 = vld [vmem:[%s827_s19 + $0x88] sm:$0xff] }
  0x16   : > { %670 = vmatpush1.bf16.msra.mxu0 %v669_v9  ;;  %v265_v20 = vld [vmem:[%s827_s19 + $0x60] sm:$0xff]  ;;  %v267_v23 = vld [vmem:[%s827_s19 + $0x70] sm:$0xff]  ;;  %v274_v25 = vld [vmem:[%s827_s19 + $0xa8] sm:$0xff] }
  0x17   : > { %702 = vmatpush1.bf16.msra.mxu1 %v701_v13  ;;  %v673_v22 = vpack.c.bf16 %v265_v20, %v261_v19  ;;  %672 = vmatprep.subr.bf16.mxu0 %v671_v17  ;;  %v705_v26 = vpack.c.bf16 %v267_v23, %v263_v21  ;;  %v675_v27 = vpack.c.bf16 %v274_v25, %v270_v24  ;;  %v272_v28 = vld [vmem:[%s827_s19 + $0x98] sm:$0xff]  ;;  %v269_v30 = vld [vmem:[%s827_s19 + $0x80] sm:$0xff]  ;;  %v271_v33 = vld [vmem:[%s827_s19 + $0x90] sm:$0xff] }
  0x18   : > { %704 = vmatprep.subr.bf16.mxu1 %v703_v18  ;;  %v276_v29 = vld [vmem:[%s827_s19 + $0xb8] sm:$0xff]  ;;  %v273_v32 = vld [vmem:[%s827_s19 + $0xa0] sm:$0xff]  ;;  %v275_v34 = vld [vmem:[%s827_s19 + $0xb0] sm:$0xff] }
  0x19   : > { %v707_v31 = vpack.c.bf16 %v276_v29, %v272_v28  ;;  %v677_v35 = vpack.c.bf16 %v273_v32, %v269_v30  ;;  %v278_v36 = vld [vmem:[%s827_s19 + $0xc8] sm:$0xff]  ;;  %v280_v38 = vld [vmem:[%s827_s19 + $0xd8] sm:$0xff]  ;;  %v709_v39 = vpack.c.bf16 %v275_v34, %v271_v33  ;;  %v277_v42 = vld [vmem:[%s827_s19 + $0xc0] sm:$0xff] }
  0x1a   : > { %674 = vmatpush1.bf16.msra.mxu0 %v673_v22  ;;  %v282_v37 = vld [vmem:[%s827_s19 + $0xe8] sm:$0xff]  ;;  %v284_v41 = vld [vmem:[%s827_s19 + $0xf8] sm:$0xff]  ;;  %v281_v43 = vld [vmem:[%s827_s19 + $0xe0] sm:$0xff] }
  0x1b   : > { %706 = vmatpush1.bf16.msra.mxu1 %v705_v26  ;;  %676 = vmatprep.subr.bf16.mxu0 %v675_v27  ;;  %v679_v40 = vpack.c.bf16 %v282_v37, %v278_v36  ;;  %v711_v44 = vpack.c.bf16 %v284_v41, %v280_v38  ;;  %v279_v45 = vld [vmem:[%s827_s19 + $0xd0] sm:$0xff]  ;;  %v286_v47 = vld [vmem:[%s827_s19 + $0x108] sm:$0xff]  ;;  %v288_v49 = vld [vmem:[%s827_s19 + $0x118] sm:$0xff]  ;;  %v681_v51 = vpack.c.bf16 %v281_v43, %v277_v42  ;;  %v319_v38 = vlaneseq }
  0x1c   : > { %708 = vmatprep.subr.bf16.mxu1 %v707_v31  ;;  %v283_v46 = vld [vmem:[%s827_s19 + $0xf0] sm:$0xff]  ;;  %v290_v48 = vld [vmem:[%s827_s19 + $0x128] sm:$0xff]  ;;  %v292_v50 = vld [vmem:[%s827_s19 + $0x138] sm:$0xff] }
  0x1d   : > { %v713_v52 = vpack.c.bf16 %v283_v46, %v279_v45  ;;  %v683_v53 = vpack.c.bf16 %v290_v48, %v286_v47  ;;  %v285_v54 = vld [vmem:[%s827_s19 + $0x100] sm:$0xff]  ;;  %v287_v56 = vld [vmem:[%s827_s19 + $0x110] sm:$0xff]  ;;  %v715_v57 = vpack.c.bf16 %v292_v50, %v288_v49  ;;  %v294_v59 = vld [vmem:[%s827_s19 + $0x148] sm:$0xff] }
  0x1e   : > { %678 = vmatpush1.bf16.msra.mxu0 %v677_v35  ;;  %v289_v55 = vld [vmem:[%s827_s19 + $0x120] sm:$0xff]  ;;  %v291_v58 = vld [vmem:[%s827_s19 + $0x130] sm:$0xff]  ;;  %v298_v60 = vld [vmem:[%s827_s19 + $0x168] sm:$0xff] }
  0x1f   : > { %710 = vmatpush1.bf16.msra.mxu1 %v709_v39  ;;  %680 = vmatprep.subr.bf16.mxu0 %v679_v40  ;;  %v296_v61 = vld [vmem:[%s827_s19 + $0x158] sm:$0xff]  ;;  %v685_v63 = vpack.c.bf16 %v289_v55, %v285_v54  ;;  %v717_v1 = vpack.c.bf16 %v291_v58, %v287_v56  ;;  %v687_v2 = vpack.c.bf16 %v298_v60, %v294_v59  ;;  %v293_v3 = vld [vmem:[%s827_s19 + $0x140] sm:$0xff]  ;;  %v295_v5 = vld [vmem:[%s827_s19 + $0x150] sm:$0xff]  ;;  %v320_v39 = vshrl.u32 %v319_v38, 7 }
  0x20   : > { %712 = vmatprep.subr.bf16.mxu1 %v711_v44  ;;  %v300_v62 = vld [vmem:[%s827_s19 + $0x178] sm:$0xff]  ;;  %v297_v4 = vld [vmem:[%s827_s19 + $0x160] sm:$0xff]  ;;  %v299_v7 = vld [vmem:[%s827_s19 + $0x170] sm:$0xff] }
  0x21   : > { %v719_v6 = vpack.c.bf16 %v300_v62, %v296_v61  ;;  %v302_v8 = vld [vmem:[%s827_s19 + $0x188] sm:$0xff]  ;;  %v304_v10 = vld [vmem:[%s827_s19 + $0x198] sm:$0xff]  ;;  %v689_v12 = vpack.c.bf16 %v297_v4, %v293_v3  ;;  %v721_v13 = vpack.c.bf16 %v299_v7, %v295_v5  ;;  %v301_v15 = vld [vmem:[%s827_s19 + $0x180] sm:$0xff]  ;;  %v321_v40 = vsub.s32 0, %v320_v39 }
  0x22   : > { %682 = vmatpush1.bf16.msra.mxu0 %v681_v51  ;;  %v306_v9 = vld [vmem:[%s827_s19 + $0x1a8] sm:$0xff]  ;;  %v308_v11 = vld [vmem:[%s827_s19 + $0x1b8] sm:$0xff]  ;;  %v305_v16 = vld [vmem:[%s827_s19 + $0x1a0] sm:$0xff]  ;;  %v329_v42 = vsub.s32 2, %v320_v39  ;;  %v325_v43 = vsub.s32 1, %v320_v39  ;;  %v333_v44 = vsub.s32 3, %v320_v39 }
  0x23   : > { %714 = vmatpush1.bf16.msra.mxu1 %v713_v52  ;;  %684 = vmatprep.subr.bf16.mxu0 %v683_v53  ;;  %v691_v14 = vpack.c.bf16 %v306_v9, %v302_v8  ;;  %v303_v17 = vld [vmem:[%s827_s19 + $0x190] sm:$0xff]  ;;  %v723_v18 = vpack.c.bf16 %v308_v11, %v304_v10  ;;  %v310_v20 = vld [vmem:[%s827_s19 + $0x1c8] sm:$0xff]  ;;  %v312_v22 = vld [vmem:[%s827_s19 + $0x1d8] sm:$0xff]  ;;  %v693_v24 = vpack.c.bf16 %v305_v16, %v301_v15 }
  0x24   : > { %716 = vmatprep.subr.bf16.mxu1 %v715_v57  ;;  %v307_v19 = vld [vmem:[%s827_s19 + $0x1b0] sm:$0xff]  ;;  %v314_v21 = vld [vmem:[%s827_s19 + $0x1e8] sm:$0xff]  ;;  %v316_v23 = vld [vmem:[%s827_s19 + $0x1f8] sm:$0xff] }
  0x25   : > { %v725_v25 = vpack.c.bf16 %v307_v19, %v303_v17  ;;  %v695_v26 = vpack.c.bf16 %v314_v21, %v310_v20  ;;  %v309_v27 = vld [vmem:[%s827_s19 + $0x1c0] sm:$0xff]  ;;  %v727_v29 = vpack.c.bf16 %v316_v23, %v312_v22  ;;  %v311_v30 = vld [vmem:[%s827_s19 + $0x1d0] sm:$0xff]  ;;  %v250_v35 = vld [vmem:[%s227_s23 + $0x8] sm:$0xff] }
  0x26   : > { %686 = vmatpush1.bf16.msra.mxu0 %v685_v63  ;;  %v313_v28 = vld [vmem:[%s827_s19 + $0x1e0] sm:$0xff]  ;;  %v315_v31 = vld [vmem:[%s827_s19 + $0x1f0] sm:$0xff]  ;;  %v252_v37 = vld [vmem:[%s227_s23 + $0x18] sm:$0xff] }
  0x27   : > { %718 = vmatpush1.bf16.msra.mxu1 %v717_v1  ;;  %688 = vmatprep.subr.bf16.mxu0 %v687_v2  ;;  %v697_v32 = vpack.c.bf16 %v313_v28, %v309_v27  ;;  %v729_v33 = vpack.c.bf16 %v315_v31, %v311_v30  ;;  %v249_v34 = vld [vmem:[%s227_s23] sm:$0xff]  ;;  %v251_v36 = vld [vmem:[%s227_s23 + $0x10] sm:$0xff] }
  0x28   : > { %720 = vmatprep.subr.bf16.mxu1 %v719_v6  ;;  %v317_v41 = vld [vmem:[%s237_s27] sm:$0xf] }
  0x29   : > { %v322_v45 = vrot.slane %v317_v41, %v321_v40  ;;  %v330_v46 = vrot.slane %v317_v41, %v329_v42  ;;  %v326_v47 = vrot.slane %v317_v41, %v325_v43  ;;  %v334_v48 = vrot.slane %v317_v41, %v333_v44 }
  0x2a   : > { %690 = vmatpush1.bf16.msra.mxu0 %v689_v12 }
  0x2b   : > { %722 = vmatpush1.bf16.msra.mxu1 %v721_v13  ;;  %692 = vmatprep.subr.bf16.mxu0 %v691_v14 }
  0x2c   : > { %724 = vmatprep.subr.bf16.mxu1 %v723_v18 }
  0x2e   : > { %694 = vmatpush1.bf16.msra.mxu0 %v693_v24 }
  0x2f   : > { %726 = vmatpush1.bf16.msra.mxu1 %v725_v25  ;;  %696 = vmatprep.subr.bf16.mxu0 %v695_v26 }
  0x30   : > { %728 = vmatprep.subr.bf16.mxu1 %v727_v29 }
  0x32   : > { %698 = vmatpush1.bf16.msra.mxu0 %v697_v32 }
  0x33   : > { %730 = vmatpush1.bf16.msra.mxu1 %v729_v33 }
  0x35   : > { %404 = vmatmul.mubr.f32.vlgmr.msra.gmra.mrb[0].mxu0 %v249_v34 }
  0x36   : > { %493 = vmatmul.mubr.f32.vlgmr.msra.gmra.mrb[0].mxu1 %v249_v34  ;;  %409 = vmatprep.mubr.f32.mxu0 %v780_v0 }
  0x37   : > { %498 = vmatprep.mubr.f32.mxu1 %v780_v0 }
  0x39   : > { %410 = vmatmul.mubr.f32.gmra.mrb[2].mxu0 %v250_v35 }
  0x3a   : > { %499 = vmatmul.mubr.f32.gmra.mrb[2].mxu1 %v250_v35  ;;  %415 = vmatprep.mubr.f32.mxu0 %v780_v0 }
  0x3b   : > { %504 = vmatprep.mubr.f32.mxu1 %v780_v0 }
  0x3d   : > { %416 = vmatmul.mubr.f32.gmra.mrb[4].mxu0 %v251_v36 }
  0x3e   : > { %505 = vmatmul.mubr.f32.gmra.mrb[4].mxu1 %v251_v36  ;;  %421 = vmatprep.mubr.f32.mxu0 %v780_v0 }
  0x3f   : > { %510 = vmatprep.mubr.f32.mxu1 %v780_v0 }
  0x41   : > { %422 = vmatmul.mubr.f32.gmra.mrb[6].mxu0 %v252_v37 }
  0x42   : > { %511 = vmatmul.mubr.f32.gmra.mrb[6].mxu1 %v252_v37 }
 0x108   : > { %v405_v0 = vpop.f32.mrb[0].mxu0 }
 0x109   : > { %v406_v49 = vadd.f32 %v405_v0, %v322_v45  ;;  %v494_v50 = vpop.f32.mrb[0].mxu1  ;;  %v407_v51 = vpop.f32.mrb[1].mxu0 }
 0x10a   : > { %v495_v52 = vadd.f32 %v494_v50, %v330_v46  ;;  %v408_v53 = vadd.f32 %v407_v51, %v326_v47  ;;  %v496_v54 = vpop.f32.mrb[1].mxu1 }
 0x10b   : > { %517 = vst [vmem:[%s911_s4] sm:$0xff] %v406_v49  ;;  %v497_v55 = vadd.f32 %v496_v54, %v334_v48 }
 0x10c   : > { %519 = vst [vmem:[%s911_s4 + $0x10] sm:$0xff] %v495_v52  ;;  %518 = vst [vmem:[%s911_s4 + $0x8] sm:$0xff] %v408_v53  ;;  %v411_v56 = vpop.f32.mrb[2].mxu0 }
 0x10d   : > { %520 = vst [vmem:[%s911_s4 + $0x18] sm:$0xff] %v497_v55  ;;  %v412_v57 = vadd.f32 %v411_v56, %v322_v45  ;;  %v500_v58 = vpop.f32.mrb[2].mxu1  ;;  %v413_v59 = vpop.f32.mrb[3].mxu0 }
 0x10e   : > { %v501_v60 = vadd.f32 %v500_v58, %v330_v46  ;;  %v414_v61 = vadd.f32 %v413_v59, %v326_v47  ;;  %v502_v62 = vpop.f32.mrb[3].mxu1 }
 0x10f   : > { %521 = vst [vmem:[%s911_s4 + $0x20] sm:$0xff] %v412_v57  ;;  %v503_v63 = vadd.f32 %v502_v62, %v334_v48 }
 0x110   : > { %523 = vst [vmem:[%s911_s4 + $0x30] sm:$0xff] %v501_v60  ;;  %522 = vst [vmem:[%s911_s4 + $0x28] sm:$0xff] %v414_v61  ;;  %v417_v1 = vpop.f32.mrb[4].mxu0 }
 0x111   : > { %524 = vst [vmem:[%s911_s4 + $0x38] sm:$0xff] %v503_v63  ;;  %v418_v2 = vadd.f32 %v417_v1, %v322_v45  ;;  %v506_v3 = vpop.f32.mrb[4].mxu1  ;;  %v419_v4 = vpop.f32.mrb[5].mxu0 }
 0x112   : > { %v507_v5 = vadd.f32 %v506_v3, %v330_v46  ;;  %v420_v6 = vadd.f32 %v419_v4, %v326_v47  ;;  %v508_v7 = vpop.f32.mrb[5].mxu1 }
 0x113   : > { %525 = vst [vmem:[%s911_s4 + $0x40] sm:$0xff] %v418_v2  ;;  %v509_v8 = vadd.f32 %v508_v7, %v334_v48 }
 0x114   : > { %527 = vst [vmem:[%s911_s4 + $0x50] sm:$0xff] %v507_v5  ;;  %526 = vst [vmem:[%s911_s4 + $0x48] sm:$0xff] %v420_v6  ;;  %v423_v9 = vpop.f32.mrb[6].mxu0 }
 0x115   : > { %528 = vst [vmem:[%s911_s4 + $0x58] sm:$0xff] %v509_v8  ;;  %v424_v10 = vadd.f32 %v423_v9, %v322_v45  ;;  %v512_v11 = vpop.f32.mrb[6].mxu1  ;;  %v425_v12 = vpop.f32.mrb[7].mxu0 }
 0x116   : > { %v513_v13 = vadd.f32 %v512_v11, %v330_v46  ;;  %v426_v14 = vadd.f32 %v425_v12, %v326_v47  ;;  %v514_v15 = vpop.f32.mrb[7].mxu1 }
 0x117   : > { %529 = vst [vmem:[%s911_s4 + $0x60] sm:$0xff] %v424_v10  ;;  %v515_v16 = vadd.f32 %v514_v15, %v334_v48 }
 0x118   : > { %531 = vst [vmem:[%s911_s4 + $0x70] sm:$0xff] %v513_v13  ;;  %530 = vst [vmem:[%s911_s4 + $0x68] sm:$0xff] %v426_v14 }
 0x119   : > { %532 = vst [vmem:[%s911_s4 + $0x78] sm:$0xff] %v515_v16 }
 0x11a PF: > { %s13_s14 = sadd.s32 1, %s778_s14   ;;  %s942_s12 = smov %s774_s13 }
 0x11b   : > { %p10_p5 = scmp.ge.s32.totalorder %s13_s14, 4   ;;  %s943_s13 = smov %s945_s15 }
 0x11d   :  { %12 = sbr.rel (!%p10_p5) target bundleno = 2 (0x2), region = 68 }

// kernel: decoar_forward.8
= control target key start
LH: loop header
LB: loop body
LE: loop exit
PB: predicated region body
PF: predicated region fallthrough
CT: control target
= control target key end

     0   :  { %s1045_s18 = smov 0   ;;  %s1047_s19 = smov 0   ;;  %s1217_s0 = inlined_call_operand.vmem [shape: f32[2,32,80], index: 0, kind: input, shape index: {}]   ;;  %s1218_s1 = inlined_call_operand.vmem [shape: f32[80,128], index: 1, kind: input, shape index: {}]   ;;  %s1219_s2 = inlined_call_operand.vmem [shape: f32[1,128], index: 2, kind: input, shape index: {}]   ;;  %s1220_s3 = inlined_call_operand.vmem [shape: f32[2,128,512], index: 3, kind: input, shape index: {}]   ;;  %s1221_s4 = inlined_call_operand.vmem [shape: f32[2,1,512], index: 4, kind: input, shape index: {}]   ;;  %s1222_s5 = inlined_call_operand.vmem [shape: f32[2,32,512], index: 5, kind: output, shape index: {}]  }
   0x1   :  { %s1049_s20 = smov 0  }
   0x2 LB: > { %s27_s21 = sadd.s32 1, %s1008_s19  ;;  %p823_p0 = scmp.ge.s32.totalorder %s1012_s20, 1  ;;  %s1012_s20 = sphi %s1049_s20, %s15_s20   ;;  %s1008_s19 = sphi %s1047_s19, %s1224_s19   ;;  %s1004_s18 = sphi %s1045_s18, %s1223_s18  }
   0x3   : > { %p29_p1 = scmp.ge.s32.totalorder %s27_s21, 2  ;;  %p227_p2 = scmp.lt.s32.totalorder %s1012_s20, 3 }
   0x5   : > { %s1226_s21 = smov (%p29_p1, %s27_s21), 0  ;;  %p228_p3 = pnand %p823_p0, %p227_p2 }
   0x6   : > { %v307_v0 = vld [vmem:[%s1218_s1] sm:$0xff] (!%p228_p3)  ;;  %v308_v1 = vld [vmem:[%s1218_s1 + $0x8] sm:$0xff] (!%p228_p3)  ;;  %v309_v2 = vld [vmem:[%s1218_s1 + $0x10] sm:$0xff] (!%p228_p3)  ;;  %p274_p4 = scmp.lt.s32.totalorder (!%p228_p3), %s1004_s18, 1  ;;  %vm324_vm0 = vcmask (!%p228_p3), 654336  }
   0x7   : > { %231 = sbr.rel (%p228_p3) target bundleno = 472 (0x1d8), region = 40  ;;  %v881_v3 = vpack.c.bf16 (!%p228_p3), %v308_v1, %v307_v0  ;;  %v310_v4 = vld [vmem:[%s1218_s1 + $0x18] sm:$0xff] (!%p228_p3)  ;;  %v311_v6 = vld [vmem:[%s1218_s1 + $0x20] sm:$0xff] (!%p228_p3)  ;;  %v312_v7 = vld [vmem:[%s1218_s1 + $0x28] sm:$0xff] (!%p228_p3) }
   0x8   : > { %v885_v5 = vpack.c.bf16 (!%p228_p3), %v310_v4, %v309_v2  ;;  %v889_v8 = vpack.c.bf16 (!%p228_p3), %v312_v7, %v311_v6  ;;  %v313_v9 = vld [vmem:[%s1218_s1 + $0x30] sm:$0xff] (!%p228_p3)  ;;  %v314_v10 = vld [vmem:[%s1218_s1 + $0x38] sm:$0xff] (!%p228_p3)  ;;  %v315_v17 = vld [vmem:[%s1218_s1 + $0x40] sm:$0xff] (!%p228_p3) }
   0x9   : > { %882 = vmatprep.subr.bf16.mxu0 (!%p228_p3), %v881_v3  ;;  %v893_v16 = vpack.c.bf16 (!%p228_p3), %v314_v10, %v313_v9  ;;  %v316_v19 = vld [vmem:[%s1218_s1 + $0x48] sm:$0xff] (!%p228_p3) }
   0xa   : > { %884 = vmatpush3.bf16.msra.mxu0 (!%p228_p3), %v881_v3  ;;  %v897_v28 = vpack.c.bf16 (!%p228_p3), %v316_v19, %v315_v17 }
   0xb   : > { %886 = vmatprep.subr.bf16.mxu0 (!%p228_p3), %v885_v5 }
   0xe   : > { %s1228_s18 = smov (!%p274_p4, %s1004_s18), 1  ;;  %888 = vmatpush3.bf16.msra.mxu0 %v885_v5 }
   0xf   : > { %s838_s9 = sshll.u32 %s1228_s18, 5  ;;  %s839_s10 = sshll.u32 %s1228_s18, 9  ;;  %890 = vmatprep.subr.bf16.mxu0 %v889_v8 }
  0x10   : > { %s1088_s13 = scalar_lea.vmem %s1217_s0, %s838_s9  ;;  %s1093_s16 = scalar_lea.vmem %s1220_s3, %s839_s10 }
  0x11   : > { %v303_v11 = vld [vmem:[%s1088_s13] sm:$0xff]  ;;  %v423_v12 = vld [vmem:[%s1093_s16 + $0x8] sm:$0xff]  ;;  %v425_v29 = vld [vmem:[%s1093_s16 + $0x18] sm:$0xff]  ;;  %s828_s6 = sshll.u32 %s1228_s18, 2  ;;  %s840_s10 = sshll.u32 %s1228_s18, 7 }
  0x12   : > { %875 = vmatprep.mubr.msk.f32.mxu0 %vm324_vm0, %v303_v11  ;;  %v427_v13 = vld [vmem:[%s1093_s16 + $0x28] sm:$0xff]  ;;  %v422_v15 = vld [vmem:[%s1093_s16] sm:$0xff]  ;;  %892 = vmatpush3.bf16.msra.mxu0 %v889_v8  ;;  %v429_v31 = vld [vmem:[%s1093_s16 + $0x38] sm:$0xff]  ;;  %s291_s9 = scalar_lea.vmem %s1221_s4, %s828_s6 }
  0x13   : > { %v901_v14 = vpack.c.bf16 %v427_v13, %v423_v12  ;;  %v426_v18 = vld [vmem:[%s1093_s16 + $0x20] sm:$0xff]  ;;  %v431_v21 = vld [vmem:[%s1093_s16 + $0x48] sm:$0xff]  ;;  %894 = vmatprep.subr.bf16.mxu0 %v893_v16  ;;  %v933_v38 = vpack.c.bf16 %v429_v31, %v425_v29  ;;  %v424_v39 = vld [vmem:[%s1093_s16 + $0x10] sm:$0xff] }
  0x14   : > { %v903_v20 = vpack.c.bf16 %v426_v18, %v422_v15  ;;  %v435_v22 = vld [vmem:[%s1093_s16 + $0x68] sm:$0xff]  ;;  %v430_v24 = vld [vmem:[%s1093_s16 + $0x40] sm:$0xff]  ;;  %v428_v40 = vld [vmem:[%s1093_s16 + $0x30] sm:$0xff] }
  0x15   : > { %902 = vmatprep.subr.bf16.mxu1 %v901_v14  ;;  %v905_v23 = vpack.c.bf16 %v435_v22, %v431_v21  ;;  %v434_v25 = vld [vmem:[%s1093_s16 + $0x60] sm:$0xff]  ;;  %v439_v27 = vld [vmem:[%s1093_s16 + $0x88] sm:$0xff]  ;;  %v433_v41 = vld [vmem:[%s1093_s16 + $0x58] sm:$0xff]  ;;  %v935_v50 = vpack.c.bf16 %v428_v40, %v424_v39 }
  0x16   : > { %904 = vmatpush1.bf16.msra.mxu1 %v903_v20  ;;  %v907_v26 = vpack.c.bf16 %v434_v25, %v430_v24  ;;  %v443_v30 = vld [vmem:[%s1093_s16 + $0xa8] sm:$0xff]  ;;  %v438_v33 = vld [vmem:[%s1093_s16 + $0x80] sm:$0xff]  ;;  %896 = vmatpush3.bf16.msra.mxu0 %v893_v16  ;;  %v437_v43 = vld [vmem:[%s1093_s16 + $0x78] sm:$0xff] }
  0x17   : > { %906 = vmatprep.subr.bf16.mxu1 %v905_v23  ;;  %v909_v32 = vpack.c.bf16 %v443_v30, %v439_v27  ;;  %v442_v34 = vld [vmem:[%s1093_s16 + $0xa0] sm:$0xff]  ;;  %v447_v35 = vld [vmem:[%s1093_s16 + $0xc8] sm:$0xff]  ;;  %898 = vmatprep.subr.bf16.mxu0 %v897_v28  ;;  %v305_v49 = vld [vmem:[%s1088_s13 + $0x10] sm:$0xff]  ;;  %v937_v51 = vpack.c.bf16 %v437_v43, %v433_v41 }
  0x18   : > { %v451_v36 = vld [vmem:[%s1093_s16 + $0xe8] sm:$0xff]  ;;  %v911_v37 = vpack.c.bf16 %v442_v34, %v438_v33  ;;  %v446_v44 = vld [vmem:[%s1093_s16 + $0xc0] sm:$0xff]  ;;  %v432_v52 = vld [vmem:[%s1093_s16 + $0x50] sm:$0xff] }
  0x19   : > { %v913_v42 = vpack.c.bf16 %v451_v36, %v447_v35  ;;  %v450_v45 = vld [vmem:[%s1093_s16 + $0xe0] sm:$0xff]  ;;  %v455_v46 = vld [vmem:[%s1093_s16 + $0x108] sm:$0xff]  ;;  %v436_v53 = vld [vmem:[%s1093_s16 + $0x70] sm:$0xff] }
  0x1a   : > { %908 = vmatpush1.bf16.msra.mxu1 %v907_v26  ;;  %v459_v47 = vld [vmem:[%s1093_s16 + $0x128] sm:$0xff]  ;;  %900 = vmatpush3.bf16.msra.mxu0 %v897_v28  ;;  %v441_v54 = vld [vmem:[%s1093_s16 + $0x98] sm:$0xff]  ;;  %v915_v55 = vpack.c.bf16 %v450_v45, %v446_v44  ;;  %v454_v58 = vld [vmem:[%s1093_s16 + $0x100] sm:$0xff]  ;;  %v939_v63 = vpack.c.bf16 %v436_v53, %v432_v52 }
  0x1b   : > { %910 = vmatprep.subr.bf16.mxu1 %v909_v32  ;;  %v304_v48 = vld [vmem:[%s1088_s13 + $0x8] sm:$0xff]  ;;  %934 = vmatprep.subr.bf16.mxu0 %v933_v38  ;;  %v445_v56 = vld [vmem:[%s1093_s16 + $0xb8] sm:$0xff]  ;;  %v917_v57 = vpack.c.bf16 %v459_v47, %v455_v46  ;;  %v458_v59 = vld [vmem:[%s1093_s16 + $0x120] sm:$0xff] }
  0x1c   : > { %v463_v60 = vld [vmem:[%s1093_s16 + $0x148] sm:$0xff]  ;;  %v306_v62 = vld [vmem:[%s1088_s13 + $0x18] sm:$0xff]  ;;  %v941_v0 = vpack.c.bf16 %v445_v56, %v441_v54  ;;  %v440_v1 = vld [vmem:[%s1093_s16 + $0x90] sm:$0xff]  ;;  %v919_v4 = vpack.c.bf16 %v458_v59, %v454_v58  ;;  %s1190_s13 = scalar_lea.vmem %s1222_s5, %s840_s10 }
  0x1d   : > { %876 = vmatmul.mubr.msk.f32.vlgmr.msra.gmra.mrb[0].mxu0 %vm324_vm0, %v304_v48  ;;  %v467_v61 = vld [vmem:[%s1093_s16 + $0x168] sm:$0xff]  ;;  %v444_v2 = vld [vmem:[%s1093_s16 + $0xb0] sm:$0xff]  ;;  %v449_v3 = vld [vmem:[%s1093_s16 + $0xd8] sm:$0xff] }
  0x1e   : > { %912 = vmatpush1.bf16.msra.mxu1 %v911_v37  ;;  %878 = vmatprep.mubr.msk.f32.mxu0 %vm324_vm0, %v305_v49  ;;  %v453_v5 = vld [vmem:[%s1093_s16 + $0xf8] sm:$0xff]  ;;  %v921_v6 = vpack.c.bf16 %v467_v61, %v463_v60  ;;  %v462_v7 = vld [vmem:[%s1093_s16 + $0x140] sm:$0xff]  ;;  %v471_v9 = vld [vmem:[%s1093_s16 + $0x188] sm:$0xff]  ;;  %v943_v11 = vpack.c.bf16 %v444_v2, %v440_v1  ;;  %v488_v61 = vlaneseq }
  0x1f   : > { %914 = vmatprep.subr.bf16.mxu1 %v913_v42  ;;  %936 = vmatpush1.bf16.msra.mxu0 %v935_v50  ;;  %v466_v8 = vld [vmem:[%s1093_s16 + $0x160] sm:$0xff]  ;;  %v475_v10 = vld [vmem:[%s1093_s16 + $0x1a8] sm:$0xff]  ;;  %v945_v12 = vpack.c.bf16 %v453_v5, %v449_v3  ;;  %v448_v13 = vld [vmem:[%s1093_s16 + $0xd0] sm:$0xff] }
  0x20   : > { %938 = vmatprep.subr.bf16.mxu0 %v937_v51  ;;  %v452_v14 = vld [vmem:[%s1093_s16 + $0xf0] sm:$0xff]  ;;  %v457_v15 = vld [vmem:[%s1093_s16 + $0x118] sm:$0xff]  ;;  %v923_v16 = vpack.c.bf16 %v466_v8, %v462_v7  ;;  %v925_v18 = vpack.c.bf16 %v475_v10, %v471_v9  ;;  %v470_v19 = vld [vmem:[%s1093_s16 + $0x180] sm:$0xff]  ;;  %v1014_v51 = vmov 0.0  }
  0x21   : > { %879 = vmatmul.mubr.msk.f32.gmra.mrb[2].mxu0 %vm324_vm0, %v306_v62  ;;  %v461_v17 = vld [vmem:[%s1093_s16 + $0x138] sm:$0xff]  ;;  %v474_v20 = vld [vmem:[%s1093_s16 + $0x1a0] sm:$0xff]  ;;  %v947_v21 = vpack.c.bf16 %v452_v14, %v448_v13  ;;  %v456_v23 = vld [vmem:[%s1093_s16 + $0x110] sm:$0xff]  ;;  %572 = vmatprep.mubr.f32.mxu1 %v1014_v51  ;;  %v489_v62 = vshrl.u32 %v488_v61, 7 }
  0x22   : > { %916 = vmatpush1.bf16.msra.mxu1 %v915_v55  ;;  %v949_v22 = vpack.c.bf16 %v461_v17, %v457_v15  ;;  %v460_v24 = vld [vmem:[%s1093_s16 + $0x130] sm:$0xff]  ;;  %v927_v25 = vpack.c.bf16 %v474_v20, %v470_v19  ;;  %v465_v26 = vld [vmem:[%s1093_s16 + $0x158] sm:$0xff]  ;;  %v479_v39 = vld [vmem:[%s1093_s16 + $0x1c8] sm:$0xff]  ;;  %661 = vmatprep.mubr.f32.mxu0 %v1014_v51 }
  0x23   : > { %918 = vmatprep.subr.bf16.mxu1 %v917_v57  ;;  %940 = vmatpush1.bf16.msra.mxu0 %v939_v63  ;;  %v469_v27 = vld [vmem:[%s1093_s16 + $0x178] sm:$0xff]  ;;  %v951_v28 = vpack.c.bf16 %v460_v24, %v456_v23  ;;  %v464_v30 = vld [vmem:[%s1093_s16 + $0x150] sm:$0xff]  ;;  %v483_v40 = vld [vmem:[%s1093_s16 + $0x1e8] sm:$0xff]  ;;  %v490_v63 = vsub.s32 0, %v489_v62  ;;  %v494_v2 = vsub.s32 1, %v489_v62  ;;  %v502_v3 = vsub.s32 3, %v489_v62 }
  0x24   : > { %942 = vmatprep.subr.bf16.mxu0 %v941_v0  ;;  %v953_v29 = vpack.c.bf16 %v469_v27, %v465_v26  ;;  %v468_v31 = vld [vmem:[%s1093_s16 + $0x170] sm:$0xff]  ;;  %v473_v32 = vld [vmem:[%s1093_s16 + $0x198] sm:$0xff]  ;;  %v929_v42 = vpack.c.bf16 %v483_v40, %v479_v39  ;;  %v478_v44 = vld [vmem:[%s1093_s16 + $0x1c0] sm:$0xff]  ;;  %v498_v0 = vsub.s32 2, %v489_v62 }
  0x25   : > { %v477_v33 = vld [vmem:[%s1093_s16 + $0x1b8] sm:$0xff]  ;;  %v955_v34 = vpack.c.bf16 %v468_v31, %v464_v30  ;;  %v472_v36 = vld [vmem:[%s1093_s16 + $0x190] sm:$0xff]  ;;  %v482_v45 = vld [vmem:[%s1093_s16 + $0x1e0] sm:$0xff] }
  0x26   : > { %920 = vmatpush1.bf16.msra.mxu1 %v919_v4  ;;  %v957_v35 = vpack.c.bf16 %v477_v33, %v473_v32  ;;  %v476_v37 = vld [vmem:[%s1093_s16 + $0x1b0] sm:$0xff]  ;;  %v481_v41 = vld [vmem:[%s1093_s16 + $0x1d8] sm:$0xff]  ;;  %v931_v47 = vpack.c.bf16 %v482_v45, %v478_v44  ;;  %v831_v52 = vld [vmem:[%s1219_s2] ss:$0 sm:$0xff] }
  0x27   : > { %922 = vmatprep.subr.bf16.mxu1 %v921_v6  ;;  %944 = vmatpush1.bf16.msra.mxu0 %v943_v11  ;;  %v959_v38 = vpack.c.bf16 %v476_v37, %v472_v36  ;;  %v485_v43 = vld [vmem:[%s1093_s16 + $0x1f8] sm:$0xff]  ;;  %v480_v48 = vld [vmem:[%s1093_s16 + $0x1d0] sm:$0xff]  ;;  %v486_v1 = vld [vmem:[%s291_s9] sm:$0xf] }
  0x28   : > { %946 = vmatprep.subr.bf16.mxu0 %v945_v12  ;;  %v961_v46 = vpack.c.bf16 %v485_v43, %v481_v41  ;;  %v484_v49 = vld [vmem:[%s1093_s16 + $0x1f0] sm:$0xff]  ;;  %v491_v4 = vrot.slane %v486_v1, %v490_v63  ;;  %v499_v5 = vrot.slane %v486_v1, %v498_v0  ;;  %v495_v6 = vrot.slane %v486_v1, %v494_v2 }
  0x29   : > { %v963_v50 = vpack.c.bf16 %v484_v49, %v480_v48  ;;  %v503_v7 = vrot.slane %v486_v1, %v502_v3 }
  0x2a   : > { %924 = vmatpush1.bf16.msra.mxu1 %v923_v16 }
  0x2b   : > { %926 = vmatprep.subr.bf16.mxu1 %v925_v18  ;;  %948 = vmatpush1.bf16.msra.mxu0 %v947_v21 }
  0x2c   : > { %950 = vmatprep.subr.bf16.mxu0 %v949_v22 }
  0x2e   : > { %928 = vmatpush1.bf16.msra.mxu1 %v927_v25 }
  0x2f   : > { %952 = vmatpush1.bf16.msra.mxu0 %v951_v28  ;;  %930 = vmatprep.subr.bf16.mxu1 %v929_v42 }
  0x30   : > { %954 = vmatprep.subr.bf16.mxu0 %v953_v29 }
  0x32   : > { %932 = vmatpush1.bf16.msra.mxu1 %v931_v47 }
  0x33   : > { %956 = vmatpush1.bf16.msra.mxu0 %v955_v34 }
  0x34   : > { %958 = vmatprep.subr.bf16.mxu0 %v957_v35 }
  0x37   : > { %960 = vmatpush1.bf16.msra.mxu0 %v959_v38 }
  0x38   : > { %962 = vmatprep.subr.bf16.mxu0 %v961_v46 }
  0x3b   : > { %964 = vmatpush1.bf16.msra.mxu0 %v963_v50 }
  0xf0   : > { %v877_v53 = vpop.f32.mrb[0].mxu0 }
  0xf1   : > { %v403_v54 = vpop.f32.mrb[1].mxu0  ;;  %v409_v58 = vadd.f32 %v877_v53, %v831_v52 }
  0xf2   : > { %v404_v55 = vadd.f32 %v831_v52, %v403_v54 }
  0xf4   : > { %573 = vmatmul.mubr.f32.vlgmr.msra.gmra.mrb[0].mxu1 %v404_v55  ;;  %662 = vmatmul.mubr.f32.vlgmr.msra.gmra.mrb[4].mxu0 %v404_v55  ;;  %v880_v56 = vpop.f32.mrb[2].mxu0 }
  0xf5   : > { %578 = vmatprep.mubr.f32.mxu1 %v1014_v51  ;;  %667 = vmatprep.mubr.f32.mxu0 %v1014_v51  ;;  %v413_v57 = vpop.f32.mrb[3].mxu0  ;;  %v419_v60 = vadd.f32 %v880_v56, %v831_v52 }
  0xf6   : > { %v414_v59 = vadd.f32 %v831_v52, %v413_v57 }
  0xf8   : > { %579 = vmatmul.mubr.f32.gmra.mrb[2].mxu1 %v409_v58  ;;  %668 = vmatmul.mubr.f32.gmra.mrb[6].mxu0 %v409_v58 }
  0xf9   : > { %584 = vmatprep.mubr.f32.mxu1 %v1014_v51  ;;  %673 = vmatprep.mubr.f32.mxu0 %v1014_v51 }
  0xfc   : > { %585 = vmatmul.mubr.f32.gmra.mrb[4].mxu1 %v414_v59  ;;  %674 = vmatmul.mubr.f32.gmra.mrb[8].mxu0 %v414_v59 }
  0xfd   : > { %590 = vmatprep.mubr.f32.mxu1 %v1014_v51  ;;  %679 = vmatprep.mubr.f32.mxu0 %v1014_v51 }
 0x100   : > { %591 = vmatmul.mubr.f32.gmra.mrb[6].mxu1 %v419_v60  ;;  %680 = vmatmul.mubr.f32.gmra.mrb[10].mxu0 %v419_v60 }
 0x1c7   : > { %v574_v8 = vpop.f32.mrb[0].mxu1  ;;  %v663_v9 = vpop.f32.mrb[4].mxu0 }
 0x1c8   : > { %v575_v10 = vadd.f32 %v574_v8, %v491_v4  ;;  %v664_v11 = vadd.f32 %v663_v9, %v499_v5  ;;  %v576_v12 = vpop.f32.mrb[1].mxu1  ;;  %v665_v13 = vpop.f32.mrb[5].mxu0 }
 0x1c9   : > { %v577_v14 = vadd.f32 %v576_v12, %v495_v6  ;;  %v666_v15 = vadd.f32 %v665_v13, %v503_v7 }
 0x1ca   : > { %686 = vst [vmem:[%s1190_s13] sm:$0xff] %v575_v10  ;;  %688 = vst [vmem:[%s1190_s13 + $0x10] sm:$0xff] %v664_v11 }
 0x1cb   : > { %687 = vst [vmem:[%s1190_s13 + $0x8] sm:$0xff] %v577_v14  ;;  %689 = vst [vmem:[%s1190_s13 + $0x18] sm:$0xff] %v666_v15  ;;  %v580_v16 = vpop.f32.mrb[2].mxu1  ;;  %v669_v17 = vpop.f32.mrb[6].mxu0 }
 0x1cc   : > { %v581_v18 = vadd.f32 %v580_v16, %v491_v4  ;;  %v670_v19 = vadd.f32 %v669_v17, %v499_v5  ;;  %v582_v20 = vpop.f32.mrb[3].mxu1  ;;  %v671_v21 = vpop.f32.mrb[7].mxu0 }
 0x1cd   : > { %v583_v22 = vadd.f32 %v582_v20, %v495_v6  ;;  %v672_v23 = vadd.f32 %v671_v21, %v503_v7 }
 0x1ce   : > { %690 = vst [vmem:[%s1190_s13 + $0x20] sm:$0xff] %v581_v18  ;;  %692 = vst [vmem:[%s1190_s13 + $0x30] sm:$0xff] %v670_v19 }
 0x1cf   : > { %691 = vst [vmem:[%s1190_s13 + $0x28] sm:$0xff] %v583_v22  ;;  %693 = vst [vmem:[%s1190_s13 + $0x38] sm:$0xff] %v672_v23  ;;  %v586_v24 = vpop.f32.mrb[4].mxu1  ;;  %v675_v25 = vpop.f32.mrb[8].mxu0 }
 0x1d0   : > { %v587_v26 = vadd.f32 %v586_v24, %v491_v4  ;;  %v676_v27 = vadd.f32 %v675_v25, %v499_v5  ;;  %v588_v28 = vpop.f32.mrb[5].mxu1  ;;  %v677_v29 = vpop.f32.mrb[9].mxu0 }
 0x1d1   : > { %v589_v30 = vadd.f32 %v588_v28, %v495_v6  ;;  %v678_v31 = vadd.f32 %v677_v29, %v503_v7 }
 0x1d2   : > { %694 = vst [vmem:[%s1190_s13 + $0x40] sm:$0xff] %v587_v26  ;;  %696 = vst [vmem:[%s1190_s13 + $0x50] sm:$0xff] %v676_v27 }
 0x1d3   : > { %695 = vst [vmem:[%s1190_s13 + $0x48] sm:$0xff] %v589_v30  ;;  %697 = vst [vmem:[%s1190_s13 + $0x58] sm:$0xff] %v678_v31  ;;  %v592_v32 = vpop.f32.mrb[6].mxu1  ;;  %v681_v33 = vpop.f32.mrb[10].mxu0 }
 0x1d4   : > { %v593_v34 = vadd.f32 %v592_v32, %v491_v4  ;;  %v682_v35 = vadd.f32 %v681_v33, %v499_v5  ;;  %v594_v36 = vpop.f32.mrb[7].mxu1  ;;  %v683_v37 = vpop.f32.mrb[11].mxu0 }
 0x1d5   : > { %v595_v38 = vadd.f32 %v594_v36, %v495_v6  ;;  %v684_v39 = vadd.f32 %v683_v37, %v503_v7 }
 0x1d6   : > { %698 = vst [vmem:[%s1190_s13 + $0x60] sm:$0xff] %v593_v34  ;;  %700 = vst [vmem:[%s1190_s13 + $0x70] sm:$0xff] %v682_v35 }
 0x1d7   : > { %699 = vst [vmem:[%s1190_s13 + $0x68] sm:$0xff] %v595_v38  ;;  %701 = vst [vmem:[%s1190_s13 + $0x78] sm:$0xff] %v684_v39 }
 0x1d8 PF: > { %s15_s20 = sadd.s32 1, %s1012_s20   ;;  %s1223_s18 = smov %s1008_s19 }
 0x1d9   : > { %p12_p5 = scmp.ge.s32.totalorder %s15_s20, 4   ;;  %s1224_s19 = smov %s1226_s21 }
 0x1db   :  { %14 = sbr.rel (!%p12_p5) target bundleno = 2 (0x2), region = 76 }

// kernel: decoar_forward.9
= control target key start
LH: loop header
LB: loop body
LE: loop exit
PB: predicated region body
PF: predicated region fallthrough
CT: control target
= control target key end

     0   :  { %s5062_s12 = smov 0   ;;  %s5064_s13 = smov 0   ;;  %s6572_s0 = inlined_call_operand.vmem [shape: f32[2,32,512], index: 0, kind: input, shape index: {}]   ;;  %s6573_s1 = inlined_call_operand.vmem [shape: f32[2,128,512], index: 1, kind: input, shape index: {}]   ;;  %s6574_s2 = inlined_call_operand.vmem [shape: s32[2,1], index: 2, kind: input, shape index: {}]   ;;  %s6575_s3 = inlined_call_operand.vmem [shape: f32[2,32,128], index: 3, kind: output, shape index: {}]  }
   0x1   :  { %s5066_s14 = smov 0  }
   0x2 LB: > { %s5078_s15 = sadd.s32 4294967295, %s5037_s14   ;;  %s5081_s16 = sadd.s32 1, %s5037_s14   ;;  %s5037_s14 = sphi %s5066_s14, %s6850_s14   ;;  %s5033_s13 = sphi %s5064_s13, %s6849_s13   ;;  %s5029_s12 = sphi %s5062_s12, %s6848_s12  }
   0x3   : > { %s17_s17 = ssub.s32 %s5037_s14, %s5081_s16  ;;  %s20_s18 = sadd.s32 1, %s5033_s13 }
   0x4   : > { %p18_p0 = scmp.eq.s32.totalorder %s17_s17, 0  ;;  %p27_p1 = scmp.ne.s32.totalorder %s5033_s13, %s5029_s12 }
   0x5   : > { %p28_p2 = scmp.eq.s32.totalorder %s5037_s14, 0  ;;  %p99_p3 = scmp.eq.s32.totalorder %s5078_s15, 1 }
   0x6   : > { %s5091_s19 = scalar_select %p18_p0, %s5033_s13, %s20_s18  }
   0x7   : > { %p29_p4 = por %p28_p2, %p27_p1  ;;  %p5093_p5 = por %p99_p3, %p27_p1 }
   0x8   : > { %p3640_p6 = scmp.ge.s32.totalorder %s5037_s14, 2 }
   0xa   : > { %127 = sbr.rel (%p3640_p6) target bundleno = 29 (0x1d), region = 24 }
  0x11   : > { %130 = sbr.rel (!%p29_p4) target bundleno = 29 (0x1d), region = 28  ;;  %s132_s21 = sand.u32 (%p29_p4), 1, %s5033_s13  }
  0x12   : > { %s3704_s22 = sshll.u32 (%p29_p4), %s5037_s14, 6  ;;  %s3641_s23 = sshll.u32 (%p29_p4), %s132_s21, 7 }
  0x13   : > { %s5103_s26 = scalar_lea.vmem (%p29_p4), %s6572_s0, %s3704_s22  ;;  %s134_s27 = scalar_lea.vmem (%p29_p4), [#allocation4], %s3641_s23 }
  0x14   : > { %v151_v0 = vld [vmem:[%s5103_s26] sm:$0xff] (%p29_p4)  ;;  %v153_v1 = vld [vmem:[%s5103_s26 + $0x8] sm:$0xff] (%p29_p4)  ;;  %v155_v2 = vld [vmem:[%s5103_s26 + $0x10] sm:$0xff] (%p29_p4) }
  0x15   : > { %152 = vst [vmem:[%s134_s27] sm:$0xff] (%p29_p4), %v151_v0  ;;  %154 = vst [vmem:[%s134_s27 + $0x8] sm:$0xff] (%p29_p4), %v153_v1  ;;  %v157_v3 = vld [vmem:[%s5103_s26 + $0x18] sm:$0xff] (%p29_p4)  ;;  %v159_v4 = vld [vmem:[%s5103_s26 + $0x20] sm:$0xff] (%p29_p4) }
  0x16   : > { %156 = vst [vmem:[%s134_s27 + $0x10] sm:$0xff] (%p29_p4), %v155_v2  ;;  %v161_v5 = vld [vmem:[%s5103_s26 + $0x28] sm:$0xff] (%p29_p4)  ;;  %158 = vst [vmem:[%s134_s27 + $0x18] sm:$0xff] (%p29_p4), %v157_v3  ;;  %v163_v6 = vld [vmem:[%s5103_s26 + $0x30] sm:$0xff] (%p29_p4) }
  0x17   : > { %160 = vst [vmem:[%s134_s27 + $0x20] sm:$0xff] (%p29_p4), %v159_v4  ;;  %162 = vst [vmem:[%s134_s27 + $0x28] sm:$0xff] (%p29_p4), %v161_v5  ;;  %v165_v7 = vld [vmem:[%s5103_s26 + $0x38] sm:$0xff] (%p29_p4)  ;;  %v167_v8 = vld [vmem:[%s5103_s26 + $0x80] sm:$0xff] (%p29_p4) }
  0x18   : > { %164 = vst [vmem:[%s134_s27 + $0x30] sm:$0xff] %v163_v6  ;;  %166 = vst [vmem:[%s134_s27 + $0x38] sm:$0xff] %v165_v7  ;;  %v169_v9 = vld [vmem:[%s5103_s26 + $0x88] sm:$0xff]  ;;  %v171_v10 = vld [vmem:[%s5103_s26 + $0x90] sm:$0xff] }
  0x19   : > { %168 = vst [vmem:[%s134_s27 + $0x40] sm:$0xff] %v167_v8  ;;  %v173_v11 = vld [vmem:[%s5103_s26 + $0x98] sm:$0xff]  ;;  %170 = vst [vmem:[%s134_s27 + $0x48] sm:$0xff] %v169_v9  ;;  %v175_v12 = vld [vmem:[%s5103_s26 + $0xa0] sm:$0xff] }
  0x1a   : > { %172 = vst [vmem:[%s134_s27 + $0x50] sm:$0xff] %v171_v10  ;;  %174 = vst [vmem:[%s134_s27 + $0x58] sm:$0xff] %v173_v11  ;;  %v177_v13 = vld [vmem:[%s5103_s26 + $0xa8] sm:$0xff]  ;;  %v179_v14 = vld [vmem:[%s5103_s26 + $0xb0] sm:$0xff] }
  0x1b   : > { %176 = vst [vmem:[%s134_s27 + $0x60] sm:$0xff] %v175_v12  ;;  %178 = vst [vmem:[%s134_s27 + $0x68] sm:$0xff] %v177_v13  ;;  %v181_v15 = vld [vmem:[%s5103_s26 + $0xb8] sm:$0xff] }
  0x1c   : > { %180 = vst [vmem:[%s134_s27 + $0x70] sm:$0xff] %v179_v14  ;;  %182 = vst [vmem:[%s134_s27 + $0x78] sm:$0xff] %v181_v15 }
  0x1d PF: > { %p3645_p7 = scmp.ge.s32.totalorder %s5037_s14, 1  ;;  %p187_p8 = scmp.lt.s32.totalorder %s5037_s14, 3 }
  0x1f   : > { %p188_p9 = pnand %p3645_p7, %p187_p8 }
  0x21   : > { %191 = sbr.rel (%p188_p9) target bundleno = 2223 (0x8af), region = 51 }
  0x28   : > { %s194_s28 = sand.u32 1, %s5029_s12   ;;  %p3648_p10 = scmp.ne.s32.totalorder %s5078_s15, 0 }
  0x29   : > { %s3646_s29 = sshll.u32 %s194_s28, 7  ;;  %s3647_s30 = sshll.u32 %s194_s28, 5  ;;  %v5039_v16 = vmov (!%p3648_p10), 0.0  }
  0x2a   : > { %s5124_s4 = scalar_lea.vmem [#allocation4], %s3646_s29  ;;  %s5126_s5 = scalar_lea.vmem [#allocation5], %s3647_s30  ;;  %222 = vst [vmem:[#allocation2] sm:$0x3] (!%p3648_p10), %v5039_v16  ;;  %223 = vst [vmem:[#allocation2 + $0x2] sm:$0x3] (!%p3648_p10), %v5039_v16 }
  0x2b   : > { %221 = sbr.rel (%p3648_p10) target bundleno = 50 (0x32), region = 59  ;;  %224 = vst [vmem:[#allocation3] sm:$0x3] (!%p3648_p10), %v5039_v16  ;;  %225 = vst [vmem:[#allocation3 + $0x2] sm:$0x3] (!%p3648_p10), %v5039_v16 }
  0x32 PF: > { %v227_v17 = vld [vmem:[%s6573_s1 + $0x8] sm:$0xff]  ;;  %v226_v19 = vld [vmem:[%s6573_s1] sm:$0xff]  ;;  %v6576_v24 = vmov 0.0   ;;  %v6582_v30 = vmov 0   ;;  %v229_v37 = vld [vmem:[%s6573_s1 + $0x18] sm:$0xff]  ;;  %s5500_s12 = sshll.u32 %s5078_s15, 3 }
  0x33   : > { %v231_v18 = vld [vmem:[%s6573_s1 + $0x28] sm:$0xff]  ;;  %v230_v21 = vld [vmem:[%s6573_s1 + $0x20] sm:$0xff]  ;;  %431 = vmatprep.mubr.f32.mxu0 %v6576_v24  ;;  %502 = vmatprep.mubr.f32.mxu1 %v6576_v24  ;;  %v233_v38 = vld [vmem:[%s6573_s1 + $0x38] sm:$0xff]  ;;  %s1101_s24 = sadd.s32 1, %s5500_s12  ;;  %s2289_s22 = sadd.s32 4, %s5500_s12 }
  0x34   : > { %v5138_v20 = vpack.c.bf16 %v231_v18, %v227_v17  ;;  %v235_v22 = vld [vmem:[%s6573_s1 + $0x48] sm:$0xff]  ;;  %v5151_v25 = vpack.c.bf16 %v230_v21, %v226_v19  ;;  %v234_v27 = vld [vmem:[%s6573_s1 + $0x40] sm:$0xff]  ;;  %4757 = vset.pattern.permute.xlu0 %v6582_v30  ;;  %4758 = vset.pattern.permute.xlu1 %v6582_v30  ;;  %v5194_v40 = vpack.c.bf16 %v233_v38, %v229_v37  ;;  %v228_v41 = vld [vmem:[%s6573_s1 + $0x10] sm:$0xff]  ;;  %s3089_s23 = sadd.s32 6, %s5500_s12  ;;  %s1507_s14 = sadd.s32 2, %s5500_s12 }
  0x35   : > { %v239_v23 = vld [vmem:[%s6573_s1 + $0x68] sm:$0xff]  ;;  %v238_v28 = vld [vmem:[%s6573_s1 + $0x60] sm:$0xff]  ;;  %v232_v42 = vld [vmem:[%s6573_s1 + $0x30] sm:$0xff]  ;;  %s1913_s17 = sadd.s32 3, %s5500_s12  ;;  %s2683_s18 = sadd.s32 5, %s5500_s12 }
  0x36   : > { %v5153_v26 = vpack.c.bf16 %v239_v23, %v235_v22  ;;  %v243_v29 = vld [vmem:[%s6573_s1 + $0x88] sm:$0xff]  ;;  %3707 = vmatprep.subr.bf16.mxu0 %v5138_v20  ;;  %v5171_v32 = vpack.c.bf16 %v238_v28, %v234_v27  ;;  %v242_v33 = vld [vmem:[%s6573_s1 + $0x80] sm:$0xff]  ;;  %v5202_v43 = vpack.c.bf16 %v232_v42, %v228_v41  ;;  %3739 = vmatprep.subr.bf16.mxu1 %v5194_v40  ;;  %v237_v45 = vld [vmem:[%s6573_s1 + $0x58] sm:$0xff]  ;;  %s3495_s21 = sadd.s32 7, %s5500_s12 }
  0x37   : > { %v247_v31 = vld [vmem:[%s6573_s1 + $0xa8] sm:$0xff]  ;;  %3709 = vmatpush1.bf16.msra.mxu0 %v5151_v25  ;;  %v246_v34 = vld [vmem:[%s6573_s1 + $0xa0] sm:$0xff]  ;;  %v241_v46 = vld [vmem:[%s6573_s1 + $0x78] sm:$0xff] }
  0x38   : > { %3711 = vmatprep.subr.bf16.mxu0 %v5153_v26  ;;  %v5180_v35 = vpack.c.bf16 %v247_v31, %v243_v29  ;;  %v251_v36 = vld [vmem:[%s6573_s1 + $0xc8] sm:$0xff]  ;;  %v5205_v44 = vpack.c.bf16 %v246_v34, %v242_v33  ;;  %v236_v47 = vld [vmem:[%s6573_s1 + $0x50] sm:$0xff]  ;;  %v250_v49 = vld [vmem:[%s6573_s1 + $0xc0] sm:$0xff]  ;;  %3741 = vmatpush1.bf16.msra.mxu1 %v5202_v43  ;;  %v5227_v51 = vpack.c.bf16 %v241_v46, %v237_v45 }
  0x39   : > { %v255_v39 = vld [vmem:[%s6573_s1 + $0xe8] sm:$0xff]  ;;  %v254_v50 = vld [vmem:[%s6573_s1 + $0xe0] sm:$0xff]  ;;  %v240_v52 = vld [vmem:[%s6573_s1 + $0x70] sm:$0xff] }
  0x3a   : > { %6655 = vst [vmem:[#allocation6_spill] sm:$0xff] %v5180_v35  ;;  %6656 = vst [vmem:[#allocation7_spill] sm:$0xff] %v5205_v44  ;;  %v5218_v48 = vpack.c.bf16 %v255_v39, %v251_v36  ;;  %v259_v53 = vld [vmem:[%s6573_s1 + $0x108] sm:$0xff]  ;;  %v5238_v55 = vpack.c.bf16 %v240_v52, %v236_v47  ;;  %v245_v56 = vld [vmem:[%s6573_s1 + $0x98] sm:$0xff]  ;;  %3743 = vmatprep.subr.bf16.mxu1 %v5227_v51  ;;  %v5254_v60 = vpack.c.bf16 %v254_v50, %v250_v49 }
  0x3b   : > { %3713 = vmatpush1.bf16.msra.mxu0 %v5171_v32  ;;  %v263_v54 = vld [vmem:[%s6573_s1 + $0x128] sm:$0xff]  ;;  %v249_v57 = vld [vmem:[%s6573_s1 + $0xb8] sm:$0xff]  ;;  %v244_v58 = vld [vmem:[%s6573_s1 + $0x90] sm:$0xff] }
  0x3c   : > { %3715 = vmatprep.subr.bf16.mxu0 %v5180_v35  ;;  %6657 = vst [vmem:[#allocation8_spill] sm:$0xff] %v5218_v48  ;;  %v248_v59 = vld [vmem:[%s6573_s1 + $0xb0] sm:$0xff]  ;;  %6658 = vst [vmem:[#allocation9_spill] sm:$0xff] %v5254_v60  ;;  %v258_v61 = vld [vmem:[%s6573_s1 + $0x100] sm:$0xff]  ;;  %v5262_v63 = vpack.c.bf16 %v249_v57, %v245_v56  ;;  %v5265_v0 = vpack.c.bf16 %v263_v54, %v259_v53  ;;  %3745 = vmatpush1.bf16.msra.mxu1 %v5238_v55 }
  0x3d   : > { %v262_v62 = vld [vmem:[%s6573_s1 + $0x120] sm:$0xff]  ;;  %v267_v1 = vld [vmem:[%s6573_s1 + $0x148] sm:$0xff]  ;;  %v5271_v2 = vpack.c.bf16 %v248_v59, %v244_v58  ;;  %v253_v3 = vld [vmem:[%s6573_s1 + $0xd8] sm:$0xff] }
  0x3e   : > { %6659 = vst [vmem:[#allocation10_spill] sm:$0xff] %v5262_v63  ;;  %6660 = vst [vmem:[#allocation11_spill] sm:$0xff] %v5265_v0  ;;  %v257_v4 = vld [vmem:[%s6573_s1 + $0xf8] sm:$0xff]  ;;  %v271_v5 = vld [vmem:[%s6573_s1 + $0x168] sm:$0xff]  ;;  %3747 = vmatprep.subr.bf16.mxu1 %v5262_v63  ;;  %v5292_v9 = vpack.c.bf16 %v262_v62, %v258_v61 }
  0x3f   : > { %3717 = vmatpush1.bf16.msra.mxu0 %v5205_v44  ;;  %6661 = vst [vmem:[#allocation12_spill] sm:$0xff] %v5271_v2  ;;  %v5283_v6 = vpack.c.bf16 %v257_v4, %v253_v3  ;;  %v252_v7 = vld [vmem:[%s6573_s1 + $0xd0] sm:$0xff]  ;;  %v261_v10 = vld [vmem:[%s6573_s1 + $0x118] sm:$0xff]  ;;  %v5301_v12 = vpack.c.bf16 %v271_v5, %v267_v1  ;;  %v266_v13 = vld [vmem:[%s6573_s1 + $0x140] sm:$0xff] }
  0x40   : > { %3719 = vmatprep.subr.bf16.mxu0 %v5218_v48  ;;  %v256_v8 = vld [vmem:[%s6573_s1 + $0xf0] sm:$0xff]  ;;  %6663 = vst [vmem:[#allocation14_spill] sm:$0xff] %v5292_v9  ;;  %v265_v11 = vld [vmem:[%s6573_s1 + $0x138] sm:$0xff]  ;;  %v270_v14 = vld [vmem:[%s6573_s1 + $0x160] sm:$0xff]  ;;  %3749 = vmatpush1.bf16.msra.mxu1 %v5271_v2 }
  0x41   : > { %6662 = vst [vmem:[#allocation13_spill] sm:$0xff] %v5283_v6  ;;  %6664 = vst [vmem:[#allocation15_spill] sm:$0xff] %v5301_v12  ;;  %v275_v15 = vld [vmem:[%s6573_s1 + $0x188] sm:$0xff]  ;;  %v5313_v16 = vpack.c.bf16 %v256_v8, %v252_v7  ;;  %3751 = vmatprep.subr.bf16.mxu1 %v5283_v6  ;;  %v5319_v18 = vpack.c.bf16 %v265_v11, %v261_v10  ;;  %v260_v19 = vld [vmem:[%s6573_s1 + $0x110] sm:$0xff]  ;;  %v5334_v27 = vpack.c.bf16 %v270_v14, %v266_v13 }
  0x42   : > { %v279_v17 = vld [vmem:[%s6573_s1 + $0x1a8] sm:$0xff]  ;;  %v264_v21 = vld [vmem:[%s6573_s1 + $0x130] sm:$0xff]  ;;  %v269_v22 = vld [vmem:[%s6573_s1 + $0x158] sm:$0xff] }
  0x43   : > { %3721 = vmatpush1.bf16.msra.mxu0 %v5254_v60  ;;  %6665 = vst [vmem:[#allocation16_spill] sm:$0xff] %v5313_v16  ;;  %6666 = vst [vmem:[#allocation17_spill] sm:$0xff] %v5319_v18  ;;  %v273_v23 = vld [vmem:[%s6573_s1 + $0x178] sm:$0xff]  ;;  %v5337_v28 = vpack.c.bf16 %v279_v17, %v275_v15  ;;  %v274_v29 = vld [vmem:[%s6573_s1 + $0x180] sm:$0xff]  ;;  %v5349_v34 = vpack.c.bf16 %v264_v21, %v260_v19 }
  0x44   : > { %3723 = vmatprep.subr.bf16.mxu0 %v5265_v0  ;;  %6667 = vst [vmem:[#allocation18_spill] sm:$0xff] %v5334_v27  ;;  %v278_v31 = vld [vmem:[%s6573_s1 + $0x1a0] sm:$0xff]  ;;  %3753 = vmatpush1.bf16.msra.mxu1 %v5313_v16  ;;  %v283_v33 = vld [vmem:[%s6573_s1 + $0x1c8] sm:$0xff]  ;;  %v5355_v37 = vpack.c.bf16 %v273_v23, %v269_v22  ;;  %v268_v38 = vld [vmem:[%s6573_s1 + $0x150] sm:$0xff] }
  0x45   : > { %6668 = vst [vmem:[#allocation19_spill] sm:$0xff] %v5337_v28  ;;  %6669 = vst [vmem:[#allocation20_spill] sm:$0xff] %v5349_v34  ;;  %v287_v36 = vld [vmem:[%s6573_s1 + $0x1e8] sm:$0xff]  ;;  %3755 = vmatprep.subr.bf16.mxu1 %v5319_v18  ;;  %v272_v39 = vld [vmem:[%s6573_s1 + $0x170] sm:$0xff]  ;;  %v5370_v45 = vpack.c.bf16 %v278_v31, %v274_v29 }
  0x46   : > { %6670 = vst [vmem:[#allocation21_spill] sm:$0xff] %v5355_v37  ;;  %v277_v41 = vld [vmem:[%s6573_s1 + $0x198] sm:$0xff]  ;;  %v5373_v46 = vpack.c.bf16 %v287_v36, %v283_v33  ;;  %v282_v47 = vld [vmem:[%s6573_s1 + $0x1c0] sm:$0xff]  ;;  %v291_v50 = vld [vmem:[%s6573_s1 + $0x208] sm:$0xff]  ;;  %v5385_v52 = vpack.c.bf16 %v272_v39, %v268_v38 }
  0x47   : > { %3725 = vmatpush1.bf16.msra.mxu0 %v5292_v9  ;;  %v281_v42 = vld [vmem:[%s6573_s1 + $0x1b8] sm:$0xff]  ;;  %6671 = vst [vmem:[#allocation22_spill] sm:$0xff] %v5370_v45  ;;  %v286_v49 = vld [vmem:[%s6573_s1 + $0x1e0] sm:$0xff]  ;;  %v295_v53 = vld [vmem:[%s6573_s1 + $0x228] sm:$0xff] }
  0x48   : > { %3727 = vmatprep.subr.bf16.mxu0 %v5301_v12  ;;  %6672 = vst [vmem:[#allocation23_spill] sm:$0xff] %v5373_v46  ;;  %3757 = vmatpush1.bf16.msra.mxu1 %v5349_v34  ;;  %6673 = vst [vmem:[#allocation24_spill] sm:$0xff] %v5385_v52  ;;  %v5391_v54 = vpack.c.bf16 %v281_v42, %v277_v41  ;;  %v276_v56 = vld [vmem:[%s6573_s1 + $0x190] sm:$0xff]  ;;  %v285_v58 = vld [vmem:[%s6573_s1 + $0x1d8] sm:$0xff]  ;;  %v5406_v61 = vpack.c.bf16 %v286_v49, %v282_v47 }
  0x49   : > { %3759 = vmatprep.subr.bf16.mxu1 %v5355_v37  ;;  %v280_v57 = vld [vmem:[%s6573_s1 + $0x1b0] sm:$0xff]  ;;  %v289_v59 = vld [vmem:[%s6573_s1 + $0x1f8] sm:$0xff]  ;;  %v5409_v62 = vpack.c.bf16 %v295_v53, %v291_v50  ;;  %v290_v1 = vld [vmem:[%s6573_s1 + $0x200] sm:$0xff] }
  0x4a   : > { %6674 = vst [vmem:[#allocation25_spill] sm:$0xff] %v5391_v54  ;;  %6675 = vst [vmem:[#allocation26_spill] sm:$0xff] %v5406_v61  ;;  %v294_v3 = vld [vmem:[%s6573_s1 + $0x220] sm:$0xff]  ;;  %v299_v4 = vld [vmem:[%s6573_s1 + $0x248] sm:$0xff]  ;;  %v5421_v5 = vpack.c.bf16 %v280_v57, %v276_v56  ;;  %v5427_v8 = vpack.c.bf16 %v289_v59, %v285_v58 }
  0x4b   : > { %3729 = vmatpush1.bf16.msra.mxu0 %v5334_v27  ;;  %6676 = vst [vmem:[#allocation27_spill] sm:$0xff] %v5409_v62  ;;  %v303_v7 = vld [vmem:[%s6573_s1 + $0x268] sm:$0xff]  ;;  %v284_v10 = vld [vmem:[%s6573_s1 + $0x1d0] sm:$0xff]  ;;  %v293_v13 = vld [vmem:[%s6573_s1 + $0x218] sm:$0xff]  ;;  %v5444_v17 = vpack.c.bf16 %v294_v3, %v290_v1 }
  0x4c   : > { %3731 = vmatprep.subr.bf16.mxu0 %v5337_v28  ;;  %3761 = vmatpush1.bf16.msra.mxu1 %v5385_v52  ;;  %6677 = vst [vmem:[#allocation28_spill] sm:$0xff] %v5421_v5  ;;  %6678 = vst [vmem:[#allocation29_spill] sm:$0xff] %v5427_v8  ;;  %v288_v11 = vld [vmem:[%s6573_s1 + $0x1f0] sm:$0xff]  ;;  %v297_v14 = vld [vmem:[%s6573_s1 + $0x238] sm:$0xff]  ;;  %v5447_v19 = vpack.c.bf16 %v303_v7, %v299_v4 }
  0x4d   : > { %3763 = vmatprep.subr.bf16.mxu1 %v5391_v54  ;;  %v5442_v15 = vld [vmem:[#allocation2] sm:$0x3]  ;;  %v307_v23 = vld [vmem:[%s6573_s1 + $0x288] sm:$0xff]  ;;  %v5459_v29 = vpack.c.bf16 %v288_v11, %v284_v10  ;;  %v5465_v33 = vpack.c.bf16 %v297_v14, %v293_v13  ;;  %v292_v36 = vld [vmem:[%s6573_s1 + $0x210] sm:$0xff]  ;;  %v708_v10 = vstv %s5500_s12 }
  0x4e   : > { %v298_v21 = vld [vmem:[%s6573_s1 + $0x240] sm:$0xff]  ;;  %v311_v31 = vld [vmem:[%s6573_s1 + $0x2a8] sm:$0xff]  ;;  %v296_v38 = vld [vmem:[%s6573_s1 + $0x230] sm:$0xff] }
  0x4f   : > { %3733 = vmatpush1.bf16.msra.mxu0 %v5370_v45  ;;  %v302_v22 = vld [vmem:[%s6573_s1 + $0x260] sm:$0xff]  ;;  %6679 = vst [vmem:[#allocation30_spill] sm:$0xff] %v5459_v29  ;;  %6680 = vst [vmem:[#allocation31_spill] sm:$0xff] %v5465_v33  ;;  %v301_v39 = vld [vmem:[%s6573_s1 + $0x258] sm:$0xff]  ;;  %v5485_v47 = vpack.c.bf16 %v311_v31, %v307_v23  ;;  %v5497_v56 = vpack.c.bf16 %v296_v38, %v292_v36  ;;  %v1102_v23 = vstv %s1101_s24 }
  0x50   : > { %3735 = vmatprep.subr.bf16.mxu0 %v5373_v46  ;;  %3765 = vmatpush1.bf16.msra.mxu1 %v5421_v5  ;;  %v305_v41 = vld [vmem:[%s6573_s1 + $0x278] sm:$0xff]  ;;  %v5481_v42 = vpack.c.bf16 %v302_v22, %v298_v21  ;;  %v306_v49 = vld [vmem:[%s6573_s1 + $0x280] sm:$0xff]  ;;  %v315_v53 = vld [vmem:[%s6573_s1 + $0x2c8] sm:$0xff] }
  0x51   : > { %3767 = vmatprep.subr.bf16.mxu1 %v5427_v8  ;;  %v310_v50 = vld [vmem:[%s6573_s1 + $0x2a0] sm:$0xff]  ;;  %v319_v57 = vld [vmem:[%s6573_s1 + $0x2e8] sm:$0xff]  ;;  %v5506_v58 = vpack.c.bf16 %v305_v41, %v301_v39  ;;  %v300_v59 = vld [vmem:[%s6573_s1 + $0x250] sm:$0xff] }
  0x52   : > { %v304_v1 = vld [vmem:[%s6573_s1 + $0x270] sm:$0xff]  ;;  %v309_v3 = vld [vmem:[%s6573_s1 + $0x298] sm:$0xff]  ;;  %v5522_v7 = vpack.c.bf16 %v310_v50, %v306_v49  ;;  %v5527_v11 = vpack.c.bf16 %v319_v57, %v315_v53  ;;  %v314_v13 = vld [vmem:[%s6573_s1 + $0x2c0] sm:$0xff] }
  0x53   : > { %3737 = vmatpush1.bf16.msra.mxu0 %v5406_v61  ;;  %v313_v4 = vld [vmem:[%s6573_s1 + $0x2b8] sm:$0xff]  ;;  %v318_v14 = vld [vmem:[%s6573_s1 + $0x2e0] sm:$0xff]  ;;  %v323_v21 = vld [vmem:[%s6573_s1 + $0x308] sm:$0xff]  ;;  %v5539_v22 = vpack.c.bf16 %v304_v1, %v300_v59 }
  0x54   : > { %3771 = vmatprep.subr.bf16.mxu0 %v5409_v62  ;;  %3769 = vmatpush1.bf16.msra.mxu1 %v5459_v29  ;;  %6681 = vst [vmem:[#allocation32_spill] sm:$0xff] %v5522_v7  ;;  %6682 = vst [vmem:[#allocation33_spill] sm:$0xff] %v5527_v11  ;;  %v327_v31 = vld [vmem:[%s6573_s1 + $0x328] sm:$0xff]  ;;  %v5545_v36 = vpack.c.bf16 %v313_v4, %v309_v3  ;;  %v308_v38 = vld [vmem:[%s6573_s1 + $0x290] sm:$0xff]  ;;  %v5567_v53 = vpack.c.bf16 %v318_v14, %v314_v13  ;;  %v2290_v13 = vstv %s2289_s22 }
  0x55   : > { %3803 = vmatprep.subr.bf16.mxu1 %v5465_v33  ;;  %v312_v39 = vld [vmem:[%s6573_s1 + $0x2b0] sm:$0xff]  ;;  %v317_v41 = vld [vmem:[%s6573_s1 + $0x2d8] sm:$0xff]  ;;  %v5564_v50 = vld [vmem:[%s6574_s2] sm:$0x3]  ;;  %v5572_v57 = vpack.c.bf16 %v327_v31, %v323_v21 }
  0x56   : > { %432 = vmatmul.mubr.f32.vlgmr.msra.gmra.mrb[0].mxu0 %v5442_v15  ;;  %v321_v49 = vld [vmem:[%s6573_s1 + $0x2f8] sm:$0xff]  ;;  %6683 = vst [vmem:[#allocation34_spill] sm:$0xff] %v5564_v50  ;;  %6684 = vst [vmem:[#allocation35_spill] sm:$0xff] %v5567_v53  ;;  %vm709_vm0 = vcmp.lt.s32.totalorder %v708_v10, %v5564_v50  ;;  %vm1103_vm1 = vcmp.lt.s32.totalorder %v1102_v23, %v5564_v50  ;;  %v322_v59 = vld [vmem:[%s6573_s1 + $0x300] sm:$0xff]  ;;  %v5584_v4 = vpack.c.bf16 %v312_v39, %v308_v38 }
  0x57   : > { %3773 = vmatpush1.bf16.msra.mxu0 %v5444_v17  ;;  %573 = vmatprep.mubr.f32.mxu0 %v6576_v24  ;;  %6685 = vst [vmem:[#allocation36_spill] sm:$0xff] %v5572_v57  ;;  %v326_v1 = vld [vmem:[%s6573_s1 + $0x320] sm:$0xff]  ;;  %v331_v3 = vld [vmem:[%s6573_s1 + $0x348] sm:$0xff]  ;;  %v710_v10 = vsel %vm709_vm0, 1, %v6582_v30  ;;  %v5591_v21 = vpack.c.bf16 %v321_v49, %v317_v41  ;;  %v316_v31 = vld [vmem:[%s6573_s1 + $0x2d0] sm:$0xff]  ;;  %v1104_v41 = vsel %vm1103_vm1, 1, %v6582_v30  ;;  %vm2291_vm2 = vcmp.lt.s32.totalorder %v2290_v13, %v5564_v50 }
  0x58   : > { %3775 = vmatprep.subr.bf16.mxu0 %v5447_v19  ;;  %503 = vmatmul.mubr.f32.vlgmr.msra.gmra.mrb[0].mxu1 %v5442_v15  ;;  %6686 = vst [vmem:[#allocation37_spill] sm:$0xff] %v5584_v4  ;;  %v335_v14 = vld [vmem:[%s6573_s1 + $0x368] sm:$0xff]  ;;  %v320_v38 = vld [vmem:[%s6573_s1 + $0x2f0] sm:$0xff]  ;;  %v325_v39 = vld [vmem:[%s6573_s1 + $0x318] sm:$0xff]  ;;  %v5610_v49 = vpack.c.bf16 %v326_v1, %v322_v59  ;;  %v3090_v1 = vstv %s3089_s23 }
  0x59   : > { %3805 = vmatpush1.bf16.msra.mxu1 %v5497_v56  ;;  %644 = vmatprep.mubr.f32.mxu1 %v6576_v24  ;;  %6687 = vst [vmem:[#allocation38_spill] sm:$0xff] %v5591_v21  ;;  %v329_v24 = vld [vmem:[%s6573_s1 + $0x338] sm:$0xff]  ;;  %v339_v23 = vld [vmem:[%s6573_s1 + $0x388] sm:$0xff]  ;;  %v5626_v59 = vpack.c.bf16 %v320_v38, %v316_v31  ;;  %v324_v30 = vld [vmem:[%s6573_s1 + $0x310] sm:$0xff]  ;;  %vm3091_vm3 = vcmp.lt.s32.totalorder %v3090_v1, %v5564_v50 }
  0x5a   : > { %3807 = vmatprep.subr.bf16.mxu1 %v5506_v58  ;;  %712 = vperm.xlu0 %4757, %v710_v10   ;;  %6688 = vst [vmem:[#allocation39_spill] sm:$0xff] %v5610_v49  ;;  %v5614_v10 = vpack.c.bf16 %v335_v14, %v331_v3  ;;  %v343_v3 = vld [vmem:[%s6573_s1 + $0x3a8] sm:$0xff]  ;;  %v5632_v14 = vpack.c.bf16 %v329_v24, %v325_v39  ;;  %v333_v31 = vld [vmem:[%s6573_s1 + $0x358] sm:$0xff] }
  0x5b   : > { %3777 = vmatpush1.bf16.msra.mxu0 %v5481_v42  ;;  %v337_v38 = vld [vmem:[%s6573_s1 + $0x378] sm:$0xff]  ;;  %v351_v13 = vld [vmem:[%s6573_s1 + $0x3e8] sm:$0xff] }
  0x5c   : > { %3779 = vmatprep.subr.bf16.mxu0 %v5485_v47  ;;  %6689 = vst [vmem:[#allocation40_spill] sm:$0xff] %v5614_v10  ;;  %6690 = vst [vmem:[#allocation41_spill] sm:$0xff] %v5632_v14 }
  0x5d   : > { %3809 = vmatpush1.bf16.msra.mxu1 %v5539_v22 }
  0x5e   : > { %3811 = vmatprep.subr.bf16.mxu1 %v5545_v36  ;;  %1106 = vperm.xlu0 %4757, %v1104_v41   ;;  %v5654_v41 = vpack.c.bf16 %v343_v3, %v339_v23  ;;  %v5672_v23 = vpack.c.bf16 %v337_v38, %v333_v31  ;;  %v332_v3 = vld [vmem:[%s6573_s1 + $0x350] sm:$0xff] }
  0x5f   : > { %3781 = vmatpush1.bf16.msra.mxu0 %v5522_v7  ;;  %v334_v7 = vld [vmem:[%s6573_s1 + $0x360] sm:$0xff] }
  0x60   : > { %3783 = vmatprep.subr.bf16.mxu0 %v5527_v11  ;;  %v330_v11 = vld [vmem:[%s6573_s1 + $0x340] sm:$0xff] }
  0x61   : > { %3813 = vmatpush1.bf16.msra.mxu1 %v5584_v4  ;;  %v5650_v39 = vpack.c.bf16 %v334_v7, %v330_v11  ;;  %v342_v4 = vld [vmem:[%s6573_s1 + $0x3a0] sm:$0xff]  ;;  %v347_v7 = vld [vmem:[%s6573_s1 + $0x3c8] sm:$0xff] }
  0x62   : > { %3815 = vmatprep.subr.bf16.mxu1 %v5591_v21  ;;  %v338_v21 = vld [vmem:[%s6573_s1 + $0x380] sm:$0xff] }
  0x63   : > { %3785 = vmatpush1.bf16.msra.mxu0 %v5567_v53  ;;  %v6691_v53 = vmov 0   ;;  %v5690_v38 = vpack.c.bf16 %v342_v4, %v338_v21  ;;  %v340_v21 = vld [vmem:[%s6573_s1 + $0x390] sm:$0xff] }
  0x64   : > { %3787 = vmatprep.subr.bf16.mxu0 %v5572_v57  ;;  %v328_v57 = vld [vmem:[%s6573_s1 + $0x330] sm:$0xff]  ;;  %v2292_v24 = vsel %vm2291_vm2, 1, %v6691_v53  ;;  %v3092_v31 = vsel %vm3091_vm3, 1, %v6691_v53 }
  0x65   : > { %3817 = vmatpush1.bf16.msra.mxu1 %v5626_v59  ;;  %v5666_v11 = vpack.c.bf16 %v328_v57, %v324_v30  ;;  %2294 = vperm.xlu0 %4757, %v2292_v24   ;;  %v341_v30 = vld [vmem:[%s6573_s1 + $0x398] sm:$0xff]  ;;  %v346_v24 = vld [vmem:[%s6573_s1 + $0x3c0] sm:$0xff]  ;;  %v352_v53 = vld [vmem:[%s6573_s1 + $0x3f0] sm:$0xff] }
  0x66   : > { %3819 = vmatprep.subr.bf16.mxu1 %v5632_v14  ;;  %v345_v57 = vld [vmem:[%s6573_s1 + $0x3b8] sm:$0xff]  ;;  %v350_v14 = vld [vmem:[%s6573_s1 + $0x3e0] sm:$0xff] }
  0x67   : > { %3789 = vmatpush1.bf16.msra.mxu0 %v5610_v49  ;;  %v5693_v49 = vpack.c.bf16 %v351_v13, %v347_v7  ;;  %v5705_v4 = vpack.c.bf16 %v345_v57, %v341_v30  ;;  %v344_v7 = vld [vmem:[%s6573_s1 + $0x3b0] sm:$0xff]  ;;  %v349_v13 = vld [vmem:[%s6573_s1 + $0x3d8] sm:$0xff] }
  0x68   : > { %3791 = vmatprep.subr.bf16.mxu0 %v5614_v10  ;;  %v336_v10 = vld [vmem:[%s6573_s1 + $0x370] sm:$0xff]  ;;  %v5724_v30 = vpack.c.bf16 %v344_v7, %v340_v21  ;;  %v6692_v21 = vmov 0.0  }
  0x69   : > { %3821 = vmatpush1.bf16.msra.mxu1 %v5666_v11  ;;  %v5702_v1 = vpack.c.bf16 %v336_v10, %v332_v3  ;;  %3094 = vperm.xlu0 %4757, %v3092_v31   ;;  %v353_v10 = vld [vmem:[%s6573_s1 + $0x3f8] sm:$0xff]  ;;  %v5720_v3 = vpack.c.bf16 %v350_v14, %v346_v24  ;;  %v348_v31 = vld [vmem:[%s6573_s1 + $0x3d0] sm:$0xff]  ;;  %v5736_v14 = vld [vmem:[#allocation2 + $0x2] sm:$0x3] }
  0x6a   : > { %3823 = vmatprep.subr.bf16.mxu1 %v5672_v23  ;;  %v5727_v57 = vpack.c.bf16 %v353_v10, %v349_v13  ;;  %v5739_v24 = vpack.c.bf16 %v352_v53, %v348_v31  ;;  %v359_v53 = vld [vmem:[%s5124_s4] sm:$0x3]  ;;  %v360_v7 = vld [vmem:[%s5124_s4 + $0x8] sm:$0x3] }
  0x6b   : > { %3793 = vmatpush1.bf16.msra.mxu0 %v5650_v39 }
  0x6c   : > { %3795 = vmatprep.subr.bf16.mxu0 %v5654_v41 }
  0x6d   : > { %3825 = vmatpush1.bf16.msra.mxu1 %v5702_v1 }
  0x6e   : > { %3827 = vmatprep.subr.bf16.mxu1 %v5705_v4 }
  0x6f   : > { %3797 = vmatpush1.bf16.msra.mxu0 %v5690_v38 }
  0x70   : > { %3799 = vmatprep.subr.bf16.mxu0 %v5693_v49 }
  0x71   : > { %3829 = vmatpush1.bf16.msra.mxu1 %v5724_v30 }
  0x72   : > { %3831 = vmatprep.subr.bf16.mxu1 %v5727_v57 }
  0x73   : > { %3801 = vmatpush1.bf16.msra.mxu0 %v5720_v3 }
  0x74   : > { %3835 = vmatprep.subr.bf16.mxu0 %v5138_v20 }
  0x75   : > { %3833 = vmatpush1.bf16.msra.mxu1 %v5739_v24 }
  0x76   : > { %574 = vmatmul.mubr.f32.vlgmr.msra.gmra.mrb[2].mxu0 %v5736_v14  ;;  %3867 = vmatprep.subr.bf16.mxu1 %v5194_v40 }
  0x77   : > { %3837 = vmatpush1.bf16.msra.mxu0 %v5151_v25  ;;  %795 = vmatprep.mubr.f32.mxu0 %v6692_v21 }
  0x78   : > { %3839 = vmatprep.subr.bf16.mxu0 %v5153_v26  ;;  %645 = vmatmul.mubr.f32.vlgmr.msra.gmra.mrb[2].mxu1 %v5736_v14 }
  0x79   : > { %3869 = vmatpush1.bf16.msra.mxu1 %v5202_v43  ;;  %866 = vmatprep.mubr.f32.mxu1 %v6692_v21 }
  0x7a   : > { %3871 = vmatprep.subr.bf16.mxu1 %v5227_v51 }
  0x7b   : > { %3841 = vmatpush1.bf16.msra.mxu0 %v5171_v32 }
  0x7c   : > { %3843 = vmatprep.subr.bf16.mxu0 %v5180_v35 }
  0x7d   : > { %3873 = vmatpush1.bf16.msra.mxu1 %v5238_v55 }
  0x7e   : > { %3875 = vmatprep.subr.bf16.mxu1 %v5262_v63 }
  0x7f   : > { %3845 = vmatpush1.bf16.msra.mxu0 %v5205_v44 }
  0x80   : > { %3847 = vmatprep.subr.bf16.mxu0 %v5218_v48 }
  0x81   : > { %3877 = vmatpush1.bf16.msra.mxu1 %v5271_v2 }
  0x82   : > { %3879 = vmatprep.subr.bf16.mxu1 %v5283_v6 }
  0x83   : > { %3849 = vmatpush1.bf16.msra.mxu0 %v5254_v60 }
  0x84   : > { %3851 = vmatprep.subr.bf16.mxu0 %v5265_v0 }
  0x85   : > { %3881 = vmatpush1.bf16.msra.mxu1 %v5313_v16 }
  0x86   : > { %3883 = vmatprep.subr.bf16.mxu1 %v5319_v18 }
  0x87   : > { %3853 = vmatpush1.bf16.msra.mxu0 %v5292_v9 }
  0x88   : > { %3855 = vmatprep.subr.bf16.mxu0 %v5301_v12 }
  0x89   : > { %3885 = vmatpush1.bf16.msra.mxu1 %v5349_v34 }
  0x8a   : > { %3887 = vmatprep.subr.bf16.mxu1 %v5355_v37  ;;  %v365_v37 = vld [vmem:[%s5124_s4 + $0x50] sm:$0x3] }
  0x8b   : > { %3857 = vmatpush1.bf16.msra.mxu0 %v5334_v27 }
  0x8c   : > { %3859 = vmatprep.subr.bf16.mxu0 %v5337_v28 }
  0x8d   : > { %3889 = vmatpush1.bf16.msra.mxu1 %v5385_v52 }
  0x8e   : > { %3891 = vmatprep.subr.bf16.mxu1 %v5391_v54 }
  0x8f   : > { %3861 = vmatpush1.bf16.msra.mxu0 %v5370_v45 }
  0x90   : > { %3863 = vmatprep.subr.bf16.mxu0 %v5373_v46 }
  0x91   : > { %3893 = vmatpush1.bf16.msra.mxu1 %v5421_v5 }
  0x92   : > { %3895 = vmatprep.subr.bf16.mxu1 %v5427_v8  ;;  %v361_v8 = vld [vmem:[%s5124_s4 + $0x10] sm:$0x3] }
  0x93   : > { %3865 = vmatpush1.bf16.msra.mxu0 %v5406_v61  ;;  %v362_v61 = vld [vmem:[%s5124_s4 + $0x18] sm:$0x3] }
  0x94   : > { %3899 = vmatprep.subr.bf16.mxu0 %v5409_v62 }
  0x95   : > { %3897 = vmatpush1.bf16.msra.mxu1 %v5459_v29 }
  0x96   : > { %3931 = vmatprep.subr.bf16.mxu1 %v5465_v33 }
 0x129   : > { %v433_v13 = vpop.f32.mrb[0].mxu0 }
 0x12a   : > { %v651_v10 = vadd.f32 %v433_v13, %v359_v53  ;;  %v435_v31 = vpop.f32.mrb[1].mxu0 }
 0x12b   : > { %v652_v50 = vadd.f32 %v435_v31, %v360_v7  ;;  %v504_v5 = vpop.f32.mrb[0].mxu1 }
 0x12c   : > { %v3649_v46 = vmul.f32 -1.442695, %v651_v10  ;;  %v506_v62 = vpop.f32.mrb[1].mxu1  ;;  %v653_v29 = vadd.f32 %v504_v5, %v361_v8  ;;  %v5785_v10 = vpop.permute.xlu0 %712 }
 0x12d   : > { %v3651_v45 = vmul.f32 -1.442695, %v652_v50  ;;  %v654_v54 = vadd.f32 %v506_v62, %v362_v61  ;;  %vm714_vm4 = vcmp.eq.s32.totalorder %v5785_v10, 1  ;;  %v6703_v10 = vld [vmem:[#allocation15_spill] sm:$0xff] }
 0x12e   : > { %4759 = vpow2.f32 %v3649_v46  ;;  %v357_v46 = vld [vmem:[#allocation3] sm:$0x3] }
 0x12f   : > { %4761 = vpow2.f32 %v3651_v45  ;;  %v3653_v28 = vmul.f32 -1.442695, %v654_v54 }
 0x131   : > { %4763 = vpow2.f32 %v3653_v28  ;;  %v363_v28 = vld [vmem:[%s5124_s4 + $0x40] sm:$0x3] }
 0x132   : > { %4765 = vtanh.f32 %v653_v29 }
 0x138   : > { %v4760_v52 = vpop.eup %4759 }
 0x139   : > { %v4762_v33 = vpop.eup %4761  ;;  %v665_v27 = vadd.f32 1.0, %v4760_v52  ;;  %v364_v52 = vld [vmem:[%s5124_s4 + $0x48] sm:$0x3] }
 0x13a   : > { %v677_v53 = vadd.f32 1.0, %v4762_v33 }
 0x13b   : > { %4767 = vrcp.f32 %v665_v27  ;;  %v4764_v50 = vpop.eup %4763 }
 0x13c   : > { %4769 = vrcp.f32 %v677_v53  ;;  %v4766_v7 = vpop.eup %4765  ;;  %v691_v45 = vadd.f32 1.0, %v4764_v50 }
 0x13e   : > { %4771 = vrcp.f32 %v691_v45 }
 0x145   : > { %v4768_v13 = vpop.eup %4767 }
 0x146   : > { %v4770_v61 = vpop.eup %4769  ;;  %v699_v54 = vmul.f32 %v4768_v13, %v4766_v7  ;;  %v366_v7 = vld [vmem:[%s5124_s4 + $0x58] sm:$0x3] }
 0x147   : > { %v697_v62 = vmul.f32 %v4770_v61, %v357_v46 }
 0x149   : > { %v701_v5 = vadd.f32 %v699_v54, %v697_v62  ;;  %v575_v27 = vpop.f32.mrb[2].mxu0  ;;  %v4772_v54 = vpop.eup %4771 }
 0x14a   : > { %v655_v8 = vadd.f32 %v575_v27, %v363_v28  ;;  %v577_v29 = vpop.f32.mrb[3].mxu0 }
 0x14b   : > { %4773 = vtanh.f32 %v701_v5  ;;  %v5792_v33 = vsel %vm714_vm4, %v701_v5, %v357_v46  ;;  %v656_v31 = vadd.f32 %v577_v29, %v364_v52  ;;  %v646_v13 = vpop.f32.mrb[2].mxu1 }
 0x14c   : > { %v3650_v53 = vmul.f32 -1.442695, %v655_v8  ;;  %v648_v61 = vpop.f32.mrb[3].mxu1  ;;  %v657_v27 = vadd.f32 %v646_v13, %v365_v37 }
 0x14d   : > { %v3652_v50 = vmul.f32 -1.442695, %v656_v31  ;;  %v658_v45 = vadd.f32 %v648_v61, %v366_v7  ;;  %v6695_v31 = vld [vmem:[#allocation33_spill] sm:$0xff] }
 0x14e   : > { %4775 = vpow2.f32 %v3650_v53  ;;  %v6696_v53 = vld [vmem:[#allocation38_spill] sm:$0xff] }
 0x14f   : > { %4777 = vpow2.f32 %v3652_v50  ;;  %v3654_v62 = vmul.f32 -1.442695, %v658_v45  ;;  %v358_v50 = vld [vmem:[#allocation3 + $0x2] sm:$0x3] }
 0x151   : > { %4779 = vpow2.f32 %v3654_v62 }
 0x152   : > { %4781 = vtanh.f32 %v657_v27  ;;  %v6699_v27 = vld [vmem:[#allocation41_spill] sm:$0xff] }
 0x155   : > { %v4774_v28 = vpop.eup %4773 }
 0x156   : > { %v705_v12 = vmul.f32 %v4774_v28, %v4772_v54  ;;  %v6697_v54 = vld [vmem:[#allocation35_spill] sm:$0xff]  ;;  %v6698_v28 = vld [vmem:[#allocation36_spill] sm:$0xff] }
 0x158   : > { %v4776_v34 = vpop.eup %4775  ;;  %v5799_v46 = vsel %vm714_vm4, %v705_v12, %v5442_v15  ;;  %v719_v52 = vsel %vm714_vm4, %v705_v12, 0.0  ;;  %v6694_v15 = vld [vmem:[#allocation37_spill] sm:$0xff] }
 0x159   : > { %v4778_v5 = vpop.eup %4777  ;;  %v666_v8 = vadd.f32 1.0, %v4776_v34  ;;  %721 = vst [vmem:[%s5126_s5] sm:$0x3] %v719_v52  ;;  %796 = vmatmul.mubr.f32.vlgmr.msra.gmra.mrb[4].mxu0 %v5799_v46  ;;  %867 = vmatmul.mubr.f32.vlgmr.msra.gmra.mrb[4].mxu1 %v5799_v46  ;;  %v6693_v34 = vld [vmem:[#allocation32_spill] sm:$0xff] }
 0x15a   : > { %v678_v37 = vadd.f32 1.0, %v4778_v5  ;;  %3901 = vmatpush1.bf16.msra.mxu0 %v5444_v17  ;;  %3933 = vmatpush1.bf16.msra.mxu1 %v5497_v56  ;;  %v6700_v5 = vld [vmem:[#allocation39_spill] sm:$0xff] }
 0x15b   : > { %4783 = vrcp.f32 %v666_v8  ;;  %3903 = vmatprep.subr.bf16.mxu0 %v5447_v19  ;;  %3935 = vmatprep.subr.bf16.mxu1 %v5506_v58  ;;  %v4780_v12 = vpop.eup %4779 }
 0x15c   : > { %4785 = vrcp.f32 %v678_v37  ;;  %937 = vmatprep.mubr.f32.mxu0 %v6692_v21  ;;  %1008 = vmatprep.mubr.f32.mxu1 %v6692_v21  ;;  %v4782_v29 = vpop.eup %4781  ;;  %v692_v13 = vadd.f32 1.0, %v4780_v12  ;;  %v6701_v37 = vld [vmem:[#allocation40_spill] sm:$0xff] }
 0x15e   : > { %3905 = vmatpush1.bf16.msra.mxu0 %v5481_v42  ;;  %3937 = vmatpush1.bf16.msra.mxu1 %v5539_v22  ;;  %4787 = vrcp.f32 %v692_v13 }
 0x15f   : > { %3907 = vmatprep.subr.bf16.mxu0 %v5485_v47  ;;  %3939 = vmatprep.subr.bf16.mxu1 %v5545_v36 }
 0x162   : > { %3909 = vmatpush1.bf16.msra.mxu0 %v6693_v34  ;;  %3941 = vmatpush1.bf16.msra.mxu1 %v6694_v15 }
 0x163   : > { %3911 = vmatprep.subr.bf16.mxu0 %v6695_v31  ;;  %3943 = vmatprep.subr.bf16.mxu1 %v6696_v53 }
 0x165   : > { %v4784_v7 = vpop.eup %4783 }
 0x166   : > { %v4786_v61 = vpop.eup %4785  ;;  %v700_v45 = vmul.f32 %v4784_v7, %v4782_v29  ;;  %3913 = vmatpush1.bf16.msra.mxu0 %v6697_v54  ;;  %3945 = vmatpush1.bf16.msra.mxu1 %v5626_v59 }
 0x167   : > { %v698_v62 = vmul.f32 %v4786_v61, %v358_v50  ;;  %3915 = vmatprep.subr.bf16.mxu0 %v6698_v28  ;;  %3947 = vmatprep.subr.bf16.mxu1 %v6699_v27  ;;  %v6704_v61 = vld [vmem:[#allocation21_spill] sm:$0xff] }
 0x168   : > { %v4788_v12 = vpop.eup %4787 }
 0x169   : > { %v702_v52 = vadd.f32 %v700_v45, %v698_v62  ;;  %v6705_v45 = vld [vmem:[#allocation18_spill] sm:$0xff]  ;;  %v6706_v62 = vld [vmem:[#allocation24_spill] sm:$0xff] }
 0x16a   : > { %3917 = vmatpush1.bf16.msra.mxu0 %v6700_v5  ;;  %3949 = vmatpush1.bf16.msra.mxu1 %v5666_v11 }
 0x16b   : > { %4789 = vtanh.f32 %v702_v52  ;;  %v5828_v8 = vsel %vm714_vm4, %v702_v52, %v358_v50  ;;  %3919 = vmatprep.subr.bf16.mxu0 %v6701_v37  ;;  %3951 = vmatprep.subr.bf16.mxu1 %v5672_v23  ;;  %v6707_v52 = vld [vmem:[#allocation19_spill] sm:$0xff] }
 0x16e   : > { %3921 = vmatpush1.bf16.msra.mxu0 %v5650_v39  ;;  %3953 = vmatpush1.bf16.msra.mxu1 %v5702_v1 }
 0x16f   : > { %3923 = vmatprep.subr.bf16.mxu0 %v5654_v41  ;;  %3955 = vmatprep.subr.bf16.mxu1 %v5705_v4 }
 0x172   : > { %3925 = vmatpush1.bf16.msra.mxu0 %v5690_v38  ;;  %3957 = vmatpush1.bf16.msra.mxu1 %v5724_v30 }
 0x173   : > { %3927 = vmatprep.subr.bf16.mxu0 %v5693_v49  ;;  %3959 = vmatprep.subr.bf16.mxu1 %v5727_v57 }
 0x175   : > { %v4790_v29 = vpop.eup %4789 }
 0x176   : > { %3929 = vmatpush1.bf16.msra.mxu0 %v5720_v3  ;;  %3961 = vmatpush1.bf16.msra.mxu1 %v5739_v24  ;;  %v706_v50 = vmul.f32 %v4790_v29, %v4788_v12  ;;  %v6708_v12 = vld [vmem:[#allocation25_spill] sm:$0xff]  ;;  %v6709_v29 = vld [vmem:[#allocation22_spill] sm:$0xff] }
 0x177   : > { %3963 = vmatprep.subr.bf16.mxu0 %v5138_v20  ;;  %3995 = vmatprep.subr.bf16.mxu1 %v5194_v40 }
 0x178   : > { %v5847_v7 = vsel %vm714_vm4, %v706_v50, %v5736_v14  ;;  %v720_v13 = vsel %vm714_vm4, %v706_v50, 0.0  ;;  %v6702_v14 = vld [vmem:[#allocation20_spill] sm:$0xff] }
 0x179   : > { %722 = vst [vmem:[%s5126_s5 + $0x10] sm:$0x3] %v720_v13  ;;  %938 = vmatmul.mubr.f32.vlgmr.msra.gmra.mrb[6].mxu0 %v5847_v7  ;;  %1009 = vmatmul.mubr.f32.vlgmr.msra.gmra.mrb[6].mxu1 %v5847_v7  ;;  %v6710_v50 = vld [vmem:[#allocation28_spill] sm:$0xff]  ;;  %v6711_v13 = vld [vmem:[#allocation23_spill] sm:$0xff] }
 0x17a   : > { %3965 = vmatpush1.bf16.msra.mxu0 %v5151_v25  ;;  %3997 = vmatpush1.bf16.msra.mxu1 %v5202_v43 }
 0x17b   : > { %3967 = vmatprep.subr.bf16.mxu0 %v5153_v26  ;;  %3999 = vmatprep.subr.bf16.mxu1 %v5227_v51 }
 0x17c   : > { %1201 = vmatprep.mubr.f32.mxu0 %v6692_v21  ;;  %1272 = vmatprep.mubr.f32.mxu1 %v6692_v21 }
 0x17e   : > { %3969 = vmatpush1.bf16.msra.mxu0 %v5171_v32  ;;  %4001 = vmatpush1.bf16.msra.mxu1 %v5238_v55 }
 0x17f   : > { %3971 = vmatprep.subr.bf16.mxu0 %v5180_v35  ;;  %4003 = vmatprep.subr.bf16.mxu1 %v5262_v63 }
 0x182   : > { %3973 = vmatpush1.bf16.msra.mxu0 %v5205_v44  ;;  %4005 = vmatpush1.bf16.msra.mxu1 %v5271_v2 }
 0x183   : > { %3975 = vmatprep.subr.bf16.mxu0 %v5218_v48  ;;  %4007 = vmatprep.subr.bf16.mxu1 %v5283_v6 }
 0x186   : > { %3977 = vmatpush1.bf16.msra.mxu0 %v5254_v60  ;;  %4009 = vmatpush1.bf16.msra.mxu1 %v5313_v16 }
 0x187   : > { %3979 = vmatprep.subr.bf16.mxu0 %v5265_v0  ;;  %4011 = vmatprep.subr.bf16.mxu1 %v5319_v18  ;;  %v724_v18 = vld [vmem:[%s5124_s4 + $0x8] sm:$0xc] }
 0x18a   : > { %3981 = vmatpush1.bf16.msra.mxu0 %v5292_v9  ;;  %4013 = vmatpush1.bf16.msra.mxu1 %v6702_v14  ;;  %v6712_v14 = vld [vmem:[#allocation29_spill] sm:$0xff] }
 0x18b   : > { %3983 = vmatprep.subr.bf16.mxu0 %v6703_v10  ;;  %4015 = vmatprep.subr.bf16.mxu1 %v6704_v61  ;;  %v6713_v10 = vld [vmem:[#allocation26_spill] sm:$0xff] }
 0x18c   : > { %v6714_v61 = vld [vmem:[#allocation30_spill] sm:$0xff] }
 0x18e   : > { %3985 = vmatpush1.bf16.msra.mxu0 %v6705_v45  ;;  %4017 = vmatpush1.bf16.msra.mxu1 %v6706_v62  ;;  %v6715_v45 = vld [vmem:[#allocation27_spill] sm:$0xff] }
 0x18f   : > { %3987 = vmatprep.subr.bf16.mxu0 %v6707_v52  ;;  %4019 = vmatprep.subr.bf16.mxu1 %v6708_v12  ;;  %v6716_v62 = vld [vmem:[#allocation31_spill] sm:$0xff]  ;;  %v1508_v12 = vstv %s1507_s14  ;;  %v1914_v52 = vstv %s1913_s17 }
 0x192   : > { %3989 = vmatpush1.bf16.msra.mxu0 %v6709_v29  ;;  %4021 = vmatpush1.bf16.msra.mxu1 %v6710_v50  ;;  %v6717_v29 = vld [vmem:[#allocation34_spill] sm:$0xff]  ;;  %v2684_v50 = vstv %s2683_s18 }
 0x193   : > { %3991 = vmatprep.subr.bf16.mxu0 %v6711_v13  ;;  %4023 = vmatprep.subr.bf16.mxu1 %v6712_v14  ;;  %vm1509_vm5 = vcmp.lt.s32.totalorder %v1508_v12, %v6717_v29  ;;  %vm1915_vm6 = vcmp.lt.s32.totalorder %v1914_v52, %v6717_v29  ;;  %v6718_v13 = vmov 0   ;;  %vm2685_vm7 = vcmp.lt.s32.totalorder %v2684_v50, %v6717_v29  ;;  %v723_v52 = vld [vmem:[%s5124_s4] sm:$0xc] }
 0x194   : > { %v1510_v14 = vsel %vm1509_vm5, 1, %v6718_v13 }
 0x195   : > { %1512 = vperm.xlu1 %4758, %v1510_v14  }
 0x196   : > { %3993 = vmatpush1.bf16.msra.mxu0 %v6713_v10  ;;  %4025 = vmatpush1.bf16.msra.mxu1 %v6714_v61  ;;  %v2686_v61 = vsel %vm2685_vm7, 1, %v6718_v13 }
 0x197   : > { %4027 = vmatprep.subr.bf16.mxu0 %v6715_v45  ;;  %4059 = vmatprep.subr.bf16.mxu1 %v6716_v62  ;;  %v1916_v45 = vsel %vm1915_vm6, 1, %v6718_v13  ;;  %v3496_v62 = vstv %s3495_s21 }
 0x198   : > { %vm3497_vm8 = vcmp.lt.s32.totalorder %v3496_v62, %v6717_v29 }
 0x199   : > { %1918 = vperm.xlu1 %4758, %v1916_v45   ;;  %v3498_v12 = vsel %vm3497_vm8, 1, %v6718_v13  ;;  %v725_v13 = vld [vmem:[%s5124_s4 + $0x10] sm:$0xc] }
 0x19d   : > { %2688 = vperm.xlu1 %4758, %v2686_v61   ;;  %v726_v61 = vld [vmem:[%s5124_s4 + $0x18] sm:$0xc] }
 0x1a1   : > { %3500 = vperm.xlu1 %4758, %v3498_v12  }
 0x22c   : > { %v797_v10 = vpop.f32.mrb[4].mxu0  ;;  %v868_v9 = vpop.f32.mrb[4].mxu1 }
 0x22d   : > { %v1023_v14 = vrot.slane %v797_v10, 6  ;;  %v799_v0 = vpop.f32.mrb[5].mxu0  ;;  %v870_v16 = vpop.f32.mrb[5].mxu1  ;;  %v1025_v29 = vrot.slane %v868_v9, 6 }
 0x22e   : > { %v1024_v50 = vrot.slane %v799_v0, 6  ;;  %v1026_v2 = vrot.slane %v870_v16, 6 }
 0x22f   : > { %v1039_v60 = vadd.f32 %v1023_v14, %v723_v52  ;;  %v1041_v44 = vadd.f32 %v1025_v29, %v725_v13  ;;  %v727_v14 = vld [vmem:[%s5124_s4 + $0x40] sm:$0xc] }
 0x230   : > { %v1040_v45 = vadd.f32 %v1024_v50, %v724_v18  ;;  %v1042_v62 = vadd.f32 %v1026_v2, %v726_v61 }
 0x231   : > { %v3656_v6 = vmul.f32 -1.442695, %v1039_v60 }
 0x232   : > { %v3658_v48 = vmul.f32 -1.442695, %v1040_v45  ;;  %v3660_v12 = vmul.f32 -1.442695, %v1042_v62 }
 0x233   : > { %4791 = vpow2.f32 %v3656_v6 }
 0x234   : > { %4793 = vpow2.f32 %v3658_v48  ;;  %v1087_v48 = vrot.slane %v5792_v33, 6 }
 0x235   : > { %4795 = vpow2.f32 %v3660_v12  ;;  %v5907_v12 = vpop.permute.xlu0 %1106 }
 0x236   : > { %4797 = vtanh.f32 %v1041_v44  ;;  %vm1108_vm9 = vcmp.eq.s32.totalorder %v5907_v12, 1  ;;  %v6720_v12 = vld [vmem:[#allocation10_spill] sm:$0xff] }
 0x23d   : > { %v4792_v63 = vpop.eup %4791 }
 0x23e   : > { %v4794_v10 = vpop.eup %4793  ;;  %v1053_v35 = vadd.f32 1.0, %v4792_v63  ;;  %v728_v63 = vld [vmem:[%s5124_s4 + $0x48] sm:$0xc] }
 0x23f   : > { %v1065_v0 = vadd.f32 1.0, %v4794_v10  ;;  %v4796_v60 = vpop.eup %4795 }
 0x240   : > { %4799 = vrcp.f32 %v1053_v35  ;;  %v4798_v16 = vpop.eup %4797  ;;  %v1079_v18 = vadd.f32 1.0, %v4796_v60 }
 0x241   : > { %4801 = vrcp.f32 %v1065_v0 }
 0x242   : > { %4803 = vrcp.f32 %v1079_v18 }
 0x24a   : > { %v4800_v6 = vpop.eup %4799 }
 0x24b   : > { %v4802_v2 = vpop.eup %4801  ;;  %v1093_v9 = vmul.f32 %v4800_v6, %v4798_v16 }
 0x24c   : > { %v1091_v52 = vmul.f32 %v4802_v2, %v1087_v48  ;;  %v939_v50 = vpop.f32.mrb[6].mxu0  ;;  %v1010_v45 = vpop.f32.mrb[6].mxu1  ;;  %v730_v2 = vld [vmem:[%s5124_s4 + $0x58] sm:$0xc] }
 0x24d   : > { %v1027_v61 = vrot.slane %v939_v50, 6  ;;  %v941_v62 = vpop.f32.mrb[7].mxu0  ;;  %v1012_v44 = vpop.f32.mrb[7].mxu1  ;;  %v1029_v18 = vrot.slane %v1010_v45, 6 }
 0x24e   : > { %v1095_v29 = vadd.f32 %v1093_v9, %v1091_v52  ;;  %v1028_v35 = vrot.slane %v941_v62, 6  ;;  %v1030_v6 = vrot.slane %v1012_v44, 6  ;;  %v729_v52 = vld [vmem:[%s5124_s4 + $0x50] sm:$0xc] }
 0x24f   : > { %v1043_v13 = vadd.f32 %v1027_v61, %v727_v14  ;;  %v4804_v14 = vpop.eup %4803 }
 0x250   : > { %v1044_v10 = vadd.f32 %v1028_v35, %v728_v63  ;;  %4805 = vtanh.f32 %v1095_v29  ;;  %v1111_v0 = vrot.slane %v1095_v29, 2  ;;  %v1046_v9 = vadd.f32 %v1030_v6, %v730_v2 }
 0x251   : > { %v3657_v60 = vmul.f32 -1.442695, %v1043_v13  ;;  %v1045_v63 = vadd.f32 %v1029_v18, %v729_v52 }
 0x252   : > { %v3659_v16 = vmul.f32 -1.442695, %v1044_v10  ;;  %v5913_v48 = vsel %vm1108_vm9, %v1111_v0, %v5792_v33  ;;  %v3661_v61 = vmul.f32 -1.442695, %v1046_v9 }
 0x253   : > { %4807 = vpow2.f32 %v3657_v60 }
 0x254   : > { %4809 = vpow2.f32 %v3659_v16  ;;  %v1088_v16 = vrot.slane %v5828_v8, 6 }
 0x255   : > { %4811 = vpow2.f32 %v3661_v61 }
 0x256   : > { %4813 = vtanh.f32 %v1045_v63 }
 0x25a   : > { %v4806_v50 = vpop.eup %4805 }
 0x25b   : > { %v1099_v62 = vmul.f32 %v4806_v50, %v4804_v14 }
 0x25d   : > { %v4808_v29 = vpop.eup %4807  ;;  %v1119_v35 = vrot.slane %v1099_v62, 2 }
 0x25e   : > { %v4810_v44 = vpop.eup %4809  ;;  %v1054_v13 = vadd.f32 1.0, %v4808_v29 }
 0x25f   : > { %v1066_v33 = vadd.f32 1.0, %v4810_v44  ;;  %v5920_v10 = vsel %vm1108_vm9, %v1119_v35, %v5799_v46  ;;  %v1125_v45 = vsel %vm1108_vm9, %v1119_v35, 0.0  ;;  %v4812_v46 = vpop.eup %4811  ;;  %v6721_v44 = vld [vmem:[#allocation7_spill] sm:$0xff] }
 0x260   : > { %4815 = vrcp.f32 %v1054_v13  ;;  %1127 = vst [vmem:[%s5126_s5 + $0x2] sm:$0x3] %v1125_v45  ;;  %1202 = vmatmul.mubr.f32.vlgmr.msra.gmra.mrb[8].mxu0 %v5920_v10  ;;  %1273 = vmatmul.mubr.f32.vlgmr.msra.gmra.mrb[8].mxu1 %v5920_v10  ;;  %v4814_v0 = vpop.eup %4813  ;;  %v1080_v9 = vadd.f32 1.0, %v4812_v46  ;;  %v6722_v13 = vld [vmem:[#allocation12_spill] sm:$0xff]  ;;  %v6724_v45 = vld [vmem:[#allocation13_spill] sm:$0xff] }
 0x261   : > { %4817 = vrcp.f32 %v1066_v33  ;;  %4029 = vmatpush1.bf16.msra.mxu0 %v5444_v17  ;;  %4061 = vmatpush1.bf16.msra.mxu1 %v5497_v56  ;;  %v6723_v33 = vld [vmem:[#allocation8_spill] sm:$0xff]  ;;  %v6725_v46 = vld [vmem:[#allocation9_spill] sm:$0xff] }
 0x262   : > { %4031 = vmatprep.subr.bf16.mxu0 %v5447_v19  ;;  %4063 = vmatprep.subr.bf16.mxu1 %v5506_v58  ;;  %4819 = vrcp.f32 %v1080_v9  ;;  %v6731_v9 = vld [vmem:[#allocation15_spill] sm:$0xff] }
 0x263   : > { %1343 = vmatprep.mubr.f32.mxu0 %v6692_v21  ;;  %1414 = vmatprep.mubr.f32.mxu1 %v6692_v21 }
 0x265   : > { %4033 = vmatpush1.bf16.msra.mxu0 %v5481_v42  ;;  %4065 = vmatpush1.bf16.msra.mxu1 %v5539_v22 }
 0x266   : > { %4035 = vmatprep.subr.bf16.mxu0 %v5485_v47  ;;  %4067 = vmatprep.subr.bf16.mxu1 %v5545_v36 }
 0x269   : > { %4037 = vmatpush1.bf16.msra.mxu0 %v6693_v34  ;;  %4069 = vmatpush1.bf16.msra.mxu1 %v6694_v15 }
 0x26a   : > { %v4816_v60 = vpop.eup %4815  ;;  %4039 = vmatprep.subr.bf16.mxu0 %v6695_v31  ;;  %4071 = vmatprep.subr.bf16.mxu1 %v6696_v53 }
 0x26b   : > { %v4818_v6 = vpop.eup %4817  ;;  %v1094_v2 = vmul.f32 %v4816_v60, %v4814_v0  ;;  %v6726_v0 = vld [vmem:[#allocation16_spill] sm:$0xff]  ;;  %v6727_v60 = vld [vmem:[#allocation11_spill] sm:$0xff] }
 0x26c   : > { %v1092_v18 = vmul.f32 %v4818_v6, %v1088_v16  ;;  %v4820_v61 = vpop.eup %4819  ;;  %v6728_v16 = vld [vmem:[#allocation17_spill] sm:$0xff]  ;;  %v6729_v6 = vld [vmem:[#allocation14_spill] sm:$0xff] }
 0x26d   : > { %4041 = vmatpush1.bf16.msra.mxu0 %v6697_v54  ;;  %4073 = vmatpush1.bf16.msra.mxu1 %v5626_v59 }
 0x26e   : > { %v1096_v52 = vadd.f32 %v1094_v2, %v1092_v18  ;;  %4043 = vmatprep.subr.bf16.mxu0 %v6698_v28  ;;  %4075 = vmatprep.subr.bf16.mxu1 %v6699_v27  ;;  %v6730_v2 = vld [vmem:[#allocation20_spill] sm:$0xff]  ;;  %v6732_v18 = vld [vmem:[#allocation21_spill] sm:$0xff] }
 0x270   : > { %4821 = vtanh.f32 %v1096_v52  ;;  %v1112_v14 = vrot.slane %v1096_v52, 2  ;;  %v6733_v52 = vld [vmem:[#allocation18_spill] sm:$0xff] }
 0x271   : > { %4045 = vmatpush1.bf16.msra.mxu0 %v6700_v5  ;;  %4077 = vmatpush1.bf16.msra.mxu1 %v5666_v11 }
 0x272   : > { %4047 = vmatprep.subr.bf16.mxu0 %v6701_v37  ;;  %4079 = vmatprep.subr.bf16.mxu1 %v5672_v23  ;;  %v5953_v50 = vsel %vm1108_vm9, %v1112_v14, %v5828_v8  ;;  %v6734_v14 = vld [vmem:[#allocation24_spill] sm:$0xff] }
 0x275   : > { %4049 = vmatpush1.bf16.msra.mxu0 %v5650_v39  ;;  %4081 = vmatpush1.bf16.msra.mxu1 %v5702_v1 }
 0x276   : > { %4051 = vmatprep.subr.bf16.mxu0 %v5654_v41  ;;  %4083 = vmatprep.subr.bf16.mxu1 %v5705_v4 }
 0x279   : > { %4053 = vmatpush1.bf16.msra.mxu0 %v5690_v38  ;;  %4085 = vmatpush1.bf16.msra.mxu1 %v5724_v30 }
 0x27a   : > { %v4822_v63 = vpop.eup %4821  ;;  %4055 = vmatprep.subr.bf16.mxu0 %v5693_v49  ;;  %4087 = vmatprep.subr.bf16.mxu1 %v5727_v57 }
 0x27b   : > { %v1100_v8 = vmul.f32 %v4822_v63, %v4820_v61  ;;  %v6735_v61 = vld [vmem:[#allocation19_spill] sm:$0xff]  ;;  %v6736_v63 = vld [vmem:[#allocation25_spill] sm:$0xff] }
 0x27d   : > { %4057 = vmatpush1.bf16.msra.mxu0 %v5720_v3  ;;  %4089 = vmatpush1.bf16.msra.mxu1 %v5739_v24  ;;  %v1120_v62 = vrot.slane %v1100_v8, 2  ;;  %v6737_v8 = vld [vmem:[#allocation22_spill] sm:$0xff] }
 0x27e   : > { %4091 = vmatprep.subr.bf16.mxu0 %v5138_v20  ;;  %4123 = vmatprep.subr.bf16.mxu1 %v5194_v40 }
 0x27f   : > { %v5970_v29 = vsel %vm1108_vm9, %v1120_v62, %v5847_v7  ;;  %v1126_v35 = vsel %vm1108_vm9, %v1120_v62, 0.0  ;;  %v6719_v7 = vld [vmem:[#allocation6_spill] sm:$0xff]  ;;  %v6738_v62 = vld [vmem:[#allocation28_spill] sm:$0xff] }
 0x280   : > { %1128 = vst [vmem:[%s5126_s5 + $0x12] sm:$0x3] %v1126_v35  ;;  %1344 = vmatmul.mubr.f32.vlgmr.msra.gmra.mrb[10].mxu0 %v5970_v29  ;;  %1415 = vmatmul.mubr.f32.vlgmr.msra.gmra.mrb[10].mxu1 %v5970_v29  ;;  %v6739_v35 = vld [vmem:[#allocation23_spill] sm:$0xff] }
 0x281   : > { %4093 = vmatpush1.bf16.msra.mxu0 %v5151_v25  ;;  %4125 = vmatpush1.bf16.msra.mxu1 %v5202_v43 }
 0x282   : > { %4095 = vmatprep.subr.bf16.mxu0 %v5153_v26  ;;  %4127 = vmatprep.subr.bf16.mxu1 %v5227_v51 }
 0x283   : > { %1607 = vmatprep.mubr.f32.mxu0 %v6692_v21  ;;  %1678 = vmatprep.mubr.f32.mxu1 %v6692_v21 }
 0x285   : > { %4097 = vmatpush1.bf16.msra.mxu0 %v5171_v32  ;;  %4129 = vmatpush1.bf16.msra.mxu1 %v5238_v55 }
 0x286   : > { %4099 = vmatprep.subr.bf16.mxu0 %v6719_v7  ;;  %4131 = vmatprep.subr.bf16.mxu1 %v6720_v12 }
 0x289   : > { %4101 = vmatpush1.bf16.msra.mxu0 %v6721_v44  ;;  %4133 = vmatpush1.bf16.msra.mxu1 %v6722_v13 }
 0x28a   : > { %4103 = vmatprep.subr.bf16.mxu0 %v6723_v33  ;;  %4135 = vmatprep.subr.bf16.mxu1 %v6724_v45 }
 0x28d   : > { %4105 = vmatpush1.bf16.msra.mxu0 %v6725_v46  ;;  %4137 = vmatpush1.bf16.msra.mxu1 %v6726_v0 }
 0x28e   : > { %4107 = vmatprep.subr.bf16.mxu0 %v6727_v60  ;;  %4139 = vmatprep.subr.bf16.mxu1 %v6728_v16  ;;  %v1130_v16 = vld [vmem:[%s5124_s4 + $0x8] sm:$0x30] }
 0x291   : > { %4109 = vmatpush1.bf16.msra.mxu0 %v6729_v6  ;;  %4141 = vmatpush1.bf16.msra.mxu1 %v6730_v2  ;;  %v6740_v2 = vld [vmem:[#allocation29_spill] sm:$0xff]  ;;  %v6744_v6 = vld [vmem:[#allocation31_spill] sm:$0xff] }
 0x292   : > { %4111 = vmatprep.subr.bf16.mxu0 %v6731_v9  ;;  %4143 = vmatprep.subr.bf16.mxu1 %v6732_v18  ;;  %v6741_v9 = vld [vmem:[#allocation26_spill] sm:$0xff] }
 0x293   : > { %v6742_v18 = vld [vmem:[#allocation30_spill] sm:$0xff] }
 0x295   : > { %4113 = vmatpush1.bf16.msra.mxu0 %v6733_v52  ;;  %4145 = vmatpush1.bf16.msra.mxu1 %v6734_v14  ;;  %v6743_v52 = vld [vmem:[#allocation27_spill] sm:$0xff] }
 0x296   : > { %4115 = vmatprep.subr.bf16.mxu0 %v6735_v61  ;;  %4147 = vmatprep.subr.bf16.mxu1 %v6736_v63  ;;  %v1129_v61 = vld [vmem:[%s5124_s4] sm:$0x30] }
 0x299   : > { %4117 = vmatpush1.bf16.msra.mxu0 %v6737_v8  ;;  %4149 = vmatpush1.bf16.msra.mxu1 %v6738_v62 }
 0x29a   : > { %4119 = vmatprep.subr.bf16.mxu0 %v6739_v35  ;;  %4151 = vmatprep.subr.bf16.mxu1 %v6740_v2 }
 0x29d   : > { %4121 = vmatpush1.bf16.msra.mxu0 %v6741_v9  ;;  %4153 = vmatpush1.bf16.msra.mxu1 %v6742_v18  ;;  %v1132_v18 = vld [vmem:[%s5124_s4 + $0x18] sm:$0x30] }
 0x29e   : > { %4155 = vmatprep.subr.bf16.mxu0 %v6743_v52  ;;  %4187 = vmatprep.subr.bf16.mxu1 %v6744_v6  ;;  %v1131_v6 = vld [vmem:[%s5124_s4 + $0x10] sm:$0x30] }
 0x333   : > { %v1203_v14 = vpop.f32.mrb[8].mxu0  ;;  %v1274_v63 = vpop.f32.mrb[8].mxu1 }
 0x334   : > { %v1429_v8 = vrot.slane %v1203_v14, 4  ;;  %v1205_v62 = vpop.f32.mrb[9].mxu0  ;;  %v1276_v60 = vpop.f32.mrb[9].mxu1  ;;  %v1431_v33 = vrot.slane %v1274_v63, 4 }
 0x335   : > { %v1430_v35 = vrot.slane %v1205_v62, 4  ;;  %v1432_v45 = vrot.slane %v1276_v60, 4 }
 0x336   : > { %v1445_v0 = vadd.f32 %v1429_v8, %v1129_v61  ;;  %v1447_v44 = vadd.f32 %v1431_v33, %v1131_v6  ;;  %v1133_v33 = vld [vmem:[%s5124_s4 + $0x40] sm:$0x30] }
 0x337   : > { %v1446_v2 = vadd.f32 %v1430_v35, %v1130_v16  ;;  %v1448_v52 = vadd.f32 %v1432_v45, %v1132_v18  ;;  %v1493_v16 = vrot.slane %v5913_v48, 4  ;;  %v6016_v18 = vpop.permute.xlu1 %1512 }
 0x338   : > { %v3662_v46 = vmul.f32 -1.442695, %v1445_v0  ;;  %vm1514_vm10 = vcmp.eq.s32.totalorder %v6016_v18, 1  ;;  %v6746_v18 = vld [vmem:[#allocation10_spill] sm:$0xff] }
 0x339   : > { %v3664_v9 = vmul.f32 -1.442695, %v1446_v2  ;;  %v3666_v13 = vmul.f32 -1.442695, %v1448_v52 }
 0x33a   : > { %4823 = vpow2.f32 %v3662_v46 }
 0x33b   : > { %4825 = vpow2.f32 %v3664_v9 }
 0x33c   : > { %4827 = vpow2.f32 %v3666_v13 }
 0x33d   : > { %4829 = vtanh.f32 %v1447_v44  ;;  %v1134_v44 = vld [vmem:[%s5124_s4 + $0x48] sm:$0x30] }
 0x344   : > { %v4824_v12 = vpop.eup %4823 }
 0x345   : > { %v4826_v14 = vpop.eup %4825  ;;  %v1459_v7 = vadd.f32 1.0, %v4824_v12 }
 0x346   : > { %v1471_v62 = vadd.f32 1.0, %v4826_v14  ;;  %v4828_v0 = vpop.eup %4827 }
 0x347   : > { %4831 = vrcp.f32 %v1459_v7  ;;  %v4830_v60 = vpop.eup %4829  ;;  %v1485_v9 = vadd.f32 1.0, %v4828_v0 }
 0x348   : > { %4833 = vrcp.f32 %v1471_v62 }
 0x349   : > { %4835 = vrcp.f32 %v1485_v9  ;;  %v1135_v9 = vld [vmem:[%s5124_s4 + $0x50] sm:$0x30] }
 0x351   : > { %v4832_v46 = vpop.eup %4831 }
 0x352   : > { %v4834_v45 = vpop.eup %4833  ;;  %v1499_v2 = vmul.f32 %v4832_v46, %v4830_v60 }
 0x353   : > { %v1345_v6 = vpop.f32.mrb[10].mxu0  ;;  %v1416_v52 = vpop.f32.mrb[10].mxu1  ;;  %v1497_v12 = vmul.f32 %v4834_v45, %v1493_v16  ;;  %v1136_v45 = vld [vmem:[%s5124_s4 + $0x58] sm:$0x30] }
 0x354   : > { %v1433_v13 = vrot.slane %v1345_v6, 4  ;;  %v1347_v61 = vpop.f32.mrb[11].mxu0  ;;  %v1418_v7 = vpop.f32.mrb[11].mxu1  ;;  %v1435_v6 = vrot.slane %v1416_v52, 4 }
 0x355   : > { %v1434_v63 = vrot.slane %v1347_v61, 4  ;;  %v1501_v8 = vadd.f32 %v1499_v2, %v1497_v12  ;;  %v1436_v46 = vrot.slane %v1418_v7, 4 }
 0x356   : > { %v1449_v35 = vadd.f32 %v1433_v13, %v1133_v33  ;;  %v4836_v33 = vpop.eup %4835 }
 0x357   : > { %v1450_v14 = vadd.f32 %v1434_v63, %v1134_v44  ;;  %4837 = vtanh.f32 %v1501_v8  ;;  %v1517_v62 = vrot.slane %v1501_v8, 4  ;;  %v1452_v2 = vadd.f32 %v1436_v46, %v1136_v45 }
 0x358   : > { %v3663_v0 = vmul.f32 -1.442695, %v1449_v35  ;;  %v1451_v44 = vadd.f32 %v1435_v6, %v1135_v9 }
 0x359   : > { %v3665_v60 = vmul.f32 -1.442695, %v1450_v14  ;;  %v6024_v16 = vsel %vm1514_vm10, %v1517_v62, %v5913_v48  ;;  %v3667_v13 = vmul.f32 -1.442695, %v1452_v2 }
 0x35a   : > { %4839 = vpow2.f32 %v3663_v0 }
 0x35b   : > { %4841 = vpow2.f32 %v3665_v60  ;;  %v1494_v60 = vrot.slane %v5953_v50, 4 }
 0x35c   : > { %4843 = vpow2.f32 %v3667_v13 }
 0x35d   : > { %4845 = vtanh.f32 %v1451_v44 }
 0x361   : > { %v4838_v12 = vpop.eup %4837 }
 0x362   : > { %v1505_v61 = vmul.f32 %v4838_v12, %v4836_v33 }
 0x364   : > { %v4840_v63 = vpop.eup %4839  ;;  %v1525_v8 = vrot.slane %v1505_v61, 4 }
 0x365   : > { %v4842_v7 = vpop.eup %4841  ;;  %v1460_v35 = vadd.f32 1.0, %v4840_v63 }
 0x366   : > { %v1472_v48 = vadd.f32 1.0, %v4842_v7  ;;  %v6031_v14 = vsel %vm1514_vm10, %v1525_v8, %v5920_v10  ;;  %v1531_v52 = vsel %vm1514_vm10, %v1525_v8, 0.0  ;;  %v4844_v10 = vpop.eup %4843  ;;  %v6747_v7 = vld [vmem:[#allocation7_spill] sm:$0xff] }
 0x367   : > { %4847 = vrcp.f32 %v1460_v35  ;;  %1533 = vst [vmem:[%s5126_s5 + $0x4] sm:$0x3] %v1531_v52  ;;  %1608 = vmatmul.mubr.f32.vlgmr.msra.gmra.mrb[12].mxu0 %v6031_v14  ;;  %1679 = vmatmul.mubr.f32.vlgmr.msra.gmra.mrb[12].mxu1 %v6031_v14  ;;  %v4846_v62 = vpop.eup %4845  ;;  %v1486_v2 = vadd.f32 1.0, %v4844_v10  ;;  %v6748_v35 = vld [vmem:[#allocation12_spill] sm:$0xff]  ;;  %v6750_v52 = vld [vmem:[#allocation13_spill] sm:$0xff] }
 0x368   : > { %4849 = vrcp.f32 %v1472_v48  ;;  %4157 = vmatpush1.bf16.msra.mxu0 %v5444_v17  ;;  %4189 = vmatpush1.bf16.msra.mxu1 %v5497_v56  ;;  %v6749_v48 = vld [vmem:[#allocation8_spill] sm:$0xff]  ;;  %v6751_v10 = vld [vmem:[#allocation9_spill] sm:$0xff] }
 0x369   : > { %4159 = vmatprep.subr.bf16.mxu0 %v5447_v19  ;;  %4191 = vmatprep.subr.bf16.mxu1 %v5506_v58  ;;  %4851 = vrcp.f32 %v1486_v2  ;;  %v6757_v2 = vld [vmem:[#allocation15_spill] sm:$0xff] }
 0x36a   : > { %1749 = vmatprep.mubr.f32.mxu0 %v6692_v21  ;;  %1820 = vmatprep.mubr.f32.mxu1 %v6692_v21 }
 0x36c   : > { %4161 = vmatpush1.bf16.msra.mxu0 %v5481_v42  ;;  %4193 = vmatpush1.bf16.msra.mxu1 %v5539_v22 }
 0x36d   : > { %4163 = vmatprep.subr.bf16.mxu0 %v5485_v47  ;;  %4195 = vmatprep.subr.bf16.mxu1 %v5545_v36 }
 0x370   : > { %4165 = vmatpush1.bf16.msra.mxu0 %v6693_v34  ;;  %4197 = vmatpush1.bf16.msra.mxu1 %v6694_v15 }
 0x371   : > { %v4848_v0 = vpop.eup %4847  ;;  %4167 = vmatprep.subr.bf16.mxu0 %v6695_v31  ;;  %4199 = vmatprep.subr.bf16.mxu1 %v6696_v53 }
 0x372   : > { %v4850_v46 = vpop.eup %4849  ;;  %v1500_v45 = vmul.f32 %v4848_v0, %v4846_v62  ;;  %v6752_v62 = vld [vmem:[#allocation16_spill] sm:$0xff]  ;;  %v6753_v0 = vld [vmem:[#allocation11_spill] sm:$0xff] }
 0x373   : > { %v1498_v6 = vmul.f32 %v4850_v46, %v1494_v60  ;;  %v4852_v13 = vpop.eup %4851  ;;  %v6754_v60 = vld [vmem:[#allocation17_spill] sm:$0xff]  ;;  %v6755_v46 = vld [vmem:[#allocation14_spill] sm:$0xff] }
 0x374   : > { %4169 = vmatpush1.bf16.msra.mxu0 %v6697_v54  ;;  %4201 = vmatpush1.bf16.msra.mxu1 %v5626_v59 }
 0x375   : > { %v1502_v9 = vadd.f32 %v1500_v45, %v1498_v6  ;;  %4171 = vmatprep.subr.bf16.mxu0 %v6698_v28  ;;  %4203 = vmatprep.subr.bf16.mxu1 %v6699_v27  ;;  %v6756_v45 = vld [vmem:[#allocation20_spill] sm:$0xff]  ;;  %v6758_v6 = vld [vmem:[#allocation21_spill] sm:$0xff] }
 0x377   : > { %4853 = vtanh.f32 %v1502_v9  ;;  %v1518_v33 = vrot.slane %v1502_v9, 4  ;;  %v6759_v9 = vld [vmem:[#allocation18_spill] sm:$0xff] }
 0x378   : > { %4173 = vmatpush1.bf16.msra.mxu0 %v6700_v5  ;;  %4205 = vmatpush1.bf16.msra.mxu1 %v5666_v11 }
 0x379   : > { %v6062_v12 = vsel %vm1514_vm10, %v1518_v33, %v5953_v50  ;;  %4175 = vmatprep.subr.bf16.mxu0 %v6701_v37  ;;  %4207 = vmatprep.subr.bf16.mxu1 %v5672_v23  ;;  %v6760_v33 = vld [vmem:[#allocation24_spill] sm:$0xff] }
 0x37c   : > { %4177 = vmatpush1.bf16.msra.mxu0 %v5650_v39  ;;  %4209 = vmatpush1.bf16.msra.mxu1 %v5702_v1 }
 0x37d   : > { %4179 = vmatprep.subr.bf16.mxu0 %v5654_v41  ;;  %4211 = vmatprep.subr.bf16.mxu1 %v5705_v4 }
 0x380   : > { %4181 = vmatpush1.bf16.msra.mxu0 %v5690_v38  ;;  %4213 = vmatpush1.bf16.msra.mxu1 %v5724_v30 }
 0x381   : > { %v4854_v50 = vpop.eup %4853  ;;  %4183 = vmatprep.subr.bf16.mxu0 %v5693_v49  ;;  %4215 = vmatprep.subr.bf16.mxu1 %v5727_v57 }
 0x382   : > { %v1506_v44 = vmul.f32 %v4854_v50, %v4852_v13  ;;  %v6761_v13 = vld [vmem:[#allocation19_spill] sm:$0xff]  ;;  %v6762_v50 = vld [vmem:[#allocation25_spill] sm:$0xff] }
 0x384   : > { %4185 = vmatpush1.bf16.msra.mxu0 %v5720_v3  ;;  %4217 = vmatpush1.bf16.msra.mxu1 %v5739_v24  ;;  %v1526_v61 = vrot.slane %v1506_v44, 4  ;;  %v6763_v44 = vld [vmem:[#allocation22_spill] sm:$0xff] }
 0x385   : > { %4219 = vmatprep.subr.bf16.mxu0 %v5138_v20  ;;  %4251 = vmatprep.subr.bf16.mxu1 %v5194_v40 }
 0x386   : > { %v6081_v63 = vsel %vm1514_vm10, %v1526_v61, %v5970_v29  ;;  %v1532_v8 = vsel %vm1514_vm10, %v1526_v61, 0.0  ;;  %v6745_v29 = vld [vmem:[#allocation6_spill] sm:$0xff]  ;;  %v6764_v61 = vld [vmem:[#allocation28_spill] sm:$0xff] }
 0x387   : > { %1534 = vst [vmem:[%s5126_s5 + $0x14] sm:$0x3] %v1532_v8  ;;  %1750 = vmatmul.mubr.f32.vlgmr.msra.gmra.mrb[14].mxu0 %v6081_v63  ;;  %1821 = vmatmul.mubr.f32.vlgmr.msra.gmra.mrb[14].mxu1 %v6081_v63  ;;  %v6765_v8 = vld [vmem:[#allocation23_spill] sm:$0xff] }
 0x388   : > { %4221 = vmatpush1.bf16.msra.mxu0 %v5151_v25  ;;  %4253 = vmatpush1.bf16.msra.mxu1 %v5202_v43 }
 0x389   : > { %4223 = vmatprep.subr.bf16.mxu0 %v5153_v26  ;;  %4255 = vmatprep.subr.bf16.mxu1 %v5227_v51 }
 0x38a   : > { %2013 = vmatprep.mubr.f32.mxu0 %v6692_v21  ;;  %2084 = vmatprep.mubr.f32.mxu1 %v6692_v21 }
 0x38c   : > { %4225 = vmatpush1.bf16.msra.mxu0 %v5171_v32  ;;  %4257 = vmatpush1.bf16.msra.mxu1 %v5238_v55 }
 0x38d   : > { %4227 = vmatprep.subr.bf16.mxu0 %v6745_v29  ;;  %4259 = vmatprep.subr.bf16.mxu1 %v6746_v18 }
 0x390   : > { %4229 = vmatpush1.bf16.msra.mxu0 %v6747_v7  ;;  %4261 = vmatpush1.bf16.msra.mxu1 %v6748_v35 }
 0x391   : > { %4231 = vmatprep.subr.bf16.mxu0 %v6749_v48  ;;  %4263 = vmatprep.subr.bf16.mxu1 %v6750_v52 }
 0x394   : > { %4233 = vmatpush1.bf16.msra.mxu0 %v6751_v10  ;;  %4265 = vmatpush1.bf16.msra.mxu1 %v6752_v62 }
 0x395   : > { %4235 = vmatprep.subr.bf16.mxu0 %v6753_v0  ;;  %4267 = vmatprep.subr.bf16.mxu1 %v6754_v60  ;;  %v1536_v60 = vld [vmem:[%s5124_s4 + $0x8] sm:$0xc0] }
 0x398   : > { %4237 = vmatpush1.bf16.msra.mxu0 %v6755_v46  ;;  %4269 = vmatpush1.bf16.msra.mxu1 %v6756_v45  ;;  %v6766_v45 = vld [vmem:[#allocation29_spill] sm:$0xff]  ;;  %v6770_v46 = vld [vmem:[#allocation31_spill] sm:$0xff] }
 0x399   : > { %4239 = vmatprep.subr.bf16.mxu0 %v6757_v2  ;;  %4271 = vmatprep.subr.bf16.mxu1 %v6758_v6  ;;  %v6767_v2 = vld [vmem:[#allocation26_spill] sm:$0xff] }
 0x39a   : > { %v6768_v6 = vld [vmem:[#allocation30_spill] sm:$0xff] }
 0x39c   : > { %4241 = vmatpush1.bf16.msra.mxu0 %v6759_v9  ;;  %4273 = vmatpush1.bf16.msra.mxu1 %v6760_v33  ;;  %v6769_v9 = vld [vmem:[#allocation27_spill] sm:$0xff] }
 0x39d   : > { %4243 = vmatprep.subr.bf16.mxu0 %v6761_v13  ;;  %4275 = vmatprep.subr.bf16.mxu1 %v6762_v50  ;;  %v1535_v13 = vld [vmem:[%s5124_s4] sm:$0xc0] }
 0x3a0   : > { %4245 = vmatpush1.bf16.msra.mxu0 %v6763_v44  ;;  %4277 = vmatpush1.bf16.msra.mxu1 %v6764_v61 }
 0x3a1   : > { %4247 = vmatprep.subr.bf16.mxu0 %v6765_v8  ;;  %4279 = vmatprep.subr.bf16.mxu1 %v6766_v45 }
 0x3a4   : > { %4249 = vmatpush1.bf16.msra.mxu0 %v6767_v2  ;;  %4281 = vmatpush1.bf16.msra.mxu1 %v6768_v6  ;;  %v1538_v6 = vld [vmem:[%s5124_s4 + $0x18] sm:$0xc0] }
 0x3a5   : > { %4283 = vmatprep.subr.bf16.mxu0 %v6769_v9  ;;  %4315 = vmatprep.subr.bf16.mxu1 %v6770_v46  ;;  %v1537_v46 = vld [vmem:[%s5124_s4 + $0x10] sm:$0xc0] }
 0x43a   : > { %v1609_v33 = vpop.f32.mrb[12].mxu0  ;;  %v1680_v50 = vpop.f32.mrb[12].mxu1 }
 0x43b   : > { %v1835_v44 = vrot.slane %v1609_v33, 2  ;;  %v1611_v61 = vpop.f32.mrb[13].mxu0  ;;  %v1682_v0 = vpop.f32.mrb[13].mxu1  ;;  %v1837_v48 = vrot.slane %v1680_v50, 2 }
 0x43c   : > { %v1836_v8 = vrot.slane %v1611_v61, 2  ;;  %v1838_v52 = vrot.slane %v1682_v0, 2 }
 0x43d   : > { %v1851_v62 = vadd.f32 %v1835_v44, %v1535_v13  ;;  %v1853_v7 = vadd.f32 %v1837_v48, %v1537_v46  ;;  %v1539_v48 = vld [vmem:[%s5124_s4 + $0x40] sm:$0xc0] }
 0x43e   : > { %v1852_v45 = vadd.f32 %v1836_v8, %v1536_v60  ;;  %v1854_v9 = vadd.f32 %v1838_v52, %v1538_v6  ;;  %v1899_v60 = vrot.slane %v6024_v16, 2  ;;  %v6129_v8 = vpop.permute.xlu1 %1918 }
 0x43f   : > { %v3668_v10 = vmul.f32 -1.442695, %v1851_v62  ;;  %vm1920_vm11 = vcmp.eq.s32.totalorder %v6129_v8, 1  ;;  %v6772_v8 = vld [vmem:[#allocation10_spill] sm:$0xff] }
 0x440   : > { %v3670_v2 = vmul.f32 -1.442695, %v1852_v45  ;;  %v3672_v35 = vmul.f32 -1.442695, %v1854_v9 }
 0x441   : > { %4855 = vpow2.f32 %v3668_v10 }
 0x442   : > { %4857 = vpow2.f32 %v3670_v2 }
 0x443   : > { %4859 = vpow2.f32 %v3672_v35 }
 0x444   : > { %4861 = vtanh.f32 %v1853_v7 }
 0x44b   : > { %v4856_v18 = vpop.eup %4855 }
 0x44c   : > { %v4858_v33 = vpop.eup %4857  ;;  %v1865_v29 = vadd.f32 1.0, %v4856_v18  ;;  %v1540_v18 = vld [vmem:[%s5124_s4 + $0x48] sm:$0xc0] }
 0x44d   : > { %v1877_v13 = vadd.f32 1.0, %v4858_v33  ;;  %v4860_v62 = vpop.eup %4859 }
 0x44e   : > { %4863 = vrcp.f32 %v1865_v29  ;;  %v4862_v0 = vpop.eup %4861  ;;  %v1891_v2 = vadd.f32 1.0, %v4860_v62 }
 0x44f   : > { %4865 = vrcp.f32 %v1877_v13 }
 0x450   : > { %4867 = vrcp.f32 %v1891_v2 }
 0x458   : > { %v4864_v10 = vpop.eup %4863 }
 0x459   : > { %v4866_v52 = vpop.eup %4865  ;;  %v1905_v45 = vmul.f32 %v4864_v10, %v4862_v0 }
 0x45a   : > { %v1903_v6 = vmul.f32 %v4866_v52, %v1899_v60  ;;  %v1751_v46 = vpop.f32.mrb[14].mxu0  ;;  %v1822_v9 = vpop.f32.mrb[14].mxu1  ;;  %v1542_v52 = vld [vmem:[%s5124_s4 + $0x58] sm:$0xc0] }
 0x45b   : > { %v1839_v50 = vrot.slane %v1751_v46, 2  ;;  %v1753_v35 = vpop.f32.mrb[15].mxu0  ;;  %v1824_v7 = vpop.f32.mrb[15].mxu1  ;;  %v1841_v2 = vrot.slane %v1822_v9, 2 }
 0x45c   : > { %v1907_v44 = vadd.f32 %v1905_v45, %v1903_v6  ;;  %v1840_v29 = vrot.slane %v1753_v35, 2  ;;  %v1842_v10 = vrot.slane %v1824_v7, 2  ;;  %v1541_v6 = vld [vmem:[%s5124_s4 + $0x50] sm:$0xc0] }
 0x45d   : > { %v1855_v61 = vadd.f32 %v1839_v50, %v1539_v48  ;;  %v4868_v48 = vpop.eup %4867 }
 0x45e   : > { %v1856_v33 = vadd.f32 %v1840_v29, %v1540_v18  ;;  %4869 = vtanh.f32 %v1907_v44  ;;  %v1923_v13 = vrot.slane %v1907_v44, 6  ;;  %v1858_v45 = vadd.f32 %v1842_v10, %v1542_v52 }
 0x45f   : > { %v3669_v62 = vmul.f32 -1.442695, %v1855_v61  ;;  %v1857_v18 = vadd.f32 %v1841_v2, %v1541_v6 }
 0x460   : > { %v3671_v0 = vmul.f32 -1.442695, %v1856_v33  ;;  %v6135_v60 = vsel %vm1920_vm11, %v1923_v13, %v6024_v16  ;;  %v3673_v50 = vmul.f32 -1.442695, %v1858_v45 }
 0x461   : > { %4871 = vpow2.f32 %v3669_v62 }
 0x462   : > { %4873 = vpow2.f32 %v3671_v0  ;;  %v1900_v0 = vrot.slane %v6062_v12, 2 }
 0x463   : > { %4875 = vpow2.f32 %v3673_v50 }
 0x464   : > { %4877 = vtanh.f32 %v1857_v18 }
 0x468   : > { %v4870_v46 = vpop.eup %4869 }
 0x469   : > { %v1911_v35 = vmul.f32 %v4870_v46, %v4868_v48 }
 0x46b   : > { %v4872_v44 = vpop.eup %4871  ;;  %v1931_v29 = vrot.slane %v1911_v35, 6 }
 0x46c   : > { %v4874_v7 = vpop.eup %4873  ;;  %v1866_v61 = vadd.f32 1.0, %v4872_v44 }
 0x46d   : > { %v1878_v16 = vadd.f32 1.0, %v4874_v7  ;;  %v6142_v33 = vsel %vm1920_vm11, %v1931_v29, %v6031_v14  ;;  %v1937_v9 = vsel %vm1920_vm11, %v1931_v29, 0.0  ;;  %v4876_v14 = vpop.eup %4875  ;;  %v6773_v7 = vld [vmem:[#allocation7_spill] sm:$0xff] }
 0x46e   : > { %4879 = vrcp.f32 %v1866_v61  ;;  %1939 = vst [vmem:[%s5126_s5 + $0x6] sm:$0x3] %v1937_v9  ;;  %2014 = vmatmul.mubr.f32.vlgmr.msra.gmra.mrb[16].mxu0 %v6142_v33  ;;  %2085 = vmatmul.mubr.f32.vlgmr.msra.gmra.mrb[16].mxu1 %v6142_v33  ;;  %v4878_v13 = vpop.eup %4877  ;;  %v1892_v45 = vadd.f32 1.0, %v4876_v14  ;;  %v6774_v61 = vld [vmem:[#allocation12_spill] sm:$0xff]  ;;  %v6776_v9 = vld [vmem:[#allocation13_spill] sm:$0xff] }
 0x46f   : > { %4881 = vrcp.f32 %v1878_v16  ;;  %4285 = vmatpush1.bf16.msra.mxu0 %v5444_v17  ;;  %4317 = vmatpush1.bf16.msra.mxu1 %v5497_v56  ;;  %v6775_v16 = vld [vmem:[#allocation8_spill] sm:$0xff]  ;;  %v6777_v14 = vld [vmem:[#allocation9_spill] sm:$0xff] }
 0x470   : > { %4287 = vmatprep.subr.bf16.mxu0 %v5447_v19  ;;  %4319 = vmatprep.subr.bf16.mxu1 %v5506_v58  ;;  %4883 = vrcp.f32 %v1892_v45  ;;  %v6783_v45 = vld [vmem:[#allocation15_spill] sm:$0xff] }
 0x471   : > { %2155 = vmatprep.mubr.f32.mxu0 %v6692_v21  ;;  %2226 = vmatprep.mubr.f32.mxu1 %v6692_v21 }
 0x473   : > { %4289 = vmatpush1.bf16.msra.mxu0 %v5481_v42  ;;  %4321 = vmatpush1.bf16.msra.mxu1 %v5539_v22 }
 0x474   : > { %4291 = vmatprep.subr.bf16.mxu0 %v5485_v47  ;;  %4323 = vmatprep.subr.bf16.mxu1 %v5545_v36 }
 0x477   : > { %4293 = vmatpush1.bf16.msra.mxu0 %v6693_v34  ;;  %4325 = vmatpush1.bf16.msra.mxu1 %v6694_v15 }
 0x478   : > { %v4880_v62 = vpop.eup %4879  ;;  %4295 = vmatprep.subr.bf16.mxu0 %v6695_v31  ;;  %4327 = vmatprep.subr.bf16.mxu1 %v6696_v53 }
 0x479   : > { %v4882_v10 = vpop.eup %4881  ;;  %v1906_v52 = vmul.f32 %v4880_v62, %v4878_v13  ;;  %v6778_v13 = vld [vmem:[#allocation16_spill] sm:$0xff]  ;;  %v6779_v62 = vld [vmem:[#allocation11_spill] sm:$0xff] }
 0x47a   : > { %v1904_v2 = vmul.f32 %v4882_v10, %v1900_v0  ;;  %v4884_v50 = vpop.eup %4883  ;;  %v6780_v0 = vld [vmem:[#allocation17_spill] sm:$0xff]  ;;  %v6781_v10 = vld [vmem:[#allocation14_spill] sm:$0xff] }
 0x47b   : > { %4297 = vmatpush1.bf16.msra.mxu0 %v6697_v54  ;;  %4329 = vmatpush1.bf16.msra.mxu1 %v5626_v59 }
 0x47c   : > { %v1908_v6 = vadd.f32 %v1906_v52, %v1904_v2  ;;  %4299 = vmatprep.subr.bf16.mxu0 %v6698_v28  ;;  %4331 = vmatprep.subr.bf16.mxu1 %v6699_v27  ;;  %v6782_v52 = vld [vmem:[#allocation20_spill] sm:$0xff]  ;;  %v6784_v2 = vld [vmem:[#allocation21_spill] sm:$0xff] }
 0x47e   : > { %4885 = vtanh.f32 %v1908_v6  ;;  %v1924_v48 = vrot.slane %v1908_v6, 6  ;;  %v6785_v6 = vld [vmem:[#allocation18_spill] sm:$0xff] }
 0x47f   : > { %4301 = vmatpush1.bf16.msra.mxu0 %v6700_v5  ;;  %4333 = vmatpush1.bf16.msra.mxu1 %v5666_v11 }
 0x480   : > { %4303 = vmatprep.subr.bf16.mxu0 %v6701_v37  ;;  %4335 = vmatprep.subr.bf16.mxu1 %v5672_v23  ;;  %v6175_v46 = vsel %vm1920_vm11, %v1924_v48, %v6062_v12  ;;  %v6786_v48 = vld [vmem:[#allocation24_spill] sm:$0xff] }
 0x483   : > { %4305 = vmatpush1.bf16.msra.mxu0 %v5650_v39  ;;  %4337 = vmatpush1.bf16.msra.mxu1 %v5702_v1 }
 0x484   : > { %4307 = vmatprep.subr.bf16.mxu0 %v5654_v41  ;;  %4339 = vmatprep.subr.bf16.mxu1 %v5705_v4 }
 0x487   : > { %4309 = vmatpush1.bf16.msra.mxu0 %v5690_v38  ;;  %4341 = vmatpush1.bf16.msra.mxu1 %v5724_v30 }
 0x488   : > { %v4886_v18 = vpop.eup %4885  ;;  %4311 = vmatprep.subr.bf16.mxu0 %v5693_v49  ;;  %4343 = vmatprep.subr.bf16.mxu1 %v5727_v57 }
 0x489   : > { %v1912_v12 = vmul.f32 %v4886_v18, %v4884_v50  ;;  %v6787_v50 = vld [vmem:[#allocation19_spill] sm:$0xff]  ;;  %v6788_v18 = vld [vmem:[#allocation25_spill] sm:$0xff] }
 0x48b   : > { %4313 = vmatpush1.bf16.msra.mxu0 %v5720_v3  ;;  %4345 = vmatpush1.bf16.msra.mxu1 %v5739_v24  ;;  %v1932_v35 = vrot.slane %v1912_v12, 6  ;;  %v6789_v12 = vld [vmem:[#allocation22_spill] sm:$0xff] }
 0x48c   : > { %4347 = vmatprep.subr.bf16.mxu0 %v5138_v20  ;;  %4379 = vmatprep.subr.bf16.mxu1 %v5194_v40 }
 0x48d   : > { %v6192_v44 = vsel %vm1920_vm11, %v1932_v35, %v6081_v63  ;;  %v1938_v29 = vsel %vm1920_vm11, %v1932_v35, 0.0  ;;  %v6771_v63 = vld [vmem:[#allocation6_spill] sm:$0xff]  ;;  %v6790_v35 = vld [vmem:[#allocation28_spill] sm:$0xff] }
 0x48e   : > { %1940 = vst [vmem:[%s5126_s5 + $0x16] sm:$0x3] %v1938_v29  ;;  %2156 = vmatmul.mubr.f32.vlgmr.msra.gmra.mrb[18].mxu0 %v6192_v44  ;;  %2227 = vmatmul.mubr.f32.vlgmr.msra.gmra.mrb[18].mxu1 %v6192_v44  ;;  %v6791_v29 = vld [vmem:[#allocation23_spill] sm:$0xff] }
 0x48f   : > { %4349 = vmatpush1.bf16.msra.mxu0 %v5151_v25  ;;  %4381 = vmatpush1.bf16.msra.mxu1 %v5202_v43 }
 0x490   : > { %4351 = vmatprep.subr.bf16.mxu0 %v5153_v26  ;;  %4383 = vmatprep.subr.bf16.mxu1 %v5227_v51 }
 0x491   : > { %2377 = vmatprep.mubr.f32.mxu0 %v6692_v21  ;;  %2448 = vmatprep.mubr.f32.mxu1 %v6692_v21 }
 0x493   : > { %4353 = vmatpush1.bf16.msra.mxu0 %v5171_v32  ;;  %4385 = vmatpush1.bf16.msra.mxu1 %v5238_v55 }
 0x494   : > { %4355 = vmatprep.subr.bf16.mxu0 %v6771_v63  ;;  %4387 = vmatprep.subr.bf16.mxu1 %v6772_v8 }
 0x497   : > { %4357 = vmatpush1.bf16.msra.mxu0 %v6773_v7  ;;  %4389 = vmatpush1.bf16.msra.mxu1 %v6774_v61 }
 0x498   : > { %4359 = vmatprep.subr.bf16.mxu0 %v6775_v16  ;;  %4391 = vmatprep.subr.bf16.mxu1 %v6776_v9 }
 0x49b   : > { %4361 = vmatpush1.bf16.msra.mxu0 %v6777_v14  ;;  %4393 = vmatpush1.bf16.msra.mxu1 %v6778_v13  ;;  %v1944_v14 = vld [vmem:[%s5124_s4 + $0x38] sm:$0x3] }
 0x49c   : > { %4363 = vmatprep.subr.bf16.mxu0 %v6779_v62  ;;  %4395 = vmatprep.subr.bf16.mxu1 %v6780_v0 }
 0x49f   : > { %4365 = vmatpush1.bf16.msra.mxu0 %v6781_v10  ;;  %4397 = vmatpush1.bf16.msra.mxu1 %v6782_v52  ;;  %v6792_v52 = vld [vmem:[#allocation29_spill] sm:$0xff]  ;;  %v6793_v10 = vld [vmem:[#allocation26_spill] sm:$0xff] }
 0x4a0   : > { %4367 = vmatprep.subr.bf16.mxu0 %v6783_v45  ;;  %4399 = vmatprep.subr.bf16.mxu1 %v6784_v2  ;;  %v6794_v2 = vld [vmem:[#allocation30_spill] sm:$0xff] }
 0x4a3   : > { %4369 = vmatpush1.bf16.msra.mxu0 %v6785_v6  ;;  %4401 = vmatpush1.bf16.msra.mxu1 %v6786_v48  ;;  %v6795_v6 = vld [vmem:[#allocation27_spill] sm:$0xff] }
 0x4a4   : > { %4371 = vmatprep.subr.bf16.mxu0 %v6787_v50  ;;  %4403 = vmatprep.subr.bf16.mxu1 %v6788_v18  ;;  %v6796_v48 = vld [vmem:[#allocation31_spill] sm:$0xff]  ;;  %v1941_v50 = vld [vmem:[%s5124_s4 + $0x20] sm:$0x3] }
 0x4a5   : > { %v1942_v18 = vld [vmem:[%s5124_s4 + $0x28] sm:$0x3] }
 0x4a7   : > { %4373 = vmatpush1.bf16.msra.mxu0 %v6789_v12  ;;  %4405 = vmatpush1.bf16.msra.mxu1 %v6790_v35 }
 0x4a8   : > { %4375 = vmatprep.subr.bf16.mxu0 %v6791_v29  ;;  %4407 = vmatprep.subr.bf16.mxu1 %v6792_v52 }
 0x4ab   : > { %4377 = vmatpush1.bf16.msra.mxu0 %v6793_v10  ;;  %4409 = vmatpush1.bf16.msra.mxu1 %v6794_v2  ;;  %v1943_v2 = vld [vmem:[%s5124_s4 + $0x30] sm:$0x3] }
 0x4ac   : > { %4411 = vmatprep.subr.bf16.mxu0 %v6795_v6  ;;  %4443 = vmatprep.subr.bf16.mxu1 %v6796_v48 }
 0x541   : > { %v2015_v45 = vpop.f32.mrb[16].mxu0  ;;  %v2086_v12 = vpop.f32.mrb[16].mxu1 }
 0x542   : > { %v2233_v0 = vadd.f32 %v2015_v45, %v1941_v50  ;;  %v2017_v35 = vpop.f32.mrb[17].mxu0  ;;  %v2088_v62 = vpop.f32.mrb[17].mxu1  ;;  %v2235_v6 = vadd.f32 %v2086_v12, %v1943_v2  ;;  %v1946_v2 = vld [vmem:[%s5124_s4 + $0x68] sm:$0x3] }
 0x543   : > { %v2234_v29 = vadd.f32 %v2017_v35, %v1942_v18  ;;  %v2236_v10 = vadd.f32 %v2088_v62, %v1944_v14  ;;  %v1945_v62 = vld [vmem:[%s5124_s4 + $0x60] sm:$0x3] }
 0x544   : > { %v3674_v13 = vmul.f32 -1.442695, %v2233_v0 }
 0x545   : > { %v3676_v52 = vmul.f32 -1.442695, %v2234_v29  ;;  %v3678_v9 = vmul.f32 -1.442695, %v2236_v10  ;;  %v6239_v10 = vpop.permute.xlu0 %2294 }
 0x546   : > { %4887 = vpow2.f32 %v3674_v13  ;;  %vm2296_vm12 = vcmp.eq.s32.totalorder %v6239_v10, 1  ;;  %v6798_v10 = vld [vmem:[#allocation7_spill] sm:$0xff] }
 0x547   : > { %4889 = vpow2.f32 %v3676_v52 }
 0x548   : > { %4891 = vpow2.f32 %v3678_v9 }
 0x549   : > { %4893 = vtanh.f32 %v2235_v6 }
 0x550   : > { %v4888_v16 = vpop.eup %4887 }
 0x551   : > { %v4890_v48 = vpop.eup %4889  ;;  %v2247_v61 = vadd.f32 1.0, %v4888_v16 }
 0x552   : > { %v2259_v45 = vadd.f32 1.0, %v4890_v48  ;;  %v4892_v50 = vpop.eup %4891 }
 0x553   : > { %4895 = vrcp.f32 %v2247_v61  ;;  %v4894_v0 = vpop.eup %4893  ;;  %v2273_v52 = vadd.f32 1.0, %v4892_v50 }
 0x554   : > { %4897 = vrcp.f32 %v2259_v45 }
 0x555   : > { %4899 = vrcp.f32 %v2273_v52 }
 0x55d   : > { %v4896_v18 = vpop.eup %4895 }
 0x55e   : > { %v4898_v13 = vpop.eup %4897  ;;  %v2281_v35 = vmul.f32 %v4896_v18, %v4894_v0  ;;  %v1948_v18 = vld [vmem:[%s5124_s4 + $0x78] sm:$0x3] }
 0x55f   : > { %v2279_v14 = vmul.f32 %v4898_v13, %v6135_v60 }
 0x561   : > { %v2283_v12 = vadd.f32 %v2281_v35, %v2279_v14  ;;  %v2157_v16 = vpop.f32.mrb[18].mxu0  ;;  %v2228_v9 = vpop.f32.mrb[18].mxu1  ;;  %v1947_v35 = vld [vmem:[%s5124_s4 + $0x70] sm:$0x3] }
 0x562   : > { %v2237_v61 = vadd.f32 %v2157_v16, %v1945_v62  ;;  %v2159_v6 = vpop.f32.mrb[19].mxu0  ;;  %v2230_v48 = vpop.f32.mrb[19].mxu1  ;;  %v2239_v16 = vadd.f32 %v2228_v9, %v1947_v35 }
 0x563   : > { %v6246_v29 = vsel %vm2296_vm12, %v2283_v12, %v6135_v60  ;;  %v2238_v45 = vadd.f32 %v2159_v6, %v1946_v2  ;;  %4901 = vtanh.f32 %v2283_v12  ;;  %v2240_v13 = vadd.f32 %v2230_v48, %v1948_v18  ;;  %v4900_v14 = vpop.eup %4899 }
 0x564   : > { %v3675_v50 = vmul.f32 -1.442695, %v2237_v61 }
 0x565   : > { %v3677_v0 = vmul.f32 -1.442695, %v2238_v45  ;;  %v3679_v62 = vmul.f32 -1.442695, %v2240_v13 }
 0x566   : > { %4903 = vpow2.f32 %v3675_v50 }
 0x567   : > { %4905 = vpow2.f32 %v3677_v0 }
 0x568   : > { %4907 = vpow2.f32 %v3679_v62  ;;  %v6799_v62 = vld [vmem:[#allocation12_spill] sm:$0xff] }
 0x569   : > { %4909 = vtanh.f32 %v2239_v16  ;;  %v6800_v16 = vld [vmem:[#allocation8_spill] sm:$0xff] }
 0x56d   : > { %v4902_v52 = vpop.eup %4901 }
 0x56e   : > { %v2287_v7 = vmul.f32 %v4902_v52, %v4900_v14 }
 0x570   : > { %v4904_v8 = vpop.eup %4903  ;;  %v6253_v60 = vsel %vm2296_vm12, %v2287_v7, %v6142_v33  ;;  %v2301_v2 = vsel %vm2296_vm12, %v2287_v7, 0.0 }
 0x571   : > { %v4906_v12 = vpop.eup %4905  ;;  %v2248_v61 = vadd.f32 1.0, %v4904_v8  ;;  %2303 = vst [vmem:[%s5126_s5 + $0x8] sm:$0x3] %v2301_v2  ;;  %2378 = vmatmul.mubr.f32.vlgmr.msra.gmra.mrb[20].mxu0 %v6253_v60  ;;  %2449 = vmatmul.mubr.f32.vlgmr.msra.gmra.mrb[20].mxu1 %v6253_v60  ;;  %v6801_v2 = vld [vmem:[#allocation13_spill] sm:$0xff] }
 0x572   : > { %v2260_v9 = vadd.f32 1.0, %v4906_v12  ;;  %4413 = vmatpush1.bf16.msra.mxu0 %v5444_v17  ;;  %4445 = vmatpush1.bf16.msra.mxu1 %v5497_v56  ;;  %v4908_v33 = vpop.eup %4907  ;;  %v6802_v12 = vld [vmem:[#allocation9_spill] sm:$0xff] }
 0x573   : > { %4911 = vrcp.f32 %v2248_v61  ;;  %4415 = vmatprep.subr.bf16.mxu0 %v5447_v19  ;;  %4447 = vmatprep.subr.bf16.mxu1 %v5506_v58  ;;  %v4910_v8 = vpop.eup %4909  ;;  %v2274_v45 = vadd.f32 1.0, %v4908_v33  ;;  %v6803_v61 = vld [vmem:[#allocation16_spill] sm:$0xff]  ;;  %v6805_v33 = vld [vmem:[#allocation17_spill] sm:$0xff] }
 0x574   : > { %4913 = vrcp.f32 %v2260_v9  ;;  %2519 = vmatprep.mubr.f32.mxu0 %v6692_v21  ;;  %2590 = vmatprep.mubr.f32.mxu1 %v6692_v21  ;;  %v6804_v9 = vld [vmem:[#allocation11_spill] sm:$0xff] }
 0x575   : > { %4915 = vrcp.f32 %v2274_v45  ;;  %v6810_v45 = vld [vmem:[#allocation18_spill] sm:$0xff] }
 0x576   : > { %4417 = vmatpush1.bf16.msra.mxu0 %v5481_v42  ;;  %4449 = vmatpush1.bf16.msra.mxu1 %v5539_v22 }
 0x577   : > { %4419 = vmatprep.subr.bf16.mxu0 %v5485_v47  ;;  %4451 = vmatprep.subr.bf16.mxu1 %v5545_v36 }
 0x57a   : > { %4421 = vmatpush1.bf16.msra.mxu0 %v6693_v34  ;;  %4453 = vmatpush1.bf16.msra.mxu1 %v6694_v15 }
 0x57b   : > { %4423 = vmatprep.subr.bf16.mxu0 %v6695_v31  ;;  %4455 = vmatprep.subr.bf16.mxu1 %v6696_v53 }
 0x57d   : > { %v4912_v7 = vpop.eup %4911 }
 0x57e   : > { %v4914_v6 = vpop.eup %4913  ;;  %v2282_v48 = vmul.f32 %v4912_v7, %v4910_v8  ;;  %4425 = vmatpush1.bf16.msra.mxu0 %v6697_v54  ;;  %4457 = vmatpush1.bf16.msra.mxu1 %v5626_v59  ;;  %v6806_v8 = vld [vmem:[#allocation14_spill] sm:$0xff]  ;;  %v6807_v7 = vld [vmem:[#allocation20_spill] sm:$0xff] }
 0x57f   : > { %v2280_v50 = vmul.f32 %v4914_v6, %v6175_v46  ;;  %4427 = vmatprep.subr.bf16.mxu0 %v6698_v28  ;;  %4459 = vmatprep.subr.bf16.mxu1 %v6699_v27  ;;  %v6808_v6 = vld [vmem:[#allocation15_spill] sm:$0xff] }
 0x581   : > { %v2284_v0 = vadd.f32 %v2282_v48, %v2280_v50  ;;  %v6809_v48 = vld [vmem:[#allocation21_spill] sm:$0xff]  ;;  %v6811_v50 = vld [vmem:[#allocation24_spill] sm:$0xff] }
 0x582   : > { %4429 = vmatpush1.bf16.msra.mxu0 %v6700_v5  ;;  %4461 = vmatpush1.bf16.msra.mxu1 %v5666_v11 }
 0x583   : > { %v6284_v18 = vsel %vm2296_vm12, %v2284_v0, %v6175_v46  ;;  %4431 = vmatprep.subr.bf16.mxu0 %v6701_v37  ;;  %4463 = vmatprep.subr.bf16.mxu1 %v5672_v23  ;;  %4917 = vtanh.f32 %v2284_v0  ;;  %v4916_v46 = vpop.eup %4915  ;;  %v6812_v0 = vld [vmem:[#allocation19_spill] sm:$0xff] }
 0x586   : > { %4433 = vmatpush1.bf16.msra.mxu0 %v5650_v39  ;;  %4465 = vmatpush1.bf16.msra.mxu1 %v5702_v1 }
 0x587   : > { %4435 = vmatprep.subr.bf16.mxu0 %v5654_v41  ;;  %4467 = vmatprep.subr.bf16.mxu1 %v5705_v4 }
 0x58a   : > { %4437 = vmatpush1.bf16.msra.mxu0 %v5690_v38  ;;  %4469 = vmatpush1.bf16.msra.mxu1 %v5724_v30 }
 0x58b   : > { %4439 = vmatprep.subr.bf16.mxu0 %v5693_v49  ;;  %4471 = vmatprep.subr.bf16.mxu1 %v5727_v57 }
 0x58d   : > { %v4918_v13 = vpop.eup %4917 }
 0x58e   : > { %4441 = vmatpush1.bf16.msra.mxu0 %v5720_v3  ;;  %4473 = vmatpush1.bf16.msra.mxu1 %v5739_v24  ;;  %v2288_v35 = vmul.f32 %v4918_v13, %v4916_v46  ;;  %v6813_v46 = vld [vmem:[#allocation25_spill] sm:$0xff]  ;;  %v6814_v13 = vld [vmem:[#allocation22_spill] sm:$0xff] }
 0x58f   : > { %4475 = vmatprep.subr.bf16.mxu0 %v5138_v20  ;;  %4507 = vmatprep.subr.bf16.mxu1 %v5194_v40 }
 0x590   : > { %v6303_v14 = vsel %vm2296_vm12, %v2288_v35, %v6192_v44  ;;  %v2302_v52 = vsel %vm2296_vm12, %v2288_v35, 0.0  ;;  %v6797_v44 = vld [vmem:[#allocation10_spill] sm:$0xff]  ;;  %v6815_v35 = vld [vmem:[#allocation28_spill] sm:$0xff] }
 0x591   : > { %2304 = vst [vmem:[%s5126_s5 + $0x18] sm:$0x3] %v2302_v52  ;;  %2520 = vmatmul.mubr.f32.vlgmr.msra.gmra.mrb[22].mxu0 %v6303_v14  ;;  %2591 = vmatmul.mubr.f32.vlgmr.msra.gmra.mrb[22].mxu1 %v6303_v14  ;;  %v6816_v52 = vld [vmem:[#allocation23_spill] sm:$0xff] }
 0x592   : > { %4477 = vmatpush1.bf16.msra.mxu0 %v5151_v25  ;;  %4509 = vmatpush1.bf16.msra.mxu1 %v5202_v43 }
 0x593   : > { %4479 = vmatprep.subr.bf16.mxu0 %v5153_v26  ;;  %4511 = vmatprep.subr.bf16.mxu1 %v5227_v51 }
 0x594   : > { %2783 = vmatprep.mubr.f32.mxu0 %v6692_v21  ;;  %2854 = vmatprep.mubr.f32.mxu1 %v6692_v21 }
 0x596   : > { %4481 = vmatpush1.bf16.msra.mxu0 %v5171_v32  ;;  %4513 = vmatpush1.bf16.msra.mxu1 %v5238_v55 }
 0x597   : > { %4483 = vmatprep.subr.bf16.mxu0 %v6771_v63  ;;  %4515 = vmatprep.subr.bf16.mxu1 %v6797_v44 }
 0x59a   : > { %4485 = vmatpush1.bf16.msra.mxu0 %v6798_v10  ;;  %4517 = vmatpush1.bf16.msra.mxu1 %v6799_v62 }
 0x59b   : > { %4487 = vmatprep.subr.bf16.mxu0 %v6800_v16  ;;  %4519 = vmatprep.subr.bf16.mxu1 %v6801_v2 }
 0x59e   : > { %4489 = vmatpush1.bf16.msra.mxu0 %v6802_v12  ;;  %4521 = vmatpush1.bf16.msra.mxu1 %v6803_v61 }
 0x59f   : > { %4491 = vmatprep.subr.bf16.mxu0 %v6804_v9  ;;  %4523 = vmatprep.subr.bf16.mxu1 %v6805_v33  ;;  %v2306_v33 = vld [vmem:[%s5124_s4 + $0x28] sm:$0xc] }
 0x5a2   : > { %4493 = vmatpush1.bf16.msra.mxu0 %v6806_v8  ;;  %4525 = vmatpush1.bf16.msra.mxu1 %v6807_v7  ;;  %v6817_v7 = vld [vmem:[#allocation29_spill] sm:$0xff]  ;;  %v6821_v8 = vld [vmem:[#allocation31_spill] sm:$0xff] }
 0x5a3   : > { %4495 = vmatprep.subr.bf16.mxu0 %v6808_v6  ;;  %4527 = vmatprep.subr.bf16.mxu1 %v6809_v48  ;;  %v6818_v6 = vld [vmem:[#allocation26_spill] sm:$0xff] }
 0x5a4   : > { %v6819_v48 = vld [vmem:[#allocation30_spill] sm:$0xff] }
 0x5a6   : > { %4497 = vmatpush1.bf16.msra.mxu0 %v6810_v45  ;;  %4529 = vmatpush1.bf16.msra.mxu1 %v6811_v50  ;;  %v6820_v45 = vld [vmem:[#allocation27_spill] sm:$0xff] }
 0x5a7   : > { %4499 = vmatprep.subr.bf16.mxu0 %v6812_v0  ;;  %4531 = vmatprep.subr.bf16.mxu1 %v6813_v46  ;;  %v2305_v0 = vld [vmem:[%s5124_s4 + $0x20] sm:$0xc] }
 0x5aa   : > { %4501 = vmatpush1.bf16.msra.mxu0 %v6814_v13  ;;  %4533 = vmatpush1.bf16.msra.mxu1 %v6815_v35 }
 0x5ab   : > { %4503 = vmatprep.subr.bf16.mxu0 %v6816_v52  ;;  %4535 = vmatprep.subr.bf16.mxu1 %v6817_v7 }
 0x5ae   : > { %4505 = vmatpush1.bf16.msra.mxu0 %v6818_v6  ;;  %4537 = vmatpush1.bf16.msra.mxu1 %v6819_v48  ;;  %v2308_v48 = vld [vmem:[%s5124_s4 + $0x38] sm:$0xc] }
 0x5af   : > { %4539 = vmatprep.subr.bf16.mxu0 %v6820_v45  ;;  %4571 = vmatprep.subr.bf16.mxu1 %v6821_v8  ;;  %v2307_v8 = vld [vmem:[%s5124_s4 + $0x30] sm:$0xc] }
 0x644   : > { %v2379_v50 = vpop.f32.mrb[20].mxu0  ;;  %v2450_v46 = vpop.f32.mrb[20].mxu1 }
 0x645   : > { %v2605_v13 = vrot.slane %v2379_v50, 6  ;;  %v2381_v35 = vpop.f32.mrb[21].mxu0  ;;  %v2452_v9 = vpop.f32.mrb[21].mxu1  ;;  %v2607_v16 = vrot.slane %v2450_v46, 6 }
 0x646   : > { %v2606_v52 = vrot.slane %v2381_v35, 6  ;;  %v2608_v2 = vrot.slane %v2452_v9, 6 }
 0x647   : > { %v2621_v61 = vadd.f32 %v2605_v13, %v2305_v0  ;;  %v2623_v10 = vadd.f32 %v2607_v16, %v2307_v8  ;;  %v2309_v16 = vld [vmem:[%s5124_s4 + $0x60] sm:$0xc] }
 0x648   : > { %v2622_v7 = vadd.f32 %v2606_v52, %v2306_v33  ;;  %v2624_v45 = vadd.f32 %v2608_v2, %v2308_v48  ;;  %v2669_v33 = vrot.slane %v6246_v29, 6  ;;  %v6351_v52 = vpop.permute.xlu1 %2688 }
 0x649   : > { %v3680_v12 = vmul.f32 -1.442695, %v2621_v61  ;;  %vm2690_vm13 = vcmp.eq.s32.totalorder %v6351_v52, 1  ;;  %v6829_v52 = vld [vmem:[#allocation16_spill] sm:$0xff] }
 0x64a   : > { %v3682_v6 = vmul.f32 -1.442695, %v2622_v7  ;;  %v3684_v62 = vmul.f32 -1.442695, %v2624_v45 }
 0x64b   : > { %4919 = vpow2.f32 %v3680_v12 }
 0x64c   : > { %4921 = vpow2.f32 %v3682_v6 }
 0x64d   : > { %4923 = vpow2.f32 %v3684_v62 }
 0x64e   : > { %4925 = vtanh.f32 %v2623_v10 }
 0x655   : > { %v4920_v44 = vpop.eup %4919 }
 0x656   : > { %v4922_v50 = vpop.eup %4921  ;;  %v2635_v63 = vadd.f32 1.0, %v4920_v44  ;;  %v2310_v44 = vld [vmem:[%s5124_s4 + $0x68] sm:$0xc] }
 0x657   : > { %v2647_v0 = vadd.f32 1.0, %v4922_v50  ;;  %v4924_v61 = vpop.eup %4923 }
 0x658   : > { %4927 = vrcp.f32 %v2635_v63  ;;  %v4926_v9 = vpop.eup %4925  ;;  %v2661_v6 = vadd.f32 1.0, %v4924_v61 }
 0x659   : > { %4929 = vrcp.f32 %v2647_v0 }
 0x65a   : > { %4931 = vrcp.f32 %v2661_v6 }
 0x662   : > { %v4928_v12 = vpop.eup %4927 }
 0x663   : > { %v4930_v2 = vpop.eup %4929  ;;  %v2675_v7 = vmul.f32 %v4928_v12, %v4926_v9 }
 0x664   : > { %v2673_v48 = vmul.f32 %v4930_v2, %v2669_v33  ;;  %v2521_v8 = vpop.f32.mrb[22].mxu0  ;;  %v2592_v45 = vpop.f32.mrb[22].mxu1  ;;  %v2312_v2 = vld [vmem:[%s5124_s4 + $0x78] sm:$0xc] }
 0x665   : > { %v2609_v46 = vrot.slane %v2521_v8, 6  ;;  %v2523_v62 = vpop.f32.mrb[23].mxu0  ;;  %v2594_v10 = vpop.f32.mrb[23].mxu1  ;;  %v2611_v6 = vrot.slane %v2592_v45, 6 }
 0x666   : > { %v2677_v13 = vadd.f32 %v2675_v7, %v2673_v48  ;;  %v2610_v63 = vrot.slane %v2523_v62, 6  ;;  %v2612_v12 = vrot.slane %v2594_v10, 6  ;;  %v2311_v48 = vld [vmem:[%s5124_s4 + $0x70] sm:$0xc] }
 0x667   : > { %v2625_v35 = vadd.f32 %v2609_v46, %v2309_v16  ;;  %v4932_v16 = vpop.eup %4931 }
 0x668   : > { %v2693_v50 = vrot.slane %v2677_v13, 2  ;;  %v2626_v0 = vadd.f32 %v2610_v63, %v2310_v44  ;;  %4933 = vtanh.f32 %v2677_v13  ;;  %v2628_v7 = vadd.f32 %v2612_v12, %v2312_v2 }
 0x669   : > { %v3681_v61 = vmul.f32 -1.442695, %v2625_v35  ;;  %v2627_v44 = vadd.f32 %v2611_v6, %v2311_v48 }
 0x66a   : > { %v3683_v9 = vmul.f32 -1.442695, %v2626_v0  ;;  %v6357_v33 = vsel %vm2690_vm13, %v2693_v50, %v6246_v29  ;;  %v3685_v46 = vmul.f32 -1.442695, %v2628_v7 }
 0x66b   : > { %4935 = vpow2.f32 %v3681_v61 }
 0x66c   : > { %4937 = vpow2.f32 %v3683_v9  ;;  %v2670_v9 = vrot.slane %v6284_v18, 6 }
 0x66d   : > { %4939 = vpow2.f32 %v3685_v46 }
 0x66e   : > { %4941 = vtanh.f32 %v2627_v44 }
 0x672   : > { %v4934_v8 = vpop.eup %4933 }
 0x673   : > { %v2681_v62 = vmul.f32 %v4934_v8, %v4932_v16 }
 0x675   : > { %v4936_v13 = vpop.eup %4935  ;;  %v2701_v63 = vrot.slane %v2681_v62, 2 }
 0x676   : > { %v4938_v10 = vpop.eup %4937  ;;  %v2636_v35 = vadd.f32 1.0, %v4936_v13 }
 0x677   : > { %v2648_v29 = vadd.f32 1.0, %v4938_v10  ;;  %v6364_v50 = vsel %vm2690_vm13, %v2701_v63, %v6253_v60  ;;  %v2707_v45 = vsel %vm2690_vm13, %v2701_v63, 0.0  ;;  %v4940_v60 = vpop.eup %4939  ;;  %v6830_v10 = vld [vmem:[#allocation11_spill] sm:$0xff] }
 0x678   : > { %4943 = vrcp.f32 %v2636_v35  ;;  %2709 = vst [vmem:[%s5126_s5 + $0xa] sm:$0x3] %v2707_v45  ;;  %2784 = vmatmul.mubr.f32.vlgmr.msra.gmra.mrb[24].mxu0 %v6364_v50  ;;  %2855 = vmatmul.mubr.f32.vlgmr.msra.gmra.mrb[24].mxu1 %v6364_v50  ;;  %v4942_v0 = vpop.eup %4941  ;;  %v2662_v7 = vadd.f32 1.0, %v4940_v60  ;;  %v6833_v35 = vld [vmem:[#allocation20_spill] sm:$0xff]  ;;  %v6835_v45 = vld [vmem:[#allocation21_spill] sm:$0xff]  ;;  %v6836_v60 = vld [vmem:[#allocation18_spill] sm:$0xff] }
 0x679   : > { %4945 = vrcp.f32 %v2648_v29  ;;  %4541 = vmatpush1.bf16.msra.mxu0 %v5444_v17  ;;  %4573 = vmatpush1.bf16.msra.mxu1 %v5497_v56  ;;  %v6834_v29 = vld [vmem:[#allocation15_spill] sm:$0xff] }
 0x67a   : > { %4543 = vmatprep.subr.bf16.mxu0 %v5447_v19  ;;  %4575 = vmatprep.subr.bf16.mxu1 %v5506_v58  ;;  %4947 = vrcp.f32 %v2662_v7  ;;  %v6842_v7 = vld [vmem:[#allocation23_spill] sm:$0xff] }
 0x67b   : > { %2925 = vmatprep.mubr.f32.mxu0 %v6692_v21  ;;  %2996 = vmatprep.mubr.f32.mxu1 %v6692_v21 }
 0x67d   : > { %4545 = vmatpush1.bf16.msra.mxu0 %v5481_v42  ;;  %4577 = vmatpush1.bf16.msra.mxu1 %v5539_v22 }
 0x67e   : > { %4547 = vmatprep.subr.bf16.mxu0 %v5485_v47  ;;  %4579 = vmatprep.subr.bf16.mxu1 %v5545_v36 }
 0x681   : > { %4549 = vmatpush1.bf16.msra.mxu0 %v6693_v34  ;;  %4581 = vmatpush1.bf16.msra.mxu1 %v6694_v15 }
 0x682   : > { %v4944_v61 = vpop.eup %4943  ;;  %4551 = vmatprep.subr.bf16.mxu0 %v6695_v31  ;;  %4583 = vmatprep.subr.bf16.mxu1 %v6696_v53 }
 0x683   : > { %v4946_v12 = vpop.eup %4945  ;;  %v2676_v2 = vmul.f32 %v4944_v61, %v4942_v0  ;;  %v6837_v0 = vld [vmem:[#allocation24_spill] sm:$0xff]  ;;  %v6838_v61 = vld [vmem:[#allocation19_spill] sm:$0xff] }
 0x684   : > { %v2674_v6 = vmul.f32 %v4946_v12, %v2670_v9  ;;  %v4948_v46 = vpop.eup %4947  ;;  %v6839_v9 = vld [vmem:[#allocation25_spill] sm:$0xff]  ;;  %v6840_v12 = vld [vmem:[#allocation22_spill] sm:$0xff] }
 0x685   : > { %4553 = vmatpush1.bf16.msra.mxu0 %v6697_v54  ;;  %4585 = vmatpush1.bf16.msra.mxu1 %v5626_v59 }
 0x686   : > { %v2678_v48 = vadd.f32 %v2676_v2, %v2674_v6  ;;  %4555 = vmatprep.subr.bf16.mxu0 %v6698_v28  ;;  %4587 = vmatprep.subr.bf16.mxu1 %v6699_v27  ;;  %v6841_v2 = vld [vmem:[#allocation28_spill] sm:$0xff]  ;;  %v6843_v6 = vld [vmem:[#allocation29_spill] sm:$0xff] }
 0x688   : > { %v2694_v16 = vrot.slane %v2678_v48, 2  ;;  %4949 = vtanh.f32 %v2678_v48  ;;  %v6844_v48 = vld [vmem:[#allocation26_spill] sm:$0xff] }
 0x689   : > { %4557 = vmatpush1.bf16.msra.mxu0 %v6700_v5  ;;  %4589 = vmatpush1.bf16.msra.mxu1 %v5666_v11 }
 0x68a   : > { %4559 = vmatprep.subr.bf16.mxu0 %v6701_v37  ;;  %4591 = vmatprep.subr.bf16.mxu1 %v5672_v23  ;;  %v6397_v8 = vsel %vm2690_vm13, %v2694_v16, %v6284_v18  ;;  %v6845_v16 = vld [vmem:[#allocation30_spill] sm:$0xff] }
 0x68d   : > { %4561 = vmatpush1.bf16.msra.mxu0 %v5650_v39  ;;  %4593 = vmatpush1.bf16.msra.mxu1 %v5702_v1 }
 0x68e   : > { %4563 = vmatprep.subr.bf16.mxu0 %v5654_v41  ;;  %4595 = vmatprep.subr.bf16.mxu1 %v5705_v4 }
 0x691   : > { %4565 = vmatpush1.bf16.msra.mxu0 %v5690_v38  ;;  %4597 = vmatpush1.bf16.msra.mxu1 %v5724_v30 }
 0x692   : > { %v4950_v44 = vpop.eup %4949  ;;  %4567 = vmatprep.subr.bf16.mxu0 %v5693_v49  ;;  %4599 = vmatprep.subr.bf16.mxu1 %v5727_v57 }
 0x693   : > { %v2682_v18 = vmul.f32 %v4950_v44, %v4948_v46  ;;  %v6846_v46 = vld [vmem:[#allocation27_spill] sm:$0xff] }
 0x694   : > { %v6847_v44 = vld [vmem:[#allocation31_spill] sm:$0xff] }
 0x695   : > { %4569 = vmatpush1.bf16.msra.mxu0 %v5720_v3  ;;  %4601 = vmatpush1.bf16.msra.mxu1 %v5739_v24  ;;  %v2702_v62 = vrot.slane %v2682_v18, 2  ;;  %v2711_v18 = vld [vmem:[%s5124_s4 + $0x20] sm:$0x30] }
 0x696   : > { %4603 = vmatprep.subr.bf16.mxu0 %v5138_v20  ;;  %4635 = vmatprep.subr.bf16.mxu1 %v5194_v40  ;;  %v6822_v20 = vld [vmem:[#allocation6_spill] sm:$0xff] }
 0x697   : > { %v6414_v13 = vsel %vm2690_vm13, %v2702_v62, %v6303_v14  ;;  %v2708_v63 = vsel %vm2690_vm13, %v2702_v62, 0.0  ;;  %v6823_v40 = vld [vmem:[#allocation10_spill] sm:$0xff]  ;;  %v6824_v14 = vld [vmem:[#allocation7_spill] sm:$0xff] }
 0x698   : > { %2710 = vst [vmem:[%s5126_s5 + $0x1a] sm:$0x3] %v2708_v63  ;;  %2926 = vmatmul.mubr.f32.vlgmr.msra.gmra.mrb[26].mxu0 %v6414_v13  ;;  %2997 = vmatmul.mubr.f32.vlgmr.msra.gmra.mrb[26].mxu1 %v6414_v13 }
 0x699   : > { %4605 = vmatpush1.bf16.msra.mxu0 %v5151_v25  ;;  %4637 = vmatpush1.bf16.msra.mxu1 %v5202_v43  ;;  %v6825_v25 = vld [vmem:[#allocation12_spill] sm:$0xff] }
 0x69a   : > { %4607 = vmatprep.subr.bf16.mxu0 %v5153_v26  ;;  %4639 = vmatprep.subr.bf16.mxu1 %v5227_v51  ;;  %v6826_v43 = vld [vmem:[#allocation8_spill] sm:$0xff]  ;;  %v6827_v26 = vld [vmem:[#allocation13_spill] sm:$0xff] }
 0x69b   : > { %3189 = vmatprep.mubr.f32.mxu0 %v6692_v21  ;;  %3260 = vmatprep.mubr.f32.mxu1 %v6692_v21  ;;  %v6828_v51 = vld [vmem:[#allocation9_spill] sm:$0xff] }
 0x69d   : > { %4609 = vmatpush1.bf16.msra.mxu0 %v5171_v32  ;;  %4641 = vmatpush1.bf16.msra.mxu1 %v5238_v55  ;;  %v6831_v32 = vld [vmem:[#allocation17_spill] sm:$0xff]  ;;  %v6832_v55 = vld [vmem:[#allocation14_spill] sm:$0xff] }
 0x69e   : > { %4611 = vmatprep.subr.bf16.mxu0 %v6822_v20  ;;  %4643 = vmatprep.subr.bf16.mxu1 %v6823_v40  ;;  %v2712_v40 = vld [vmem:[%s5124_s4 + $0x28] sm:$0x30] }
 0x6a1   : > { %4613 = vmatpush1.bf16.msra.mxu0 %v6824_v14  ;;  %4645 = vmatpush1.bf16.msra.mxu1 %v6825_v25 }
 0x6a2   : > { %4615 = vmatprep.subr.bf16.mxu0 %v6826_v43  ;;  %4647 = vmatprep.subr.bf16.mxu1 %v6827_v26 }
 0x6a5   : > { %4617 = vmatpush1.bf16.msra.mxu0 %v6828_v51  ;;  %4649 = vmatpush1.bf16.msra.mxu1 %v6829_v52 }
 0x6a6   : > { %4619 = vmatprep.subr.bf16.mxu0 %v6830_v10  ;;  %4651 = vmatprep.subr.bf16.mxu1 %v6831_v32 }
 0x6a9   : > { %4621 = vmatpush1.bf16.msra.mxu0 %v6832_v55  ;;  %4653 = vmatpush1.bf16.msra.mxu1 %v6833_v35  ;;  %v2714_v55 = vld [vmem:[%s5124_s4 + $0x38] sm:$0x30] }
 0x6aa   : > { %4623 = vmatprep.subr.bf16.mxu0 %v6834_v29  ;;  %4655 = vmatprep.subr.bf16.mxu1 %v6835_v45  ;;  %v2713_v45 = vld [vmem:[%s5124_s4 + $0x30] sm:$0x30] }
 0x6ad   : > { %4625 = vmatpush1.bf16.msra.mxu0 %v6836_v60  ;;  %4657 = vmatpush1.bf16.msra.mxu1 %v6837_v0 }
 0x6ae   : > { %4627 = vmatprep.subr.bf16.mxu0 %v6838_v61  ;;  %4659 = vmatprep.subr.bf16.mxu1 %v6839_v9 }
 0x6b1   : > { %4629 = vmatpush1.bf16.msra.mxu0 %v6840_v12  ;;  %4661 = vmatpush1.bf16.msra.mxu1 %v6841_v2 }
 0x6b2   : > { %4631 = vmatprep.subr.bf16.mxu0 %v6842_v7  ;;  %4663 = vmatprep.subr.bf16.mxu1 %v6843_v6 }
 0x6b5   : > { %4633 = vmatpush1.bf16.msra.mxu0 %v6844_v48  ;;  %4665 = vmatpush1.bf16.msra.mxu1 %v6845_v16  ;;  %v3075_v16 = vrot.slane %v6357_v33, 4 }
 0x6b6   : > { %4667 = vmatprep.subr.bf16.mxu0 %v6846_v46  ;;  %4699 = vmatprep.subr.bf16.mxu1 %v6847_v44 }
 0x74b   : > { %v2785_v62 = vpop.f32.mrb[24].mxu0  ;;  %v2856_v63 = vpop.f32.mrb[24].mxu1 }
 0x74c   : > { %v3011_v20 = vrot.slane %v2785_v62, 4  ;;  %v2787_v14 = vpop.f32.mrb[25].mxu0  ;;  %v2858_v25 = vpop.f32.mrb[25].mxu1  ;;  %v3013_v29 = vrot.slane %v2856_v63, 4  ;;  %v2715_v63 = vld [vmem:[%s5124_s4 + $0x60] sm:$0x30] }
 0x74d   : > { %v3012_v43 = vrot.slane %v2787_v14, 4  ;;  %v3014_v32 = vrot.slane %v2858_v25, 4  ;;  %v2716_v25 = vld [vmem:[%s5124_s4 + $0x68] sm:$0x30] }
 0x74e   : > { %v3027_v26 = vadd.f32 %v3011_v20, %v2711_v18  ;;  %v3029_v0 = vadd.f32 %v3013_v29, %v2713_v45 }
 0x74f   : > { %v3028_v51 = vadd.f32 %v3012_v43, %v2712_v40  ;;  %v3030_v35 = vadd.f32 %v3014_v32, %v2714_v55 }
 0x750   : > { %v3686_v52 = vmul.f32 -1.442695, %v3027_v26 }
 0x751   : > { %v3688_v10 = vmul.f32 -1.442695, %v3028_v51  ;;  %v3690_v60 = vmul.f32 -1.442695, %v3030_v35  ;;  %v6462_v51 = vpop.permute.xlu0 %3094 }
 0x752   : > { %4951 = vpow2.f32 %v3686_v52  ;;  %vm3096_vm14 = vcmp.eq.s32.totalorder %v6462_v51, 1 }
 0x753   : > { %4953 = vpow2.f32 %v3688_v10 }
 0x754   : > { %4955 = vpow2.f32 %v3690_v60 }
 0x755   : > { %4957 = vtanh.f32 %v3029_v0 }
 0x75c   : > { %v4952_v61 = vpop.eup %4951 }
 0x75d   : > { %v4954_v9 = vpop.eup %4953  ;;  %v3041_v12 = vadd.f32 1.0, %v4952_v61  ;;  %v2718_v61 = vld [vmem:[%s5124_s4 + $0x78] sm:$0x30] }
 0x75e   : > { %v3053_v2 = vadd.f32 1.0, %v4954_v9  ;;  %v4956_v7 = vpop.eup %4955 }
 0x75f   : > { %4959 = vrcp.f32 %v3041_v12  ;;  %v4958_v6 = vpop.eup %4957  ;;  %v3067_v18 = vadd.f32 1.0, %v4956_v7 }
 0x760   : > { %4961 = vrcp.f32 %v3053_v2  ;;  %v2717_v2 = vld [vmem:[%s5124_s4 + $0x70] sm:$0x30] }
 0x761   : > { %4963 = vrcp.f32 %v3067_v18 }
 0x769   : > { %v4960_v48 = vpop.eup %4959 }
 0x76a   : > { %v4962_v46 = vpop.eup %4961  ;;  %v3081_v44 = vmul.f32 %v4960_v48, %v4958_v6 }
 0x76b   : > { %v3079_v62 = vmul.f32 %v4962_v46, %v3075_v16  ;;  %v2927_v20 = vpop.f32.mrb[26].mxu0  ;;  %v2998_v40 = vpop.f32.mrb[26].mxu1 }
 0x76c   : > { %v3015_v14 = vrot.slane %v2927_v20, 4  ;;  %v2929_v43 = vpop.f32.mrb[27].mxu0  ;;  %v3000_v26 = vpop.f32.mrb[27].mxu1  ;;  %v3017_v12 = vrot.slane %v2998_v40, 4 }
 0x76d   : > { %v3083_v52 = vadd.f32 %v3081_v44, %v3079_v62  ;;  %v3016_v10 = vrot.slane %v2929_v43, 4  ;;  %v3018_v60 = vrot.slane %v3000_v26, 4  ;;  %v4964_v7 = vpop.eup %4963 }
 0x76e   : > { %v3031_v32 = vadd.f32 %v3015_v14, %v2715_v63  ;;  %v3033_v16 = vadd.f32 %v3017_v12, %v2717_v2 }
 0x76f   : > { %v3099_v55 = vrot.slane %v3083_v52, 4  ;;  %v3032_v35 = vadd.f32 %v3016_v10, %v2716_v25  ;;  %4965 = vtanh.f32 %v3083_v52  ;;  %v3034_v9 = vadd.f32 %v3018_v60, %v2718_v61 }
 0x770   : > { %v3687_v29 = vmul.f32 -1.442695, %v3031_v32 }
 0x771   : > { %v3689_v45 = vmul.f32 -1.442695, %v3032_v35  ;;  %v6468_v0 = vsel %vm3096_vm14, %v3099_v55, %v6357_v33  ;;  %v3691_v48 = vmul.f32 -1.442695, %v3034_v9  ;;  %v3121_v9 = vld [vmem:[%s5124_s4 + $0x60] sm:$0xc0] }
 0x772   : > { %4967 = vpow2.f32 %v3687_v29  ;;  %v3481_v35 = vrot.slane %v6468_v0, 2 }
 0x773   : > { %4969 = vpow2.f32 %v3689_v45 }
 0x774   : > { %4971 = vpow2.f32 %v3691_v48 }
 0x775   : > { %4973 = vtanh.f32 %v3033_v16 }
 0x779   : > { %v4966_v6 = vpop.eup %4965 }
 0x77a   : > { %v3087_v46 = vmul.f32 %v4966_v6, %v4964_v7  ;;  %v3122_v6 = vld [vmem:[%s5124_s4 + $0x68] sm:$0xc0] }
 0x77c   : > { %v4968_v44 = vpop.eup %4967  ;;  %v3107_v18 = vrot.slane %v3087_v46, 4  ;;  %v3501_v46 = vpop.permute.xlu1 %3500 }
 0x77d   : > { %v4970_v62 = vpop.eup %4969  ;;  %v3042_v63 = vadd.f32 1.0, %v4968_v44  ;;  %vm3502_vm15 = vcmp.eq.s32.totalorder %v3501_v46, 1 }
 0x77e   : > { %v3054_v33 = vadd.f32 1.0, %v4970_v62  ;;  %v6475_v20 = vsel %vm3096_vm14, %v3107_v18, %v6364_v50  ;;  %v3113_v40 = vsel %vm3096_vm14, %v3107_v18, 0.0  ;;  %v4972_v50 = vpop.eup %4971 }
 0x77f   : > { %4975 = vrcp.f32 %v3042_v63  ;;  %3115 = vst [vmem:[%s5126_s5 + $0xc] sm:$0x3] %v3113_v40  ;;  %3190 = vmatmul.mubr.f32.vlgmr.msra.gmra.mrb[28].mxu0 %v6475_v20  ;;  %3261 = vmatmul.mubr.f32.vlgmr.msra.gmra.mrb[28].mxu1 %v6475_v20 }
 0x780   : > { %4977 = vrcp.f32 %v3054_v33  ;;  %4669 = vmatpush1.bf16.msra.mxu0 %v5444_v17  ;;  %4701 = vmatpush1.bf16.msra.mxu1 %v5497_v56  ;;  %v4974_v17 = vpop.eup %4973  ;;  %v3076_v56 = vrot.slane %v6397_v8, 4 }
 0x781   : > { %4671 = vmatprep.subr.bf16.mxu0 %v5447_v19  ;;  %4703 = vmatprep.subr.bf16.mxu1 %v5506_v58 }
 0x782   : > { %3331 = vmatprep.mubr.f32.mxu0 %v6692_v21  ;;  %3402 = vmatprep.mubr.f32.mxu1 %v6692_v21 }
 0x784   : > { %4673 = vmatpush1.bf16.msra.mxu0 %v5481_v42  ;;  %4705 = vmatpush1.bf16.msra.mxu1 %v5539_v22  ;;  %v3068_v22 = vadd.f32 1.0, %v4972_v50 }
 0x785   : > { %4675 = vmatprep.subr.bf16.mxu0 %v5485_v47  ;;  %4707 = vmatprep.subr.bf16.mxu1 %v5545_v36 }
 0x786   : > { %4979 = vrcp.f32 %v3068_v22  ;;  %v3123_v22 = vld [vmem:[%s5124_s4 + $0x70] sm:$0xc0] }
 0x788   : > { %4677 = vmatpush1.bf16.msra.mxu0 %v6693_v34  ;;  %4709 = vmatpush1.bf16.msra.mxu1 %v6694_v15 }
 0x789   : > { %v4976_v19 = vpop.eup %4975  ;;  %4679 = vmatprep.subr.bf16.mxu0 %v6695_v31  ;;  %4711 = vmatprep.subr.bf16.mxu1 %v6696_v53 }
 0x78a   : > { %v4978_v42 = vpop.eup %4977  ;;  %v3082_v58 = vmul.f32 %v4976_v19, %v4974_v17 }
 0x78b   : > { %v3080_v21 = vmul.f32 %v4978_v42, %v3076_v56  ;;  %v3124_v56 = vld [vmem:[%s5124_s4 + $0x78] sm:$0xc0] }
 0x78c   : > { %4681 = vmatpush1.bf16.msra.mxu0 %v6697_v54  ;;  %4713 = vmatpush1.bf16.msra.mxu1 %v5626_v59 }
 0x78d   : > { %v3084_v47 = vadd.f32 %v3082_v58, %v3080_v21  ;;  %4683 = vmatprep.subr.bf16.mxu0 %v6698_v28  ;;  %4715 = vmatprep.subr.bf16.mxu1 %v6699_v27 }
 0x78f   : > { %v3100_v36 = vrot.slane %v3084_v47, 4  ;;  %4981 = vtanh.f32 %v3084_v47 }
 0x790   : > { %4685 = vmatpush1.bf16.msra.mxu0 %v6700_v5  ;;  %4717 = vmatpush1.bf16.msra.mxu1 %v5666_v11  ;;  %v4980_v11 = vpop.eup %4979  ;;  %v3120_v5 = vld [vmem:[%s5124_s4 + $0x38] sm:$0xc0] }
 0x791   : > { %4687 = vmatprep.subr.bf16.mxu0 %v6701_v37  ;;  %4719 = vmatprep.subr.bf16.mxu1 %v5672_v23  ;;  %v6508_v59 = vsel %vm3096_vm14, %v3100_v36, %v6397_v8 }
 0x794   : > { %4689 = vmatpush1.bf16.msra.mxu0 %v5650_v39  ;;  %4721 = vmatpush1.bf16.msra.mxu1 %v5702_v1 }
 0x795   : > { %4691 = vmatprep.subr.bf16.mxu0 %v5654_v41  ;;  %4723 = vmatprep.subr.bf16.mxu1 %v5705_v4 }
 0x798   : > { %4693 = vmatpush1.bf16.msra.mxu0 %v5690_v38  ;;  %4725 = vmatpush1.bf16.msra.mxu1 %v5724_v30 }
 0x799   : > { %v4982_v23 = vpop.eup %4981  ;;  %4695 = vmatprep.subr.bf16.mxu0 %v5693_v49  ;;  %4727 = vmatprep.subr.bf16.mxu1 %v5727_v57  ;;  %v3117_v49 = vld [vmem:[%s5124_s4 + $0x20] sm:$0xc0]  ;;  %v3118_v57 = vld [vmem:[%s5124_s4 + $0x28] sm:$0xc0] }
 0x79a   : > { %v3088_v39 = vmul.f32 %v4982_v23, %v4980_v11 }
 0x79c   : > { %4697 = vmatpush1.bf16.msra.mxu0 %v5720_v3  ;;  %4729 = vmatpush1.bf16.msra.mxu1 %v5739_v24  ;;  %v3108_v41 = vrot.slane %v3088_v39, 4 }
 0x79e   : > { %v6523_v1 = vsel %vm3096_vm14, %v3108_v41, %v6414_v13  ;;  %v3114_v38 = vsel %vm3096_vm14, %v3108_v41, 0.0  ;;  %v3119_v13 = vld [vmem:[%s5124_s4 + $0x30] sm:$0xc0]  ;;  %s3705_s4 = sshll.u32 (%p5093_p5), %s5078_s15, 4 }
 0x79f   : > { %3116 = vst [vmem:[%s5126_s5 + $0x1c] sm:$0x3] %v3114_v38  ;;  %3332 = vmatmul.mubr.f32.vlgmr.msra.gmra.mrb[30].mxu0 %v6523_v1  ;;  %3403 = vmatmul.mubr.f32.vlgmr.msra.gmra.mrb[30].mxu1 %v6523_v1  ;;  %s3536_s24 = scalar_lea.vmem (%p5093_p5), %s6575_s3, %s3705_s4 }
 0x852   : > { %v3191_v4 = vpop.f32.mrb[28].mxu0  ;;  %v3262_v3 = vpop.f32.mrb[28].mxu1 }
 0x853   : > { %v3417_v30 = vrot.slane %v3191_v4, 2  ;;  %v3193_v24 = vpop.f32.mrb[29].mxu0  ;;  %v3264_v34 = vpop.f32.mrb[29].mxu1  ;;  %v3419_v8 = vrot.slane %v3262_v3, 2 }
 0x854   : > { %v3418_v15 = vrot.slane %v3193_v24, 2  ;;  %v3420_v27 = vrot.slane %v3264_v34, 2  ;;  %v3482_v34 = vrot.slane %v6508_v59, 2 }
 0x855   : > { %v3433_v31 = vadd.f32 %v3417_v30, %v3117_v49  ;;  %v3435_v25 = vadd.f32 %v3419_v8, %v3119_v13 }
 0x856   : > { %v3434_v53 = vadd.f32 %v3418_v15, %v3118_v57  ;;  %v3436_v37 = vadd.f32 %v3420_v27, %v3120_v5 }
 0x857   : > { %v3692_v54 = vmul.f32 -1.442695, %v3433_v31 }
 0x858   : > { %v3694_v28 = vmul.f32 -1.442695, %v3434_v53  ;;  %v3696_v14 = vmul.f32 -1.442695, %v3436_v37 }
 0x859   : > { %4983 = vpow2.f32 %v3692_v54 }
 0x85a   : > { %4985 = vpow2.f32 %v3694_v28 }
 0x85b   : > { %4987 = vpow2.f32 %v3696_v14 }
 0x85c   : > { %4989 = vtanh.f32 %v3435_v25 }
 0x863   : > { %v4984_v43 = vpop.eup %4983 }
 0x864   : > { %v4986_v26 = vpop.eup %4985  ;;  %v3447_v51 = vadd.f32 1.0, %v4984_v43 }
 0x865   : > { %v3459_v52 = vadd.f32 1.0, %v4986_v26  ;;  %v4988_v10 = vpop.eup %4987  ;;  %v3574_v26 = vld [vmem:[%s5126_s5 + $0x10] sm:$0xff] (%p5093_p5) }
 0x866   : > { %4991 = vrcp.f32 %v3447_v51  ;;  %v4990_v32 = vpop.eup %4989  ;;  %v3473_v60 = vadd.f32 1.0, %v4988_v10  ;;  %3575 = vst [vmem:[%s3536_s24 + $0x20] sm:$0xff] (%p5093_p5), %v3574_v26 }
 0x867   : > { %4993 = vrcp.f32 %v3459_v52 }
 0x868   : > { %4995 = vrcp.f32 %v3473_v60 }
 0x870   : > { %v4992_v55 = vpop.eup %4991 }
 0x871   : > { %v4994_v29 = vpop.eup %4993  ;;  %v3487_v45 = vmul.f32 %v4992_v55, %v4990_v32 }
 0x872   : > { %v3485_v61 = vmul.f32 %v4994_v29, %v3481_v35  ;;  %v3333_v12 = vpop.f32.mrb[30].mxu0  ;;  %v3404_v2 = vpop.f32.mrb[30].mxu1 }
 0x873   : > { %v3421_v7 = vrot.slane %v3333_v12, 2  ;;  %v3335_v48 = vpop.f32.mrb[31].mxu0  ;;  %v3406_v16 = vpop.f32.mrb[31].mxu1  ;;  %v3423_v58 = vrot.slane %v3404_v2, 2 }
 0x874   : > { %v3489_v44 = vadd.f32 %v3487_v45, %v3485_v61  ;;  %v3422_v18 = vrot.slane %v3335_v48, 2  ;;  %v3424_v19 = vrot.slane %v3406_v16, 2  ;;  %v4996_v21 = vpop.eup %4995 }
 0x875   : > { %v3437_v62 = vadd.f32 %v3421_v7, %v3121_v9  ;;  %v3439_v23 = vadd.f32 %v3423_v58, %v3123_v22 }
 0x876   : > { %4997 = vtanh.f32 %v3489_v44  ;;  %v3505_v63 = vrot.slane %v3489_v44, 6  ;;  %v3438_v33 = vadd.f32 %v3422_v18, %v3122_v6  ;;  %v3440_v42 = vadd.f32 %v3424_v19, %v3124_v56 }
 0x877   : > { %v3693_v40 = vmul.f32 -1.442695, %v3437_v62 }
 0x878   : > { %v3509_v50 = vsel %vm3502_vm15, %v3505_v63, %v6468_v0  ;;  %v3695_v17 = vmul.f32 -1.442695, %v3438_v33  ;;  %v3697_v36 = vmul.f32 -1.442695, %v3440_v42 }
 0x879   : > { %3525 = vst [vmem:[#allocation3] sm:$0x3] %v3509_v50  ;;  %4999 = vpow2.f32 %v3693_v40 }
 0x87a   : > { %5001 = vpow2.f32 %v3695_v17 }
 0x87b   : > { %5003 = vpow2.f32 %v3697_v36 }
 0x87c   : > { %5005 = vtanh.f32 %v3439_v23 }
 0x880   : > { %v4998_v47 = vpop.eup %4997 }
 0x881   : > { %v3493_v11 = vmul.f32 %v4998_v47, %v4996_v21 }
 0x883   : > { %v5000_v39 = vpop.eup %4999  ;;  %v3513_v41 = vrot.slane %v3493_v11, 6 }
 0x884   : > { %v5002_v38 = vpop.eup %5001  ;;  %v3448_v49 = vadd.f32 1.0, %v5000_v39 }
 0x885   : > { %v3517_v0 = vsel %vm3502_vm15, %v3513_v41, %v6475_v20  ;;  %v3519_v4 = vsel %vm3502_vm15, %v3513_v41, 0.0  ;;  %v3460_v3 = vadd.f32 1.0, %v5002_v38  ;;  %v5004_v30 = vpop.eup %5003 }
 0x886   : > { %3521 = vst [vmem:[%s5126_s5 + $0xe] sm:$0x3] %v3519_v4  ;;  %3523 = vst [vmem:[#allocation2] sm:$0x3] %v3517_v0  ;;  %5007 = vrcp.f32 %v3448_v49  ;;  %v5006_v57 = vpop.eup %5005  ;;  %v3474_v53 = vadd.f32 1.0, %v5004_v30 }
 0x887   : > { %5009 = vrcp.f32 %v3460_v3 }
 0x888   : > { %5011 = vrcp.f32 %v3474_v53 }
 0x88d   : > { %v3572_v43 = vld [vmem:[%s5126_s5 + $0x8] sm:$0xff] (%p5093_p5) }
 0x88e   : > { %3573 = vst [vmem:[%s3536_s24 + $0x8] sm:$0xff] (%p5093_p5), %v3572_v43 }
 0x890   : > { %v5008_v24 = vpop.eup %5007 }
 0x891   : > { %v5010_v15 = vpop.eup %5009  ;;  %v3488_v31 = vmul.f32 %v5008_v24, %v5006_v57 }
 0x892   : > { %v3486_v54 = vmul.f32 %v5010_v15, %v3482_v34  ;;  %v5012_v5 = vpop.eup %5011 }
 0x894   : > { %v3490_v28 = vadd.f32 %v3488_v31, %v3486_v54 }
 0x896   : > { %5013 = vtanh.f32 %v3490_v28  ;;  %v3506_v20 = vrot.slane %v3490_v28, 6 }
 0x898   : > { %v3510_v27 = vsel %vm3502_vm15, %v3506_v20, %v6508_v59  ;;  %v3570_v59 = vld [vmem:[%s5126_s5] sm:$0xff] (%p5093_p5) }
 0x899   : > { %3526 = vst [vmem:[#allocation3 + $0x2] sm:$0x3] %v3510_v27  ;;  %3571 = vst [vmem:[%s3536_s24] sm:$0xff] (%p5093_p5), %v3570_v59 }
 0x8a0   : > { %v5014_v37 = vpop.eup %5013  ;;  %3533 = sbr.rel (!%p5093_p5) target bundleno = 2223 (0x8af), region = 63 }
 0x8a1   : > { %v3494_v8 = vmul.f32 %v5014_v37, %v5012_v5 }
 0x8a3   : > { %v3514_v13 = vrot.slane %v3494_v8, 6 }
 0x8a5   : > { %v3518_v14 = vsel %vm3502_vm15, %v3514_v13, %v6523_v1  ;;  %v3520_v25 = vsel %vm3502_vm15, %v3514_v13, 0.0 }
 0x8a6   : > { %3522 = vst [vmem:[%s5126_s5 + $0x1e] sm:$0x3] %v3520_v25  ;;  %3524 = vst [vmem:[#allocation2 + $0x2] sm:$0x3] %v3518_v14 }
 0x8ad   : > { %v3576_v1 = vld [vmem:[%s5126_s5 + $0x18] sm:$0xff] }
 0x8ae   : > { %3577 = vst [vmem:[%s3536_s24 + $0x28] sm:$0xff] %v3576_v1 }
 0x8af PF: > { %p10_p11 = scmp.ge.s32.totalorder %s5081_s16, 4   ;;  %s6848_s12 = smov %s5033_s13 }
 0x8b0   : > { %s6849_s13 = smov %s5091_s19  ;;  %s6850_s14 = smov %s5081_s16 }
 0x8b1   :  { %12 = sbr.rel (!%p10_p11) target bundleno = 2 (0x2), region = 132 }

</bundles_post_ra>
